<compile_context>
chip_gen: v5e
topology: v5e:2x2
jax: 0.10.0
libtpu: 0.0.40
codegen_flags: <defaults>
</compile_context>

<pallas_src>
import jax
import jax.numpy as jnp
from jax.experimental import pallas as pl
from jax.experimental.pallas import tpu as pltpu  # noqa: F401  (not needed on the fused no-grid path)

# ----- model hyper-parameters (small, consistent with the module) -----------
D_MODEL   = 32            # original 256
N_HEADS   = 2             # original 8   (need d_model % n_heads**2 == 0)
DROPOUT_P = 0.1
D_QKV     = D_MODEL // N_HEADS        # qkv_conv out-channels / 3
D_HEAD    = D_QKV // N_HEADS          # per-head feature dim

_ON_TPU = jax.default_backend() == "tpu"


def _recip(x):
    # EUP approx reciprocal on real TPU (otherwise-idle slot); plain divide in
    # interpret / CPU mode where the pallas reciprocal primitive may not lower.
    if _ON_TPU:
        return pl.reciprocal(x, approx=True)
    return 1.0 / x


# =============================================================================
# Fused Pallas kernel: qkv conv  ->  multi-head SDPA  ->  output conv
# =============================================================================
def fused_attn_kernel(x_ref, qkv_w_ref, qkv_b_ref, out_w_ref, out_b_ref, u_ref,
                      y_ref, q_ref, v_ref, softmax_ref, dropout_ref, scaled_ref):
    # ---- qkv 1x1 conv == channel matmul: (3*D_QKV, C) @ (C, L) + bias ------
    qkv = (jnp.dot(qkv_w_ref[...], x_ref[...],
                   preferred_element_type=jnp.float32)
           + qkv_b_ref[...])                                     # (3*D_QKV, L)

    # TODO(synk): the original view(b, 3, n_heads, c // n_heads, h*w) has an
    # inconsistent numel; we use the only consistent split (3, n_heads, d_head).
    q_all = qkv[0 * D_QKV:1 * D_QKV, :]                          # (D_QKV, L)
    k_all = qkv[1 * D_QKV:2 * D_QKV, :]
    v_all = qkv[2 * D_QKV:3 * D_QKV, :]
    q_ref[...] = q_all                                           # lane-dense stores
    v_ref[...] = v_all

    scale    = jnp.float32(D_MODEL ** 0.25)   # == .div(inv_denom), inv_denom = d_model**-0.25
    inv_keep = jnp.float32(1.0 / (1.0 - DROPOUT_P))
    thresh   = jnp.float32(DROPOUT_P)

    head_outs = []
    # N_HEADS == 2: fully unrolled python loop, single kernel invocation (no grid).
    for h in range(N_HEADS):
        rows = slice(h * D_HEAD, (h + 1) * D_HEAD)
        q_h = q_all[rows, :]                                     # (D_HEAD, L)
        k_h = k_all[rows, :]
        v_h = v_all[rows, :]

        # scaled_qk[l, m] = scale * sum_d q[d, l] * k[d, m]   (contract dim 0)
        s = jax.lax.dot_general(
            q_h, k_h, (((0,), (0,)), ((), ())),
            preferred_element_type=jnp.float32) * scale          # (L, L)
        scaled_ref[h] = s

        # softmax over keys (last dim)
        m = jnp.max(s, axis=-1, keepdims=True)
        e = jnp.exp(s - m)
        p = e * _recip(jnp.sum(e, axis=-1, keepdims=True))
        softmax_ref[h] = p

        # dropout (training semantics of F.dropout): keep w.p. 1-p, scale 1/(1-p)
        # TODO(synk): RNG stream differs from torch's; uniforms are precomputed
        # host-side and only a compare + select runs per element in-kernel.
        keep = u_ref[h] >= thresh
        dp = jnp.where(keep, p * inv_keep, jnp.float32(0.0))
        dropout_ref[h] = dp

        # out_t[d, l] = sum_m v[d, m] * dp[l, m]  -> lane-dense (D_HEAD, L)
        head_outs.append(jax.lax.dot_general(
            v_h, dp, (((1,), (1,)), ((), ())),
            preferred_element_type=jnp.float32))

    attn_out = jnp.concatenate(head_outs, axis=0)                # (D_QKV, L)

    # ---- output 1x1 conv == channel matmul ----------------------------------
    # TODO(synk): the original .view(b, d_model, h, w).unsqueeze(0) is 5-D and
    # channel-inconsistent with output_conv(in=d_qkv); we feed (d_qkv, L).
    y_ref[...] = (jnp.dot(out_w_ref[...], attn_out,
                          preferred_element_type=jnp.float32)
                  + out_b_ref[...])                              # (D_MODEL, L)


def fused_forward(x_flat, qkv_w, qkv_b, out_w, out_b, rand_u):
    L = x_flat.shape[1]
    out_shapes = (
        jax.ShapeDtypeStruct((D_MODEL, L), jnp.float32),         # y_flat
        jax.ShapeDtypeStruct((D_QKV, L), jnp.float32),           # query (chan-major)
        jax.ShapeDtypeStruct((D_QKV, L), jnp.float32),           # value (chan-major)
        jax.ShapeDtypeStruct((N_HEADS, L, L), jnp.float32),      # softmax_qk
        jax.ShapeDtypeStruct((N_HEADS, L, L), jnp.float32),      # dropout_qk
        jax.ShapeDtypeStruct((N_HEADS, L, L), jnp.float32),      # scaled_qk
    )
    # No grid: one invocation, every operand is a single full-array VMEM block
    # (total footprint ~2.5 MB f32 -- fits v5e/v6e/v7x VMEM with huge headroom).
    return pl.pallas_call(
        fused_attn_kernel,
        out_shape=out_shapes,
    )(x_flat, qkv_w, qkv_b.reshape(-1, 1), out_w, out_b.reshape(-1, 1), rand_u)


# =============================================================================
# Forward pass (layout plumbing in plain JAX, all compute in the fused kernel)
# =============================================================================
def model_forward(x1, params, dropout_key):
    b, C, H, W = x1.shape
    assert b == 1 and C == D_MODEL
    # qkv_conv has padding=1: zero-pad the spatial grid before the 1x1 conv.
    xp = jnp.pad(x1, ((0, 0), (0, 0), (1, 1), (1, 1)))
    h, w = H + 2, W + 2
    L = h * w
    x_flat = xp.reshape(C, L)                                    # channel-major, L lane-dense

    rand_u = jax.random.uniform(dropout_key, (N_HEADS, L, L), jnp.float32)

    y_flat, q_all, v_all, softmax_qk, dropout_qk, scaled_qk = fused_forward(
        x_flat, params["qkv_w"], params["qkv_b"],
        params["out_w"], params["out_b"], rand_u)

    output = y_flat.reshape(1, D_MODEL, h, w)
    query = q_all.reshape(N_HEADS, D_HEAD, L)                    # channel-major per head
    value = v_all.reshape(N_HEADS, D_HEAD, L)
    return output, query, value, softmax_qk, dropout_qk, scaled_qk


# ----- pure-JAX reference for correctness checking ---------------------------
def reference_forward(x1, params, dropout_key):
    b, C, H, W = x1.shape
    xp = jnp.pad(x1, ((0, 0), (0, 0), (1, 1), (1, 1)))
    h, w = H + 2, W + 2
    L = h * w
    x_flat = xp.reshape(C, L)
    hi = jax.lax.Precision.HIGHEST
    qkv = jnp.dot(params["qkv_w"], x_flat, precision=hi) + params["qkv_b"][:, None]
    q = qkv[:D_QKV].reshape(N_HEADS, D_HEAD, L)
    k = qkv[D_QKV:2 * D_QKV].reshape(N_HEADS, D_HEAD, L)
    v = qkv[2 * D_QKV:].reshape(N_HEADS, D_HEAD, L)
    s = jnp.einsum("hdl,hdm->hlm", q, k, precision=hi) * (D_MODEL ** 0.25)
    p = jax.nn.softmax(s, axis=-1)
    rand_u = jax.random.uniform(dropout_key, (N_HEADS, L, L), jnp.float32)
    dp = jnp.where(rand_u >= DROPOUT_P, p / (1.0 - DROPOUT_P), 0.0)
    o = jnp.einsum("hlm,hdm->hdl", dp, v, precision=hi).reshape(D_QKV, L)
    y = jnp.dot(params["out_w"], o, precision=hi) + params["out_b"][:, None]
    return y.reshape(1, D_MODEL, h, w), q, v, p, dp, s


def init_params(key):
    k1, k2, k3, k4 = jax.random.split(key, 4)
    # Conv2d(d_model, 3*d_qkv, 1) -> weight (3*d_qkv, d_model), bias (3*d_qkv,)
    qkv_w = jax.random.normal(k1, (3 * D_QKV, D_MODEL), jnp.float32) * 0.05
    qkv_b = jax.random.normal(k2, (3 * D_QKV,), jnp.float32) * 0.01
    # Conv2d(d_qkv, d_model, 1) -> weight (d_model, d_qkv), bias (d_model,)
    out_w = jax.random.normal(k3, (D_MODEL, D_QKV), jnp.float32) * 0.05
    out_b = jax.random.normal(k4, (D_MODEL,), jnp.float32) * 0.01
    return dict(qkv_w=qkv_w, qkv_b=qkv_b, out_w=out_w, out_b=out_b)


if __name__ == "__main__":
    key = jax.random.PRNGKey(0)
    kx, kp, kd = jax.random.split(key, 3)
    # x1: (1, d_model, 14, 14) -> padding=1 gives a 16x16 grid (L = 256)
    x1 = jax.random.normal(kx, (1, D_MODEL, 14, 14), jnp.float32)
    params = init_params(kp)

    fwd = jax.jit(model_forward)
    outs = jax.block_until_ready(fwd(x1, params, kd))
    output, query, value, softmax_qk, dropout_qk, scaled_qk = outs

    assert output.shape == (1, D_MODEL, 16, 16)
    assert query.shape == (N_HEADS, D_HEAD, 256)
    assert value.shape == (N_HEADS, D_HEAD, 256)
    assert scaled_qk.shape == (N_HEADS, 256, 256)
    assert dropout_qk.shape == (N_HEADS, 256, 256)
    # softmax rows must sum to ~1 (approx reciprocal tolerance on TPU)
    assert bool(jnp.allclose(jnp.sum(softmax_qk, axis=-1), 1.0, atol=5e-3))

    # cross-check against the pure-JAX reference (same dropout uniforms)
    ref_out, ref_q, ref_v, ref_p, ref_dp, ref_s = reference_forward(x1, params, kd)
    assert bool(jnp.allclose(scaled_qk, ref_s, rtol=2e-2, atol=2e-2))
    assert bool(jnp.allclose(softmax_qk, ref_p, rtol=2e-2, atol=2e-2))
    assert bool(jnp.allclose(dropout_qk, ref_dp, rtol=2e-2, atol=2e-2))
    assert bool(jnp.allclose(query, ref_q, rtol=2e-2, atol=2e-2))
    assert bool(jnp.allclose(value, ref_v, rtol=2e-2, atol=2e-2))
    assert bool(jnp.allclose(output, ref_out, rtol=2e-2, atol=2e-2))

    print("KERNEL_OK")
</pallas_src>

<mosaic_0001>
module attributes {stable_mosaic.version = 11 : i64} {
  func.func @fused_attn_kernel(%arg0: memref<32x256xf32, #tpu.memory_space<vmem>>, %arg1: memref<48x32xf32, #tpu.memory_space<vmem>>, %arg2: memref<48x1xf32, #tpu.memory_space<vmem>>, %arg3: memref<32x16xf32, #tpu.memory_space<vmem>>, %arg4: memref<32x1xf32, #tpu.memory_space<vmem>>, %arg5: memref<2x256x256xf32, #tpu.memory_space<vmem>>, %arg6: memref<32x256xf32, #tpu.memory_space<vmem>>, %arg7: memref<16x256xf32, #tpu.memory_space<vmem>>, %arg8: memref<16x256xf32, #tpu.memory_space<vmem>>, %arg9: memref<2x256x256xf32, #tpu.memory_space<vmem>>, %arg10: memref<2x256x256xf32, #tpu.memory_space<vmem>>, %arg11: memref<2x256x256xf32, #tpu.memory_space<vmem>>) attributes {dimension_semantics = [], scalar_prefetch = 0 : i64, scratch_operands = 0 : i64, tpu.core_type = #tpu.core_type<tc>} {
    %c0 = arith.constant 0 : index
    %c0_0 = arith.constant 0 : index
    %0 = vector.load %arg1[%c0, %c0_0] : memref<48x32xf32, #tpu.memory_space<vmem>>, vector<48x32xf32>
    %c0_1 = arith.constant 0 : index
    %c0_2 = arith.constant 0 : index
    %1 = vector.load %arg0[%c0_1, %c0_2] : memref<32x256xf32, #tpu.memory_space<vmem>>, vector<32x256xf32>
    %cst = arith.constant dense<0.000000e+00> : vector<48x256xf32>
    %2 = tpu.matmul %0, %1, %cst {dimension_numbers = #tpu.dot_dimension_numbers<[1], [0], [0], [1], [0, 0, 1, 1], [], []>} : vector<48x32xf32>, vector<32x256xf32>, vector<48x256xf32> -> vector<48x256xf32>
    %c0_3 = arith.constant 0 : index
    %c0_4 = arith.constant 0 : index
    %3 = vector.load %arg2[%c0_3, %c0_4] : memref<48x1xf32, #tpu.memory_space<vmem>>, vector<48x1xf32>
    %4 = vector.broadcast %3 : vector<48x1xf32> to vector<48x256xf32>
    %5 = arith.addf %2, %4 : vector<48x256xf32>
    %6 = vector.extract_strided_slice %5 {offsets = [0, 0], sizes = [16, 256], strides = [1, 1]} : vector<48x256xf32> to vector<16x256xf32>
    %7 = vector.extract_strided_slice %5 {offsets = [16, 0], sizes = [16, 256], strides = [1, 1]} : vector<48x256xf32> to vector<16x256xf32>
    %8 = vector.extract_strided_slice %5 {offsets = [32, 0], sizes = [16, 256], strides = [1, 1]} : vector<48x256xf32> to vector<16x256xf32>
    %c0_5 = arith.constant 0 : index
    %c0_6 = arith.constant 0 : index
    %9 = vector.load %arg7[%c0_5, %c0_6] : memref<16x256xf32, #tpu.memory_space<vmem>>, vector<16x256xf32>
    tpu.vector_store %arg7[%c0_5, %c0_6], %6 {strides = array<i32>} : memref<16x256xf32, #tpu.memory_space<vmem>>, vector<16x256xf32>,
    %c0_7 = arith.constant 0 : index
    %c0_8 = arith.constant 0 : index
    %10 = vector.load %arg8[%c0_7, %c0_8] : memref<16x256xf32, #tpu.memory_space<vmem>>, vector<16x256xf32>
    tpu.vector_store %arg8[%c0_7, %c0_8], %8 {strides = array<i32>} : memref<16x256xf32, #tpu.memory_space<vmem>>, vector<16x256xf32>,
    %11 = vector.extract_strided_slice %6 {offsets = [0, 0], sizes = [8, 256], strides = [1, 1]} : vector<16x256xf32> to vector<8x256xf32>
    %12 = vector.extract_strided_slice %7 {offsets = [0, 0], sizes = [8, 256], strides = [1, 1]} : vector<16x256xf32> to vector<8x256xf32>
    %13 = vector.extract_strided_slice %8 {offsets = [0, 0], sizes = [8, 256], strides = [1, 1]} : vector<16x256xf32> to vector<8x256xf32>
    %cst_9 = arith.constant dense<0.000000e+00> : vector<256x256xf32>
    %14 = tpu.matmul %11, %12, %cst_9 {dimension_numbers = #tpu.dot_dimension_numbers<[0], [0], [1], [1], [0, 1, 1, 1], [], []>} : vector<8x256xf32>, vector<8x256xf32>, vector<256x256xf32> -> vector<256x256xf32>
    %cst_10 = arith.constant 2.37841415 : f32
    %15 = vector.broadcast %cst_10 : f32 to vector<256x256xf32>
    %16 = arith.mulf %14, %15 : vector<256x256xf32>
    %c0_11 = arith.constant 0 : index
    %c0_12 = arith.constant 0 : index
    %c0_13 = arith.constant 0 : index
    %17 = vector.load %arg11[%c0_11, %c0_12, %c0_13] : memref<2x256x256xf32, #tpu.memory_space<vmem>>, vector<1x256x256xf32>
    %18 = vector.shape_cast %17 : vector<1x256x256xf32> to vector<256x256xf32>
    %19 = vector.shape_cast %16 : vector<256x256xf32> to vector<1x256x256xf32>
    tpu.vector_store %arg11[%c0_11, %c0_12, %c0_13], %19 {strides = array<i32>} : memref<2x256x256xf32, #tpu.memory_space<vmem>>, vector<1x256x256xf32>,
    %cst_14 = arith.constant dense<0xFF800000> : vector<256xf32>
    %20 = vector.multi_reduction <maximumf>, %16, %cst_14 [1] : vector<256x256xf32> to vector<256xf32>
    %21 = vector.shape_cast %20 : vector<256xf32> to vector<256x1xf32>
    %22 = vector.broadcast %21 : vector<256x1xf32> to vector<256x256xf32>
    %23 = arith.subf %16, %22 : vector<256x256xf32>
    %24 = math.exp %23 : vector<256x256xf32>
    %cst_15 = arith.constant dense<0.000000e+00> : vector<256xf32>
    %25 = vector.multi_reduction <add>, %24, %cst_15 [1] : vector<256x256xf32> to vector<256xf32>
    %26 = vector.shape_cast %25 : vector<256xf32> to vector<256x1xf32>
    %cst_16 = arith.constant 1.000000e+00 : f32
    %27 = vector.broadcast %cst_16 : f32 to vector<256x1xf32>
    %28 = arith.divf %27, %26 : vector<256x1xf32>
    %29 = vector.broadcast %28 : vector<256x1xf32> to vector<256x256xf32>
    %30 = arith.mulf %24, %29 : vector<256x256xf32>
    %c0_17 = arith.constant 0 : index
    %c0_18 = arith.constant 0 : index
    %c0_19 = arith.constant 0 : index
    %31 = vector.load %arg9[%c0_17, %c0_18, %c0_19] : memref<2x256x256xf32, #tpu.memory_space<vmem>>, vector<1x256x256xf32>
    %32 = vector.shape_cast %31 : vector<1x256x256xf32> to vector<256x256xf32>
    %33 = vector.shape_cast %30 : vector<256x256xf32> to vector<1x256x256xf32>
    tpu.vector_store %arg9[%c0_17, %c0_18, %c0_19], %33 {strides = array<i32>} : memref<2x256x256xf32, #tpu.memory_space<vmem>>, vector<1x256x256xf32>,
    %c0_20 = arith.constant 0 : index
    %c0_21 = arith.constant 0 : index
    %c0_22 = arith.constant 0 : index
    %34 = vector.load %arg5[%c0_20, %c0_21, %c0_22] : memref<2x256x256xf32, #tpu.memory_space<vmem>>, vector<1x256x256xf32>
    %35 = vector.shape_cast %34 : vector<1x256x256xf32> to vector<256x256xf32>
    %cst_23 = arith.constant 1.000000e-01 : f32
    %36 = vector.broadcast %cst_23 : f32 to vector<256x256xf32>
    %37 = arith.cmpf oge, %35, %36 : vector<256x256xf32>
    %cst_24 = arith.constant 1.11111116 : f32
    %38 = vector.broadcast %cst_24 : f32 to vector<256x256xf32>
    %39 = arith.mulf %30, %38 : vector<256x256xf32>
    %cst_25 = arith.constant 0.000000e+00 : f32
    %40 = vector.broadcast %cst_25 : f32 to vector<256x256xf32>
    %41 = arith.select %37, %39, %40 : vector<256x256xi1>, vector<256x256xf32>
    %c0_26 = arith.constant 0 : index
    %c0_27 = arith.constant 0 : index
    %c0_28 = arith.constant 0 : index
    %42 = vector.load %arg10[%c0_26, %c0_27, %c0_28] : memref<2x256x256xf32, #tpu.memory_space<vmem>>, vector<1x256x256xf32>
    %43 = vector.shape_cast %42 : vector<1x256x256xf32> to vector<256x256xf32>
    %44 = vector.shape_cast %41 : vector<256x256xf32> to vector<1x256x256xf32>
    tpu.vector_store %arg10[%c0_26, %c0_27, %c0_28], %44 {strides = array<i32>} : memref<2x256x256xf32, #tpu.memory_space<vmem>>, vector<1x256x256xf32>,
    %cst_29 = arith.constant dense<0.000000e+00> : vector<8x256xf32>
    %45 = tpu.matmul %13, %41, %cst_29 {dimension_numbers = #tpu.dot_dimension_numbers<[1], [1], [0], [0], [0, 0, 1, 0], [], []>} : vector<8x256xf32>, vector<256x256xf32>, vector<8x256xf32> -> vector<8x256xf32>
    %46 = vector.extract_strided_slice %6 {offsets = [8, 0], sizes = [8, 256], strides = [1, 1]} : vector<16x256xf32> to vector<8x256xf32>
    %47 = vector.extract_strided_slice %7 {offsets = [8, 0], sizes = [8, 256], strides = [1, 1]} : vector<16x256xf32> to vector<8x256xf32>
    %48 = vector.extract_strided_slice %8 {offsets = [8, 0], sizes = [8, 256], strides = [1, 1]} : vector<16x256xf32> to vector<8x256xf32>
    %cst_30 = arith.constant dense<0.000000e+00> : vector<256x256xf32>
    %49 = tpu.matmul %46, %47, %cst_30 {dimension_numbers = #tpu.dot_dimension_numbers<[0], [0], [1], [1], [0, 1, 1, 1], [], []>} : vector<8x256xf32>, vector<8x256xf32>, vector<256x256xf32> -> vector<256x256xf32>
    %cst_31 = arith.constant 2.37841415 : f32
    %50 = vector.broadcast %cst_31 : f32 to vector<256x256xf32>
    %51 = arith.mulf %49, %50 : vector<256x256xf32>
    %c1 = arith.constant 1 : index
    %c0_32 = arith.constant 0 : index
    %c0_33 = arith.constant 0 : index
    %52 = vector.load %arg11[%c1, %c0_32, %c0_33] : memref<2x256x256xf32, #tpu.memory_space<vmem>>, vector<1x256x256xf32>
    %53 = vector.shape_cast %52 : vector<1x256x256xf32> to vector<256x256xf32>
    %54 = vector.shape_cast %51 : vector<256x256xf32> to vector<1x256x256xf32>
    tpu.vector_store %arg11[%c1, %c0_32, %c0_33], %54 {strides = array<i32>} : memref<2x256x256xf32, #tpu.memory_space<vmem>>, vector<1x256x256xf32>,
    %cst_34 = arith.constant dense<0xFF800000> : vector<256xf32>
    %55 = vector.multi_reduction <maximumf>, %51, %cst_34 [1] : vector<256x256xf32> to vector<256xf32>
    %56 = vector.shape_cast %55 : vector<256xf32> to vector<256x1xf32>
    %57 = vector.broadcast %56 : vector<256x1xf32> to vector<256x256xf32>
    %58 = arith.subf %51, %57 : vector<256x256xf32>
    %59 = math.exp %58 : vector<256x256xf32>
    %cst_35 = arith.constant dense<0.000000e+00> : vector<256xf32>
    %60 = vector.multi_reduction <add>, %59, %cst_35 [1] : vector<256x256xf32> to vector<256xf32>
    %61 = vector.shape_cast %60 : vector<256xf32> to vector<256x1xf32>
    %cst_36 = arith.constant 1.000000e+00 : f32
    %62 = vector.broadcast %cst_36 : f32 to vector<256x1xf32>
    %63 = arith.divf %62, %61 : vector<256x1xf32>
    %64 = vector.broadcast %63 : vector<256x1xf32> to vector<256x256xf32>
    %65 = arith.mulf %59, %64 : vector<256x256xf32>
    %c1_37 = arith.constant 1 : index
    %c0_38 = arith.constant 0 : index
    %c0_39 = arith.constant 0 : index
    %66 = vector.load %arg9[%c1_37, %c0_38, %c0_39] : memref<2x256x256xf32, #tpu.memory_space<vmem>>, vector<1x256x256xf32>
    %67 = vector.shape_cast %66 : vector<1x256x256xf32> to vector<256x256xf32>
    %68 = vector.shape_cast %65 : vector<256x256xf32> to vector<1x256x256xf32>
    tpu.vector_store %arg9[%c1_37, %c0_38, %c0_39], %68 {strides = array<i32>} : memref<2x256x256xf32, #tpu.memory_space<vmem>>, vector<1x256x256xf32>,
    %c1_40 = arith.constant 1 : index
    %c0_41 = arith.constant 0 : index
    %c0_42 = arith.constant 0 : index
    %69 = vector.load %arg5[%c1_40, %c0_41, %c0_42] : memref<2x256x256xf32, #tpu.memory_space<vmem>>, vector<1x256x256xf32>
    %70 = vector.shape_cast %69 : vector<1x256x256xf32> to vector<256x256xf32>
    %cst_43 = arith.constant 1.000000e-01 : f32
    %71 = vector.broadcast %cst_43 : f32 to vector<256x256xf32>
    %72 = arith.cmpf oge, %70, %71 : vector<256x256xf32>
    %cst_44 = arith.constant 1.11111116 : f32
    %73 = vector.broadcast %cst_44 : f32 to vector<256x256xf32>
    %74 = arith.mulf %65, %73 : vector<256x256xf32>
    %cst_45 = arith.constant 0.000000e+00 : f32
    %75 = vector.broadcast %cst_45 : f32 to vector<256x256xf32>
    %76 = arith.select %72, %74, %75 : vector<256x256xi1>, vector<256x256xf32>
    %c1_46 = arith.constant 1 : index
    %c0_47 = arith.constant 0 : index
    %c0_48 = arith.constant 0 : index
    %77 = vector.load %arg10[%c1_46, %c0_47, %c0_48] : memref<2x256x256xf32, #tpu.memory_space<vmem>>, vector<1x256x256xf32>
    %78 = vector.shape_cast %77 : vector<1x256x256xf32> to vector<256x256xf32>
    %79 = vector.shape_cast %76 : vector<256x256xf32> to vector<1x256x256xf32>
    tpu.vector_store %arg10[%c1_46, %c0_47, %c0_48], %79 {strides = array<i32>} : memref<2x256x256xf32, #tpu.memory_space<vmem>>, vector<1x256x256xf32>,
    %cst_49 = arith.constant dense<0.000000e+00> : vector<8x256xf32>
    %80 = tpu.matmul %48, %76, %cst_49 {dimension_numbers = #tpu.dot_dimension_numbers<[1], [1], [0], [0], [0, 0, 1, 0], [], []>} : vector<8x256xf32>, vector<256x256xf32>, vector<8x256xf32> -> vector<8x256xf32>
    %81 = tpu.concatenate %45, %80 in 0 : vector<8x256xf32>, vector<8x256xf32> -> vector<16x256xf32>
    %c0_50 = arith.constant 0 : index
    %c0_51 = arith.constant 0 : index
    %82 = vector.load %arg3[%c0_50, %c0_51] : memref<32x16xf32, #tpu.memory_space<vmem>>, vector<32x16xf32>
    %cst_52 = arith.constant dense<0.000000e+00> : vector<32x256xf32>
    %83 = tpu.matmul %82, %81, %cst_52 {dimension_numbers = #tpu.dot_dimension_numbers<[1], [0], [0], [1], [0, 0, 1, 1], [], []>} : vector<32x16xf32>, vector<16x256xf32>, vector<32x256xf32> -> vector<32x256xf32>
    %c0_53 = arith.constant 0 : index
    %c0_54 = arith.constant 0 : index
    %84 = vector.load %arg4[%c0_53, %c0_54] : memref<32x1xf32, #tpu.memory_space<vmem>>, vector<32x1xf32>
    %85 = vector.broadcast %84 : vector<32x1xf32> to vector<32x256xf32>
    %86 = arith.addf %83, %85 : vector<32x256xf32>
    %c0_55 = arith.constant 0 : index
    %c0_56 = arith.constant 0 : index
    %87 = vector.load %arg6[%c0_55, %c0_56] : memref<32x256xf32, #tpu.memory_space<vmem>>, vector<32x256xf32>
    tpu.vector_store %arg6[%c0_55, %c0_56], %86 {strides = array<i32>} : memref<32x256xf32, #tpu.memory_space<vmem>>, vector<32x256xf32>,
    return
  }
}

</mosaic_0001>

<bundles_post_ra>
// kernel: model_forward.1
= control target key start
LH: loop header
LB: loop body
LE: loop exit
PB: predicated region body
PF: predicated region fallthrough
CT: control target
= control target key end

     0   :  { %17 = vsyncpa [#allocation3], 0  ;;  %s9646_s0 = inlined_call_operand.vmem [shape: f32[32,256], index: 0, kind: input, shape index: {}]   ;;  %s9647_s1 = inlined_call_operand.vmem [shape: f32[48,32], index: 1, kind: input, shape index: {}]   ;;  %s9648_s2 = inlined_call_operand.vmem [shape: f32[48,1], index: 2, kind: input, shape index: {}]   ;;  %s9649_s3 = inlined_call_operand.vmem [shape: f32[32,16], index: 3, kind: input, shape index: {}]   ;;  %s9650_s4 = inlined_call_operand.vmem [shape: f32[32,1], index: 4, kind: input, shape index: {}]   ;;  %s9651_s5 = inlined_call_operand.vmem [shape: f32[2,256,256], index: 5, kind: input, shape index: {}]   ;;  %s9652_s6 = inlined_call_operand.vmem [shape: f32[32,256], index: 6, kind: output, shape index: {0}]   ;;  %s9653_s7 = inlined_call_operand.hbm [shape: f32[16,256], index: 7, kind: output, shape index: {1}]   ;;  %s9654_s8 = inlined_call_operand.hbm [shape: f32[16,256], index: 8, kind: output, shape index: {2}]   ;;  %s9655_s9 = inlined_call_operand.hbm [shape: f32[2,256,256], index: 9, kind: output, shape index: {3}]   ;;  %s9656_s10 = inlined_call_operand.hbm [shape: f32[2,256,256], index: 10, kind: output, shape index: {4}]   ;;  %s9657_s11 = inlined_call_operand.hbm [shape: f32[2,256,256], index: 11, kind: output, shape index: {5}]  }
   0x1   :  { %18 = vsyncpa [#allocation5], 0  ;;  %v44_v0 = vld [vmem:[%s9646_s0 + $0x30] sm:$0xff]  ;;  %v45_v1 = vld [vmem:[%s9646_s0 + $0x38] sm:$0xff]  ;;  %v5079_v6 = vmov 0  }
   0x2   :  { %v42_v2 = vld [vmem:[%s9646_s0 + $0x20] sm:$0xff]  ;;  %113 = vmatpush.msra.mxu0 %v44_v0  ;;  %148 = vmatpush.msra.mxu1 %v45_v1  ;;  %v43_v3 = vld [vmem:[%s9646_s0 + $0x28] sm:$0xff]  ;;  %v40_v4 = vld [vmem:[%s9646_s0 + $0x10] sm:$0xff] }
   0x3   :  { %v41_v5 = vld [vmem:[%s9646_s0 + $0x18] sm:$0xff]  ;;  %4544 = vset.pattern.permute.xlu0 %v5079_v6  ;;  %4545 = vset.pattern.permute.xlu2 %v5079_v6  ;;  %v46_v7 = vld [vmem:[%s9648_s2] sm:$0xff]  ;;  %v39_v9 = vld [vmem:[%s9646_s0 + $0x8] sm:$0xff] }
   0x4   :  { %114 = vmatpush.msra.mxu0 %v42_v2  ;;  %149 = vmatpush.msra.mxu1 %v43_v3  ;;  %v38_v8 = vld [vmem:[%s9646_s0] sm:$0xff] }
   0x5   :  { %54 = vperm.xlu0 %4544, %v46_v7  }
   0x6   :  { %19 = vsyncpa [#allocation8], 0  ;;  %115 = vmatpush.msra.mxu0 %v40_v4  ;;  %150 = vmatpush.msra.mxu1 %v41_v5  ;;  %v32_v10 = vld [vmem:[%s9647_s1] sm:$0xff]  ;;  %vm9701_vm0 = vcmask 261120   ;;  %v48_v11 = vld [vmem:[%s9648_s2 + $0x10] sm:$0xff]  ;;  %vm9681_vm1 = vcmask 64512  }
   0x7   :  { %v33_v12 = vld [vmem:[%s9647_s1 + $0x8] sm:$0xff]  ;;  %v34_v13 = vld [vmem:[%s9647_s1 + $0x10] sm:$0xff]  ;;  %s4124_s14 = sshll.u32 %s9654_s8, 4  ;;  %s5080_s15 = smov [#allocation4]   ;;  %s4125_s14 = int_to_ptr.hbm [resolvable:$true] %s4124_s14 }
   0x8   :  { %116 = vmatpush.msra.mxu0 %v38_v8  ;;  %151 = vmatpush.msra.mxu1 %v39_v9  ;;  %s5081_s16 = smov 256   ;;  %s5082_s17 = smov 16  }
   0x9   :  { %4195 = vmatmul.msk.f32.vlgmr.msra.gmra.mxu0 %vm9701_vm0, %v32_v10  ;;  %4201 = vmatmul.msk.f32.vlgmr.msra.gmra.mxu1 %vm9701_vm0, %v32_v10  ;;  %s5083_s18 = smov [#allocation7]   ;;  %s4150_s21 = sshll.u32 %s9656_s10, 4  ;;  %s4151_s21 = int_to_ptr.hbm [resolvable:$true] %s4150_s21 }
   0xa   :  { %s4148_s19 = sshll.u32 %s5083_s18, 4  ;;  %s4111_s23 = sshll.u32 %s9653_s7, 4  ;;  %s4149_s19 = int_to_ptr.vmem [resolvable:$true] %s4148_s19  ;;  %s4112_s23 = int_to_ptr.hbm [resolvable:$true] %s4111_s23 }
   0xb   :  { %s5085_s10 = smov [#allocation6]   ;;  %s4137_s29 = sshll.u32 %s9655_s9, 4  ;;  %s4138_s29 = int_to_ptr.hbm [resolvable:$true] %s4137_s29 }
   0xc   :  { %s4135_s27 = sshll.u32 %s5085_s10, 4  ;;  %s4163_s30 = sshll.u32 %s9657_s11, 4  ;;  %s4136_s27 = int_to_ptr.vmem [resolvable:$true] %s4135_s27  ;;  %s4164_s30 = int_to_ptr.hbm [resolvable:$true] %s4163_s30 }
   0xd   :  { %64 = vperm.xlu0 %4544, %v48_v11   ;;  %s5086_s12 = smov [#allocation9]  }
   0xe   :  { %s4161_s13 = sshll.u32 %s5086_s12, 4  ;;  %s4162_s13 = int_to_ptr.vmem [resolvable:$true] %s4161_s13 }
  0x11   :  { %4196 = vmatmul.msk.f32.gmra.mxu0 %vm9701_vm0, %v33_v12  ;;  %4202 = vmatmul.msk.f32.gmra.mxu1 %vm9701_vm0, %v33_v12 }
  0x19   :  { %4197 = vmatmul.msk.f32.gmra.mxu0 %vm9701_vm0, %v34_v13  ;;  %4203 = vmatmul.msk.f32.gmra.mxu1 %vm9701_vm0, %v34_v13 }
  0x77   :  { %v55_v14 = vpop.permute.xlu0 %54 }
  0x7f   :  { %v65_v21 = vpop.permute.xlu0 %64 }
  0x86   :  { %v118_v15 = vpop.f32.mrf.mxu0  ;;  %v153_v16 = vpop.f32.mrf.mxu1 }
  0x87   :  { %v119_v17 = vadd.f32 %v118_v15, %v55_v14  ;;  %v154_v18 = vadd.f32 %v153_v16, %v55_v14 }
  0x89   :  { %179 = vxpose.xlu1.b32.start.end [1/1] (short) %v119_v17, 128  ;;  %171 = vst [vmem:[#allocation2] sm:$0xff] %v119_v17 }
  0x8a   :  { %172 = vst [vmem:[#allocation2 + $0x8] sm:$0xff] %v154_v18 }
  0x8e   :  { %v5194_v19 = vpop.f32.mrf.mxu0  ;;  %v5196_v20 = vpop.f32.mrf.mxu1 }
  0x8f   :  { %9793 = vst [vmem:[#allocation13_spill] sm:$0xff] %v5194_v19 }
  0x90   :  { %9794 = vst [vmem:[#allocation14_spill] sm:$0xff] %v5196_v20 }
  0x96   :  { %v124_v22 = vpop.f32.mrf.mxu0  ;;  %v159_v23 = vpop.f32.mrf.mxu1 }
  0x97   :  { %v125_v24 = vadd.f32 %v124_v22, %v65_v21  ;;  %v160_v25 = vadd.f32 %v159_v23, %v65_v21 }
  0x99   :  { %355 = vmatpush.msra.mxu2 %v125_v24  ;;  %468 = vmatpush.msra.mxu3 %v160_v25 }
 0x109   :  { %211 = vxpose.xlu1.b32.start.end [1/1] (short) %v154_v18, 128 }
 0x12d   :  { %v195_v26 = vpop.trf.xlu1 }
 0x12e   :  { %4207 = vmatmul.msk.f32.vlgmr.msra.gmra.mxu2 %vm9681_vm1, %v195_v26  ;;  %4239 = vmatmul.msk.f32.vlgmr.msra.gmra.mxu3 %vm9681_vm1, %v195_v26 }
 0x135   :  { %v196_v27 = vpop.trf.xlu1 }
 0x136   :  { %4208 = vmatmul.msk.f32.gmra.mxu2 %vm9681_vm1, %v196_v27  ;;  %4240 = vmatmul.msk.f32.gmra.mxu3 %vm9681_vm1, %v196_v27 }
 0x13d   :  { %v197_v28 = vpop.trf.xlu1 }
 0x13e   :  { %4209 = vmatmul.msk.f32.gmra.mxu2 %vm9681_vm1, %v197_v28  ;;  %4241 = vmatmul.msk.f32.gmra.mxu3 %vm9681_vm1, %v197_v28 }
 0x145   :  { %v198_v29 = vpop.trf.xlu1 }
 0x146   :  { %4210 = vmatmul.msk.f32.gmra.mxu2 %vm9681_vm1, %v198_v29  ;;  %4242 = vmatmul.msk.f32.gmra.mxu3 %vm9681_vm1, %v198_v29 }
 0x14d   :  { %v199_v30 = vpop.trf.xlu1 }
 0x14e   :  { %4211 = vmatmul.msk.f32.gmra.mxu2 %vm9681_vm1, %v199_v30  ;;  %4243 = vmatmul.msk.f32.gmra.mxu3 %vm9681_vm1, %v199_v30 }
 0x155   :  { %v200_v31 = vpop.trf.xlu1 }
 0x156   :  { %4212 = vmatmul.msk.f32.gmra.mxu2 %vm9681_vm1, %v200_v31  ;;  %4244 = vmatmul.msk.f32.gmra.mxu3 %vm9681_vm1, %v200_v31 }
 0x15c   :  { %4546 = vset.pattern.permute.xlu1 %v5079_v6 }
 0x15d   :  { %v201_v32 = vpop.trf.xlu1 }
 0x15e   :  { %4213 = vmatmul.msk.f32.gmra.mxu2 %vm9681_vm1, %v201_v32  ;;  %4245 = vmatmul.msk.f32.gmra.mxu3 %vm9681_vm1, %v201_v32 }
 0x165   :  { %v202_v33 = vpop.trf.xlu1 }
 0x166   :  { %4214 = vmatmul.msk.f32.gmra.mxu2 %vm9681_vm1, %v202_v33  ;;  %4246 = vmatmul.msk.f32.gmra.mxu3 %vm9681_vm1, %v202_v33 }
 0x16d   :  { %v203_v34 = vpop.trf.xlu1 }
 0x16e   :  { %4215 = vmatmul.msk.f32.gmra.mxu2 %vm9681_vm1, %v203_v34  ;;  %4247 = vmatmul.msk.f32.gmra.mxu3 %vm9681_vm1, %v203_v34 }
 0x175   :  { %v204_v35 = vpop.trf.xlu1 }
 0x176   :  { %4216 = vmatmul.msk.f32.gmra.mxu2 %vm9681_vm1, %v204_v35  ;;  %4248 = vmatmul.msk.f32.gmra.mxu3 %vm9681_vm1, %v204_v35 }
 0x17d   :  { %v205_v36 = vpop.trf.xlu1 }
 0x17e   :  { %4217 = vmatmul.msk.f32.gmra.mxu2 %vm9681_vm1, %v205_v36  ;;  %4249 = vmatmul.msk.f32.gmra.mxu3 %vm9681_vm1, %v205_v36 }
 0x185   :  { %v206_v37 = vpop.trf.xlu1 }
 0x186   :  { %4218 = vmatmul.msk.f32.gmra.mxu2 %vm9681_vm1, %v206_v37  ;;  %4250 = vmatmul.msk.f32.gmra.mxu3 %vm9681_vm1, %v206_v37 }
 0x18d   :  { %v207_v38 = vpop.trf.xlu1 }
 0x18e   :  { %4219 = vmatmul.msk.f32.gmra.mxu2 %vm9681_vm1, %v207_v38  ;;  %4251 = vmatmul.msk.f32.gmra.mxu3 %vm9681_vm1, %v207_v38 }
 0x195   :  { %v208_v39 = vpop.trf.xlu1 }
 0x196   :  { %4220 = vmatmul.msk.f32.gmra.mxu2 %vm9681_vm1, %v208_v39  ;;  %4252 = vmatmul.msk.f32.gmra.mxu3 %vm9681_vm1, %v208_v39 }
 0x19d   :  { %v209_v40 = vpop.trf.xlu1 }
 0x19e   :  { %4221 = vmatmul.msk.f32.gmra.mxu2 %vm9681_vm1, %v209_v40  ;;  %4253 = vmatmul.msk.f32.gmra.mxu3 %vm9681_vm1, %v209_v40 }
 0x1a5   :  { %v210_v41 = vpop.trf.xlu1 }
 0x1a6   :  { %4222 = vmatmul.msk.f32.gmra.mxu2 %vm9681_vm1, %v210_v41  ;;  %4254 = vmatmul.msk.f32.gmra.mxu3 %vm9681_vm1, %v210_v41 }
 0x1ad   :  { %v227_v42 = vpop.trf.xlu1 }
 0x1ae   :  { %4223 = vmatmul.msk.f32.gmra.mxu2 %vm9681_vm1, %v227_v42  ;;  %4255 = vmatmul.msk.f32.gmra.mxu3 %vm9681_vm1, %v227_v42 }
 0x1b1   :  { %v357_v43 = vpop.f32.mrf.mxu2  ;;  %v470_v44 = vpop.f32.mrf.mxu3 }
 0x1b2   :  { %v5233_v45 = vmul.f32 2.3784142, %v357_v43  ;;  %v5235_v46 = vmul.f32 2.3784142, %v470_v44 }
 0x1b4   :  { %630 = vst [vmem:[#allocation9] sm:$0xff] %v5233_v45 }
 0x1b5   :  { %631 = vst [vmem:[#allocation9 + $0x8] sm:$0xff] %v5235_v46  ;;  %v228_v47 = vpop.trf.xlu1 }
 0x1b6   :  { %4224 = vmatmul.msk.f32.gmra.mxu2 %vm9681_vm1, %v228_v47  ;;  %4256 = vmatmul.msk.f32.gmra.mxu3 %vm9681_vm1, %v228_v47 }
 0x1b9   :  { %v360_v48 = vpop.f32.mrf.mxu2  ;;  %v473_v49 = vpop.f32.mrf.mxu3 }
 0x1ba   :  { %v568_v50 = vmul.f32 2.3784142, %v360_v48  ;;  %v569_v51 = vmul.f32 2.3784142, %v473_v49 }
 0x1bc   :  { %632 = vst [vmem:[#allocation9 + $0x10] sm:$0xff] %v568_v50  ;;  %v697_v52 = vmax.f32 %v568_v50, %v569_v51 }
 0x1bd   :  { %633 = vst [vmem:[#allocation9 + $0x18] sm:$0xff] %v569_v51  ;;  %v229_v53 = vpop.trf.xlu1 }
 0x1be   :  { %698 = vmax.xlane.f32.xlu0 %v697_v52  ;;  %4225 = vmatmul.msk.f32.gmra.mxu2 %vm9681_vm1, %v229_v53 }
 0x1bf   :  { %4257 = vmatmul.msk.f32.gmra.mxu3 %vm9681_vm1, %v229_v53 }
 0x1c1   :  { %v363_v54 = vpop.f32.mrf.mxu2  ;;  %v476_v55 = vpop.f32.mrf.mxu3 }
 0x1c2   :  { %v570_v56 = vmul.f32 2.3784142, %v363_v54  ;;  %v571_v57 = vmul.f32 2.3784142, %v476_v55 }
 0x1c4   :  { %634 = vst [vmem:[#allocation9 + $0x20] sm:$0xff] %v570_v56  ;;  %v700_v58 = vmax.f32 %v570_v56, %v571_v57 }
 0x1c5   :  { %635 = vst [vmem:[#allocation9 + $0x28] sm:$0xff] %v571_v57  ;;  %v230_v59 = vpop.trf.xlu1 }
 0x1c6   :  { %701 = vmax.xlane.f32.xlu2 %v700_v58  ;;  %4226 = vmatmul.msk.f32.gmra.mxu2 %vm9681_vm1, %v230_v59 }
 0x1c7   :  { %4258 = vmatmul.msk.f32.gmra.mxu3 %vm9681_vm1, %v230_v59 }
 0x1c9   :  { %v366_v60 = vpop.f32.mrf.mxu2  ;;  %v479_v61 = vpop.f32.mrf.mxu3 }
 0x1ca   :  { %v5245_v62 = vmul.f32 2.3784142, %v366_v60  ;;  %v5247_v63 = vmul.f32 2.3784142, %v479_v61 }
 0x1cc   :  { %636 = vst [vmem:[#allocation9 + $0x30] sm:$0xff] %v5245_v62  ;;  %v703_v0 = vmax.f32 %v5245_v62, %v5247_v63 }
 0x1cd   :  { %637 = vst [vmem:[#allocation9 + $0x38] sm:$0xff] %v5247_v63  ;;  %v231_v1 = vpop.trf.xlu1 }
 0x1ce   :  { %704 = vmax.xlane.f32.xlu2 %v703_v0  ;;  %4227 = vmatmul.msk.f32.gmra.mxu2 %vm9681_vm1, %v231_v1 }
 0x1cf   :  { %4259 = vmatmul.msk.f32.gmra.mxu3 %vm9681_vm1, %v231_v1 }
 0x1d1   :  { %v369_v2 = vpop.f32.mrf.mxu2  ;;  %v482_v3 = vpop.f32.mrf.mxu3 }
 0x1d2   :  { %v5255_v4 = vmul.f32 2.3784142, %v369_v2  ;;  %v5257_v5 = vmul.f32 2.3784142, %v482_v3 }
 0x1d4   :  { %638 = vst [vmem:[#allocation9 + $0x40] sm:$0xff] %v5255_v4  ;;  %v706_v6 = vmax.f32 %v5255_v4, %v5257_v5 }
 0x1d5   :  { %639 = vst [vmem:[#allocation9 + $0x48] sm:$0xff] %v5257_v5  ;;  %v232_v7 = vpop.trf.xlu1 }
 0x1d6   :  { %707 = vmax.xlane.f32.xlu2 %v706_v6  ;;  %4228 = vmatmul.msk.f32.gmra.mxu2 %vm9681_vm1, %v232_v7 }
 0x1d7   :  { %4260 = vmatmul.msk.f32.gmra.mxu3 %vm9681_vm1, %v232_v7 }
 0x1d9   :  { %v372_v8 = vpop.f32.mrf.mxu2  ;;  %v485_v9 = vpop.f32.mrf.mxu3 }
 0x1da   :  { %v5265_v10 = vmul.f32 2.3784142, %v372_v8  ;;  %v5267_v11 = vmul.f32 2.3784142, %v485_v9 }
 0x1dc   :  { %640 = vst [vmem:[#allocation9 + $0x50] sm:$0xff] %v5265_v10  ;;  %v709_v12 = vmax.f32 %v5265_v10, %v5267_v11 }
 0x1dd   :  { %641 = vst [vmem:[#allocation9 + $0x58] sm:$0xff] %v5267_v11  ;;  %v233_v13 = vpop.trf.xlu1 }
 0x1de   :  { %710 = vmax.xlane.f32.xlu2 %v709_v12  ;;  %4229 = vmatmul.msk.f32.gmra.mxu2 %vm9681_vm1, %v233_v13  ;;  %v694_v12 = vmax.f32 %v5233_v45, %v5235_v46 }
 0x1df   :  { %4261 = vmatmul.msk.f32.gmra.mxu3 %vm9681_vm1, %v233_v13 }
 0x1e1   :  { %v375_v14 = vpop.f32.mrf.mxu2  ;;  %v488_v15 = vpop.f32.mrf.mxu3 }
 0x1e2   :  { %v5275_v16 = vmul.f32 2.3784142, %v375_v14  ;;  %v5277_v17 = vmul.f32 2.3784142, %v488_v15 }
 0x1e4   :  { %642 = vst [vmem:[#allocation9 + $0x60] sm:$0xff] %v5275_v16  ;;  %v712_v18 = vmax.f32 %v5275_v16, %v5277_v17 }
 0x1e5   :  { %643 = vst [vmem:[#allocation9 + $0x68] sm:$0xff] %v5277_v17  ;;  %v234_v21 = vpop.trf.xlu1 }
 0x1e6   :  { %713 = vmax.xlane.f32.xlu2 %v712_v18  ;;  %4230 = vmatmul.msk.f32.gmra.mxu2 %vm9681_vm1, %v234_v21 }
 0x1e7   :  { %4262 = vmatmul.msk.f32.gmra.mxu3 %vm9681_vm1, %v234_v21 }
 0x1e9   :  { %v378_v22 = vpop.f32.mrf.mxu2  ;;  %v491_v23 = vpop.f32.mrf.mxu3 }
 0x1ea   :  { %v5285_v24 = vmul.f32 2.3784142, %v378_v22  ;;  %v5287_v25 = vmul.f32 2.3784142, %v491_v23 }
 0x1ec   :  { %644 = vst [vmem:[#allocation9 + $0x70] sm:$0xff] %v5285_v24  ;;  %v715_v26 = vmax.f32 %v5285_v24, %v5287_v25 }
 0x1ed   :  { %645 = vst [vmem:[#allocation9 + $0x78] sm:$0xff] %v5287_v25  ;;  %v235_v27 = vpop.trf.xlu1 }
 0x1ee   :  { %716 = vmax.xlane.f32.xlu2 %v715_v26  ;;  %4231 = vmatmul.msk.f32.gmra.mxu2 %vm9681_vm1, %v235_v27 }
 0x1ef   :  { %4263 = vmatmul.msk.f32.gmra.mxu3 %vm9681_vm1, %v235_v27 }
 0x1f1   :  { %v381_v28 = vpop.f32.mrf.mxu2  ;;  %v494_v29 = vpop.f32.mrf.mxu3 }
 0x1f2   :  { %v5295_v30 = vmul.f32 2.3784142, %v381_v28  ;;  %v5297_v31 = vmul.f32 2.3784142, %v494_v29 }
 0x1f4   :  { %646 = vst [vmem:[#allocation9 + $0x80] sm:$0xff] %v5295_v30  ;;  %v718_v32 = vmax.f32 %v5295_v30, %v5297_v31 }
 0x1f5   :  { %647 = vst [vmem:[#allocation9 + $0x88] sm:$0xff] %v5297_v31  ;;  %v236_v33 = vpop.trf.xlu1 }
 0x1f6   :  { %719 = vmax.xlane.f32.xlu2 %v718_v32  ;;  %4232 = vmatmul.msk.f32.gmra.mxu2 %vm9681_vm1, %v236_v33 }
 0x1f7   :  { %4264 = vmatmul.msk.f32.gmra.mxu3 %vm9681_vm1, %v236_v33 }
 0x1f9   :  { %v384_v34 = vpop.f32.mrf.mxu2  ;;  %v497_v35 = vpop.f32.mrf.mxu3 }
 0x1fa   :  { %v5305_v36 = vmul.f32 2.3784142, %v384_v34  ;;  %v5307_v37 = vmul.f32 2.3784142, %v497_v35 }
 0x1fc   :  { %648 = vst [vmem:[#allocation9 + $0x90] sm:$0xff] %v5305_v36  ;;  %v721_v38 = vmax.f32 %v5305_v36, %v5307_v37 }
 0x1fd   :  { %649 = vst [vmem:[#allocation9 + $0x98] sm:$0xff] %v5307_v37  ;;  %v237_v39 = vpop.trf.xlu1 }
 0x1fe   :  { %722 = vmax.xlane.f32.xlu2 %v721_v38  ;;  %4233 = vmatmul.msk.f32.gmra.mxu2 %vm9681_vm1, %v237_v39 }
 0x1ff   :  { %4265 = vmatmul.msk.f32.gmra.mxu3 %vm9681_vm1, %v237_v39 }
 0x201   :  { %v387_v40 = vpop.f32.mrf.mxu2  ;;  %v500_v41 = vpop.f32.mrf.mxu3 }
 0x202   :  { %v5315_v42 = vmul.f32 2.3784142, %v387_v40  ;;  %v5317_v43 = vmul.f32 2.3784142, %v500_v41 }
 0x204   :  { %650 = vst [vmem:[#allocation9 + $0xa0] sm:$0xff] %v5315_v42  ;;  %v724_v44 = vmax.f32 %v5315_v42, %v5317_v43 }
 0x205   :  { %651 = vst [vmem:[#allocation9 + $0xa8] sm:$0xff] %v5317_v43  ;;  %v238_v47 = vpop.trf.xlu1 }
 0x206   :  { %725 = vmax.xlane.f32.xlu2 %v724_v44  ;;  %4234 = vmatmul.msk.f32.gmra.mxu2 %vm9681_vm1, %v238_v47 }
 0x207   :  { %4266 = vmatmul.msk.f32.gmra.mxu3 %vm9681_vm1, %v238_v47 }
 0x209   :  { %v390_v48 = vpop.f32.mrf.mxu2  ;;  %v503_v49 = vpop.f32.mrf.mxu3 }
 0x20a   :  { %v5325_v50 = vmul.f32 2.3784142, %v390_v48  ;;  %v5327_v51 = vmul.f32 2.3784142, %v503_v49 }
 0x20c   :  { %652 = vst [vmem:[#allocation9 + $0xb0] sm:$0xff] %v5325_v50  ;;  %v727_v52 = vmax.f32 %v5325_v50, %v5327_v51 }
 0x20d   :  { %653 = vst [vmem:[#allocation9 + $0xb8] sm:$0xff] %v5327_v51  ;;  %v239_v53 = vpop.trf.xlu1 }
 0x20e   :  { %728 = vmax.xlane.f32.xlu2 %v727_v52  ;;  %4235 = vmatmul.msk.f32.gmra.mxu2 %vm9681_vm1, %v239_v53 }
 0x20f   :  { %4267 = vmatmul.msk.f32.gmra.mxu3 %vm9681_vm1, %v239_v53 }
 0x211   :  { %v393_v54 = vpop.f32.mrf.mxu2  ;;  %v506_v55 = vpop.f32.mrf.mxu3 }
 0x212   :  { %v5335_v56 = vmul.f32 2.3784142, %v393_v54  ;;  %v5337_v57 = vmul.f32 2.3784142, %v506_v55 }
 0x214   :  { %654 = vst [vmem:[#allocation9 + $0xc0] sm:$0xff] %v5335_v56  ;;  %v730_v58 = vmax.f32 %v5335_v56, %v5337_v57 }
 0x215   :  { %655 = vst [vmem:[#allocation9 + $0xc8] sm:$0xff] %v5337_v57  ;;  %v240_v59 = vpop.trf.xlu1 }
 0x216   :  { %731 = vmax.xlane.f32.xlu2 %v730_v58  ;;  %4236 = vmatmul.msk.f32.gmra.mxu2 %vm9681_vm1, %v240_v59 }
 0x217   :  { %4268 = vmatmul.msk.f32.gmra.mxu3 %vm9681_vm1, %v240_v59 }
 0x219   :  { %v396_v60 = vpop.f32.mrf.mxu2  ;;  %v509_v61 = vpop.f32.mrf.mxu3 }
 0x21a   :  { %v5345_v0 = vmul.f32 2.3784142, %v396_v60  ;;  %v5347_v1 = vmul.f32 2.3784142, %v509_v61 }
 0x21c   :  { %656 = vst [vmem:[#allocation9 + $0xd0] sm:$0xff] %v5345_v0  ;;  %v733_v2 = vmax.f32 %v5345_v0, %v5347_v1 }
 0x21d   :  { %657 = vst [vmem:[#allocation9 + $0xd8] sm:$0xff] %v5347_v1  ;;  %v241_v3 = vpop.trf.xlu1 }
 0x21e   :  { %734 = vmax.xlane.f32.xlu0 %v733_v2  ;;  %4237 = vmatmul.msk.f32.gmra.mxu2 %vm9681_vm1, %v241_v3 }
 0x21f   :  { %4269 = vmatmul.msk.f32.gmra.mxu3 %vm9681_vm1, %v241_v3 }
 0x221   :  { %v399_v6 = vpop.f32.mrf.mxu2  ;;  %v512_v7 = vpop.f32.mrf.mxu3 }
 0x222   :  { %v5355_v8 = vmul.f32 2.3784142, %v399_v6  ;;  %v5357_v9 = vmul.f32 2.3784142, %v512_v7 }
 0x224   :  { %658 = vst [vmem:[#allocation9 + $0xe0] sm:$0xff] %v5355_v8  ;;  %v736_v13 = vmax.f32 %v5355_v8, %v5357_v9 }
 0x225   :  { %659 = vst [vmem:[#allocation9 + $0xe8] sm:$0xff] %v5357_v9  ;;  %v242_v14 = vpop.trf.xlu1 }
 0x226   :  { %695 = vmax.xlane.f32.xlu0 %v694_v12  ;;  %737 = vmax.xlane.f32.xlu2 %v736_v13 }
 0x227   :  { %4238 = vmatmul.msk.f32.gmra.mxu2 %vm9681_vm1, %v242_v14  ;;  %4270 = vmatmul.msk.f32.gmra.mxu3 %vm9681_vm1, %v242_v14 }
 0x229   :  { %v402_v15 = vpop.f32.mrf.mxu2  ;;  %v515_v18 = vpop.f32.mrf.mxu3 }
 0x22a   :  { %v5367_v21 = vmul.f32 2.3784142, %v402_v15  ;;  %v5369_v22 = vmul.f32 2.3784142, %v515_v18 }
 0x22c   :  { %660 = vst [vmem:[#allocation9 + $0xf0] sm:$0xff] %v5367_v21  ;;  %v739_v45 = vmax.f32 %v5367_v21, %v5369_v22 }
 0x22d   :  { %661 = vst [vmem:[#allocation9 + $0xf8] sm:$0xff] %v5369_v22 }
 0x22e   :  { %740 = vmax.xlane.f32.xlu2 %v739_v45 }
 0x231   :  { %v405_v46 = vpop.f32.mrf.mxu2  ;;  %v518_v26 = vpop.f32.mrf.mxu3 }
 0x232   :  { %v598_v23 = vmul.f32 2.3784142, %v405_v46  ;;  %v599_v27 = vmul.f32 2.3784142, %v518_v26 }
 0x234   :  { %662 = vst [vmem:[#allocation9 + $0x100] sm:$0xff] %v598_v23  ;;  %v742_v55 = vmax.f32 %v598_v23, %v599_v27 }
 0x235   :  { %663 = vst [vmem:[#allocation9 + $0x108] sm:$0xff] %v599_v27 }
 0x239   :  { %v5375_v28 = vpop.xlane.xlu2 %701  ;;  %v408_v29 = vpop.f32.mrf.mxu2 }
 0x23a   :  { %v5377_v32 = vmul.f32 2.3784142, %v408_v29  ;;  %v521_v33 = vpop.f32.mrf.mxu3 }
 0x23b   :  { %v5379_v34 = vmul.f32 2.3784142, %v521_v33 }
 0x23c   :  { %664 = vst [vmem:[#allocation9 + $0x110] sm:$0xff] %v5377_v32 }
 0x23d   :  { %665 = vst [vmem:[#allocation9 + $0x118] sm:$0xff] %v5379_v34  ;;  %v745_v35 = vmax.f32 %v5377_v32, %v5379_v34 }
 0x23f   :  { %746 = vmax.xlane.f32.xlu0 %v745_v35 }
 0x241   :  { %v5385_v38 = vpop.xlane.xlu2 %704  ;;  %v411_v39 = vpop.f32.mrf.mxu2 }
 0x242   :  { %v602_v40 = vmul.f32 2.3784142, %v411_v39  ;;  %v524_v41 = vpop.f32.mrf.mxu3 }
 0x243   :  { %v603_v44 = vmul.f32 2.3784142, %v524_v41 }
 0x244   :  { %666 = vst [vmem:[#allocation9 + $0x120] sm:$0xff] %v602_v40 }
 0x245   :  { %667 = vst [vmem:[#allocation9 + $0x128] sm:$0xff] %v603_v44  ;;  %v748_v47 = vmax.f32 %v602_v40, %v603_v44 }
 0x247   :  { %749 = vmax.xlane.f32.xlu2 %v748_v47 }
 0x249   :  { %v5387_v48 = vpop.xlane.xlu2 %707  ;;  %v414_v49 = vpop.f32.mrf.mxu2 }
 0x24a   :  { %v604_v52 = vmul.f32 2.3784142, %v414_v49  ;;  %v527_v53 = vpop.f32.mrf.mxu3 }
 0x24b   :  { %v605_v54 = vmul.f32 2.3784142, %v527_v53 }
 0x24c   :  { %668 = vst [vmem:[#allocation9 + $0x130] sm:$0xff] %v604_v52 }
 0x24d   :  { %669 = vst [vmem:[#allocation9 + $0x138] sm:$0xff] %v605_v54  ;;  %v751_v58 = vmax.f32 %v604_v52, %v605_v54 }
 0x24f   :  { %743 = vmax.xlane.f32.xlu2 %v742_v55  ;;  %752 = vmax.xlane.f32.xlu1 %v751_v58 }
 0x251   :  { %v5389_v59 = vpop.xlane.xlu2 %710  ;;  %v417_v60 = vpop.f32.mrf.mxu2 }
 0x252   :  { %v606_v61 = vmul.f32 2.3784142, %v417_v60  ;;  %v530_v2 = vpop.f32.mrf.mxu3 }
 0x253   :  { %v607_v3 = vmul.f32 2.3784142, %v530_v2 }
 0x254   :  { %670 = vst [vmem:[#allocation9 + $0x140] sm:$0xff] %v606_v61 }
 0x255   :  { %671 = vst [vmem:[#allocation9 + $0x148] sm:$0xff] %v607_v3  ;;  %v754_v6 = vmax.f32 %v606_v61, %v607_v3 }
 0x257   :  { %755 = vmax.xlane.f32.xlu0 %v754_v6 }
 0x259   :  { %v5391_v7 = vpop.xlane.xlu2 %713  ;;  %v420_v12 = vpop.f32.mrf.mxu2 }
 0x25a   :  { %v608_v13 = vmul.f32 2.3784142, %v420_v12  ;;  %v533_v14 = vpop.f32.mrf.mxu3 }
 0x25b   :  { %v609_v15 = vmul.f32 2.3784142, %v533_v14 }
 0x25c   :  { %672 = vst [vmem:[#allocation9 + $0x150] sm:$0xff] %v608_v13 }
 0x25d   :  { %673 = vst [vmem:[#allocation9 + $0x158] sm:$0xff] %v609_v15  ;;  %v757_v18 = vmax.f32 %v608_v13, %v609_v15 }
 0x25f   :  { %758 = vmax.xlane.f32.xlu0 %v757_v18 }
 0x261   :  { %v717_v45 = vpop.xlane.xlu2 %716  ;;  %v423_v46 = vpop.f32.mrf.mxu2 }
 0x262   :  { %v5393_v23 = vmul.f32 2.3784142, %v423_v46  ;;  %v536_v26 = vpop.f32.mrf.mxu3  ;;  %v804_v27 = vsub.f32 %v5285_v24, %v717_v45  ;;  %v805_v33 = vsub.f32 %v5287_v25, %v717_v45 }
 0x263   :  { %v5396_v29 = vmul.f32 2.3784142, %v536_v26 }
 0x264   :  { %674 = vst [vmem:[#allocation9 + $0x160] sm:$0xff] %v5393_v23  ;;  %v882_v39 = vmul.f32 1.442695, %v804_v27  ;;  %v884_v40 = vmul.f32 1.442695, %v805_v33 }
 0x265   :  { %675 = vst [vmem:[#allocation9 + $0x168] sm:$0xff] %v5396_v29  ;;  %v760_v35 = vmax.f32 %v5393_v23, %v5396_v29 }
 0x266   :  { %4547 = vpow2.f32 %v882_v39 }
 0x267   :  { %761 = vmax.xlane.f32.xlu0 %v760_v35  ;;  %4549 = vpow2.f32 %v884_v40 }
 0x269   :  { %v720_v41 = vpop.xlane.xlu2 %719  ;;  %v426_v44 = vpop.f32.mrf.mxu2 }
 0x26a   :  { %v5403_v47 = vmul.f32 2.3784142, %v426_v44  ;;  %v539_v49 = vpop.f32.mrf.mxu3  ;;  %v806_v61 = vsub.f32 %v5295_v30, %v720_v41  ;;  %v807_v3 = vsub.f32 %v5297_v31, %v720_v41 }
 0x26b   :  { %v5405_v24 = vmul.f32 2.3784142, %v539_v49 }
 0x26c   :  { %676 = vst [vmem:[#allocation9 + $0x170] sm:$0xff] %v5403_v47  ;;  %v5411_v52 = vpop.eup %4547  ;;  %v886_v12 = vmul.f32 1.442695, %v806_v61  ;;  %v888_v13 = vmul.f32 1.442695, %v807_v3 }
 0x26d   :  { %677 = vst [vmem:[#allocation9 + $0x178] sm:$0xff] %v5405_v24  ;;  %v763_v25 = vmax.f32 %v5403_v47, %v5405_v24  ;;  %v5413_v55 = vpop.eup %4549 }
 0x26e   :  { %v1003_v6 = vadd.f32 %v5413_v55, %v5411_v52  ;;  %4551 = vpow2.f32 %v886_v12 }
 0x26f   :  { %764 = vmax.xlane.f32.xlu0 %v763_v25  ;;  %4553 = vpow2.f32 %v888_v13 }
 0x271   :  { %v723_v53 = vpop.xlane.xlu2 %722  ;;  %v429_v54 = vpop.f32.mrf.mxu2 }
 0x272   :  { %v5415_v58 = vmul.f32 2.3784142, %v429_v54  ;;  %v542_v60 = vpop.f32.mrf.mxu3  ;;  %v808_v40 = vsub.f32 %v5305_v36, %v723_v53  ;;  %v809_v44 = vsub.f32 %v5307_v37, %v723_v53 }
 0x273   :  { %v5418_v2 = vmul.f32 2.3784142, %v542_v60 }
 0x274   :  { %678 = vst [vmem:[#allocation9 + $0x180] sm:$0xff] %v5415_v58  ;;  %v5433_v46 = vpop.eup %4551  ;;  %v890_v25 = vmul.f32 1.442695, %v808_v40  ;;  %v892_v54 = vmul.f32 1.442695, %v809_v44 }
 0x275   :  { %679 = vst [vmem:[#allocation9 + $0x188] sm:$0xff] %v5418_v2  ;;  %v766_v31 = vmax.f32 %v5415_v58, %v5418_v2  ;;  %v5437_v33 = vpop.eup %4553 }
 0x276   :  { %v1006_v49 = vadd.f32 %v5437_v33, %v5433_v46  ;;  %4555 = vpow2.f32 %v890_v25 }
 0x277   :  { %1004 = vadd.xlane.f32.xlu0 %v1003_v6  ;;  %4557 = vpow2.f32 %v892_v54 }
 0x279   :  { %v726_v14 = vpop.xlane.xlu2 %725  ;;  %v432_v15 = vpop.f32.mrf.mxu2 }
 0x27a   :  { %v5425_v18 = vmul.f32 2.3784142, %v432_v15  ;;  %v545_v45 = vpop.f32.mrf.mxu3 }
 0x27b   :  { %v5427_v30 = vmul.f32 2.3784142, %v545_v45 }
 0x27c   :  { %680 = vst [vmem:[#allocation9 + $0x190] sm:$0xff] %v5425_v18 }
 0x27d   :  { %681 = vst [vmem:[#allocation9 + $0x198] sm:$0xff] %v5427_v30  ;;  %v769_v15 = vmax.f32 %v5425_v18, %v5427_v30 }
 0x27f   :  { %767 = vmax.xlane.f32.xlu0 %v766_v31 }
 0x281   :  { %v5435_v26 = vpop.xlane.xlu2 %728  ;;  %v435_v27 = vpop.f32.mrf.mxu2 }
 0x282   :  { %v5439_v35 = vmul.f32 2.3784142, %v435_v27  ;;  %v548_v39 = vpop.f32.mrf.mxu3 }
 0x283   :  { %v5442_v41 = vmul.f32 2.3784142, %v548_v39  ;;  %v810_v39 = vsub.f32 %v5315_v42, %v726_v14 }
 0x284   :  { %682 = vst [vmem:[#allocation9 + $0x1a0] sm:$0xff] %v5439_v35 }
 0x285   :  { %683 = vst [vmem:[#allocation9 + $0x1a8] sm:$0xff] %v5442_v41 }
 0x287   :  { %1007 = vadd.xlane.f32.xlu0 %v1006_v49  ;;  %v811_v49 = vsub.f32 %v5317_v43, %v726_v14 }
 0x289   :  { %v732_v60 = vpop.xlane.xlu2 %731  ;;  %v438_v61 = vpop.f32.mrf.mxu2  ;;  %v896_v42 = vmul.f32 1.442695, %v811_v49 }
 0x28a   :  { %v814_v3 = vsub.f32 %v5335_v56, %v732_v60  ;;  %v815_v36 = vsub.f32 %v5337_v57, %v732_v60  ;;  %v5451_v6 = vmul.f32 2.3784142, %v438_v61  ;;  %v551_v12 = vpop.f32.mrf.mxu3  ;;  %v5459_v56 = vpop.eup %4555  ;;  %v894_v61 = vmul.f32 1.442695, %v810_v39 }
 0x28b   :  { %v5453_v37 = vmul.f32 2.3784142, %v551_v12  ;;  %v5461_v45 = vpop.eup %4557 }
 0x28c   :  { %v902_v53 = vmul.f32 1.442695, %v814_v3  ;;  %v904_v13 = vmul.f32 1.442695, %v815_v36  ;;  %684 = vst [vmem:[#allocation9 + $0x1b0] sm:$0xff] %v5451_v6  ;;  %v1009_v54 = vadd.f32 %v5461_v45, %v5459_v56 }
 0x28d   :  { %685 = vst [vmem:[#allocation9 + $0x1b8] sm:$0xff] %v5453_v37 }
 0x28e   :  { %4559 = vpow2.f32 %v902_v53 }
 0x28f   :  { %4561 = vpow2.f32 %v904_v13  ;;  %770 = vmax.xlane.f32.xlu0 %v769_v15  ;;  %v772_v15 = vmax.f32 %v5439_v35, %v5442_v41 }
 0x290   :  { %4563 = vpow2.f32 %v894_v61 }
 0x291   :  { %v441_v57 = vpop.f32.mrf.mxu2  ;;  %4565 = vpow2.f32 %v896_v42 }
 0x292   :  { %v5463_v31 = vmul.f32 2.3784142, %v441_v57  ;;  %v554_v27 = vpop.f32.mrf.mxu3 }
 0x293   :  { %v5466_v40 = vmul.f32 2.3784142, %v554_v27 }
 0x294   :  { %v5468_v44 = vpop.eup %4559  ;;  %686 = vst [vmem:[#allocation9 + $0x1c0] sm:$0xff] %v5463_v31 }
 0x295   :  { %v5472_v25 = vpop.eup %4561  ;;  %687 = vst [vmem:[#allocation9 + $0x1c8] sm:$0xff] %v5466_v40 }
 0x296   :  { %v1018_v60 = vadd.f32 %v5472_v25, %v5468_v44  ;;  %v5491_v39 = vpop.eup %4563 }
 0x297   :  { %1010 = vadd.xlane.f32.xlu0 %v1009_v54  ;;  %v5493_v54 = vpop.eup %4565 }
 0x298   :  { %1019 = vadd.xlane.f32.xlu2 %v1018_v60  ;;  %v812_v60 = vsub.f32 %v5325_v50, %v5435_v26 }
 0x299   :  { %v738_v3 = vpop.xlane.xlu2 %737  ;;  %v444_v36 = vpop.f32.mrf.mxu2 }
 0x29a   :  { %v557_v12 = vpop.f32.mrf.mxu3  ;;  %v5479_v43 = vmul.f32 2.3784142, %v444_v36  ;;  %v818_v53 = vsub.f32 %v5355_v8, %v738_v3  ;;  %v819_v13 = vsub.f32 %v5357_v9, %v738_v3  ;;  %v813_v3 = vsub.f32 %v5327_v51, %v5435_v26 }
 0x29b   :  { %v5481_v14 = vmul.f32 2.3784142, %v557_v12  ;;  %v1012_v36 = vadd.f32 %v5493_v54, %v5491_v39  ;;  %v898_v50 = vmul.f32 1.442695, %v812_v60 }
 0x29c   :  { %688 = vst [vmem:[#allocation9 + $0x1d0] sm:$0xff] %v5479_v43  ;;  %v910_v27 = vmul.f32 1.442695, %v818_v53  ;;  %v912_v49 = vmul.f32 1.442695, %v819_v13  ;;  %v5509_v53 = vpop.xlane.xlu0 %698 }
 0x29d   :  { %v781_v57 = vmax.f32 %v5479_v43, %v5481_v14  ;;  %689 = vst [vmem:[#allocation9 + $0x1d8] sm:$0xff] %v5481_v14  ;;  %v900_v13 = vmul.f32 1.442695, %v813_v3  ;;  %v775_v3 = vmax.f32 %v5451_v6, %v5453_v37 }
 0x29e   :  { %4567 = vpow2.f32 %v910_v27 }
 0x29f   :  { %773 = vmax.xlane.f32.xlu0 %v772_v15  ;;  %4569 = vpow2.f32 %v912_v49 }
 0x2a0   :  { %782 = vmax.xlane.f32.xlu2 %v781_v57  ;;  %4571 = vpow2.f32 %v898_v50 }
 0x2a1   :  { %v447_v8 = vpop.f32.mrf.mxu2  ;;  %v741_v15 = vpop.xlane.xlu2 %740  ;;  %4573 = vpow2.f32 %v900_v13 }
 0x2a2   :  { %v560_v9 = vpop.f32.mrf.mxu3  ;;  %v5497_v61 = vmul.f32 2.3784142, %v447_v8  ;;  %v820_v8 = vsub.f32 %v5367_v21, %v741_v15  ;;  %v821_v60 = vsub.f32 %v5369_v22, %v741_v15  ;;  %v802_v22 = vsub.f32 %v5275_v16, %v5391_v7 }
 0x2a3   :  { %v5499_v42 = vmul.f32 2.3784142, %v560_v9  ;;  %v803_v15 = vsub.f32 %v5277_v17, %v5391_v7  ;;  %v800_v17 = vsub.f32 %v5265_v10, %v5389_v59  ;;  %v801_v7 = vsub.f32 %v5267_v11, %v5389_v59 }
 0x2a4   :  { %690 = vst [vmem:[#allocation9 + $0x1e0] sm:$0xff] %v5497_v61  ;;  %v5511_v51 = vpop.eup %4567  ;;  %v914_v50 = vmul.f32 1.442695, %v820_v8  ;;  %v916_v21 = vmul.f32 1.442695, %v821_v60  ;;  %v798_v11 = vsub.f32 %v5255_v4, %v5387_v48  ;;  %v799_v59 = vsub.f32 %v5257_v5, %v5387_v48 }
 0x2a5   :  { %v784_v12 = vmax.f32 %v5497_v61, %v5499_v42  ;;  %691 = vst [vmem:[#allocation9 + $0x1e8] sm:$0xff] %v5499_v42  ;;  %v5513_v27 = vpop.eup %4569  ;;  %v796_v4 = vsub.f32 %v5245_v62, %v5385_v38  ;;  %v797_v5 = vsub.f32 %v5247_v63, %v5385_v38 }
 0x2a6   :  { %v5527_v13 = vpop.eup %4571  ;;  %4575 = vpow2.f32 %v914_v50  ;;  %v778_v50 = vmax.f32 %v5463_v31, %v5466_v40 }
 0x2a7   :  { %1013 = vadd.xlane.f32.xlu0 %v1012_v36  ;;  %v1024_v36 = vadd.f32 %v5513_v27, %v5511_v51  ;;  %4577 = vpow2.f32 %v916_v21 }
 0x2a8   :  { %785 = vmax.xlane.f32.xlu2 %v784_v12  ;;  %v735_v12 = vpop.xlane.xlu0 %734 }
 0x2a9   :  { %v816_v62 = vsub.f32 %v5345_v0, %v735_v12 }
 0x2aa   :  { %v450_v26 = vpop.f32.mrf.mxu2  ;;  %v563_v57 = vpop.f32.mrf.mxu3 }
 0x2ab   :  { %v5515_v49 = vmul.f32 2.3784142, %v450_v26  ;;  %v5518_v9 = vmul.f32 2.3784142, %v563_v57  ;;  %v5529_v26 = vpop.eup %4573  ;;  %v906_v38 = vmul.f32 1.442695, %v816_v62 }
 0x2ac   :  { %v1015_v8 = vadd.f32 %v5529_v26, %v5527_v13  ;;  %v5539_v60 = vpop.eup %4575 }
 0x2ad   :  { %692 = vst [vmem:[#allocation9 + $0x1f0] sm:$0xff] %v5515_v49  ;;  %v787_v57 = vmax.f32 %v5515_v49, %v5518_v9  ;;  %v5543_v16 = vpop.eup %4577 }
 0x2ae   :  { %693 = vst [vmem:[#allocation9 + $0x1f8] sm:$0xff] %v5518_v9  ;;  %v1027_v21 = vadd.f32 %v5543_v16, %v5539_v60 }
 0x2af   :  { %776 = vmax.xlane.f32.xlu0 %v775_v3  ;;  %v878_v3 = vmul.f32 1.442695, %v802_v22  ;;  %v874_v22 = vmul.f32 1.442695, %v800_v17  ;;  %v872_v17 = vmul.f32 1.442695, %v799_v59 }
 0x2b0   :  { %1025 = vadd.xlane.f32.xlu2 %v1024_v36  ;;  %v880_v36 = vmul.f32 1.442695, %v803_v15  ;;  %v5541_v20 = vpop.xlane.xlu0 %695  ;;  %v876_v15 = vmul.f32 1.442695, %v801_v7 }
 0x2b1   :  { %4579 = vpow2.f32 %v878_v3 }
 0x2b2   :  { %4581 = vpow2.f32 %v880_v36  ;;  %v870_v36 = vmul.f32 1.442695, %v798_v11 }
 0x2b3   :  { %4583 = vpow2.f32 %v874_v22  ;;  %v866_v22 = vmul.f32 1.442695, %v796_v4 }
 0x2b4   :  { %4585 = vpow2.f32 %v876_v15  ;;  %v868_v15 = vmul.f32 1.442695, %v797_v5 }
 0x2b5   :  { %4587 = vpow2.f32 %v870_v36  ;;  %v817_v36 = vsub.f32 %v5347_v1, %v735_v12 }
 0x2b6   :  { %4589 = vpow2.f32 %v872_v17 }
 0x2b7   :  { %1016 = vadd.xlane.f32.xlu0 %v1015_v8  ;;  %4591 = vpow2.f32 %v866_v22  ;;  %v908_v17 = vmul.f32 1.442695, %v817_v36 }
 0x2b8   :  { %788 = vmax.xlane.f32.xlu2 %v787_v57  ;;  %v5553_v57 = vpop.eup %4579  ;;  %v5557_v10 = vpop.xlane.xlu0 %746  ;;  %4593 = vpow2.f32 %v868_v15 }
 0x2b9   :  { %v5555_v8 = vpop.eup %4581  ;;  %4595 = vpow2.f32 %v906_v38 }
 0x2ba   :  { %v1000_v3 = vadd.f32 %v5555_v8, %v5553_v57  ;;  %v5565_v7 = vpop.eup %4583  ;;  %4597 = vpow2.f32 %v908_v17 }
 0x2bf   :  { %779 = vmax.xlane.f32.xlu0 %v778_v50  ;;  %v5567_v50 = vpop.eup %4585 }
 0x2c0   :  { %1028 = vadd.xlane.f32.xlu2 %v1027_v21  ;;  %v997_v48 = vadd.f32 %v5567_v50, %v5565_v7  ;;  %v5577_v11 = vpop.eup %4587 }
 0x2c1   :  { %v5579_v59 = vpop.eup %4589 }
 0x2c2   :  { %v994_v63 = vadd.f32 %v5579_v59, %v5577_v11  ;;  %v5587_v4 = vpop.eup %4591 }
 0x2c3   :  { %9795 = vst [vmem:[#allocation15_spill] sm:$0xff] %v5587_v4  ;;  %v5589_v5 = vpop.eup %4593 }
 0x2c4   :  { %9796 = vst [vmem:[#allocation16_spill] sm:$0xff] %v5589_v5  ;;  %v991_v1 = vadd.f32 %v5589_v5, %v5587_v4  ;;  %v5595_v12 = vpop.eup %4595 }
 0x2c5   :  { %9797 = vst [vmem:[#allocation17_spill] sm:$0xff] %v5595_v12  ;;  %v5597_v62 = vpop.eup %4597 }
 0x2c6   :  { %9798 = vst [vmem:[#allocation18_spill] sm:$0xff] %v5597_v62  ;;  %v1021_v17 = vadd.f32 %v5597_v62, %v5595_v12 }
 0x2c7   :  { %1001 = vadd.xlane.f32.xlu0 %v1000_v3 }
 0x2ca   :  { %v5569_v21 = vpop.xlane.xlu0 %755 }
 0x2cf   :  { %998 = vadd.xlane.f32.xlu0 %v997_v48 }
 0x2d2   :  { %v5581_v3 = vpop.xlane.xlu0 %758 }
 0x2d7   :  { %995 = vadd.xlane.f32.xlu0 %v994_v63 }
 0x2da   :  { %v762_v48 = vpop.xlane.xlu0 %761 }
 0x2db   :  { %v834_v19 = vsub.f32 %v5393_v23, %v762_v48  ;;  %v835_v22 = vsub.f32 %v5396_v29, %v762_v48 }
 0x2dd   :  { %v942_v0 = vmul.f32 1.442695, %v834_v19  ;;  %v944_v15 = vmul.f32 1.442695, %v835_v22 }
 0x2df   :  { %4599 = vpow2.f32 %v942_v0  ;;  %992 = vadd.xlane.f32.xlu0 %v991_v1 }
 0x2e0   :  { %4601 = vpow2.f32 %v944_v15 }
 0x2e2   :  { %v765_v36 = vpop.xlane.xlu0 %764 }
 0x2e3   :  { %v836_v63 = vsub.f32 %v5403_v47, %v765_v36  ;;  %v837_v23 = vsub.f32 %v5405_v24, %v765_v36 }
 0x2e5   :  { %v5601_v38 = vpop.eup %4599  ;;  %v946_v29 = vmul.f32 1.442695, %v836_v63  ;;  %v948_v19 = vmul.f32 1.442695, %v837_v23 }
 0x2e6   :  { %9799 = vst [vmem:[#allocation19_spill] sm:$0xff] %v5601_v38  ;;  %v5605_v48 = vpop.eup %4601 }
 0x2e7   :  { %9800 = vst [vmem:[#allocation20_spill] sm:$0xff] %v5605_v48  ;;  %4603 = vpow2.f32 %v946_v29  ;;  %1022 = vadd.xlane.f32.xlu0 %v1021_v17  ;;  %v1048_v22 = vadd.f32 %v5605_v48, %v5601_v38 }
 0x2e8   :  { %4605 = vpow2.f32 %v948_v19 }
 0x2e9   :  { %1049 = vadd.xlane.f32.xlu2 %v1048_v22 }
 0x2ea   :  { %v1005_v0 = vpop.xlane.xlu0 %1004 }
 0x2eb   :  { %4607 = vrcp.f32 %v1005_v0  ;;  %v1194_v38 = vand.u32 2147483648, %v1005_v0  ;;  %v1192_v62 = vand.u32 2147483647, %v1005_v0  ;;  %vm1188_vm3 = vweird.f32 %v1005_v0 }
 0x2ed   :  { %v5609_v47 = vpop.eup %4603  ;;  %v1195_v5 = vor.u32 1.1754944e-38, %v1194_v38  ;;  %vm1193_vm5 = vcmp.eq.f32.partialorder %v1192_v62, 8.507059e+37 }
 0x2ee   :  { %9801 = vst [vmem:[#allocation21_spill] sm:$0xff] %v5609_v47  ;;  %v5611_v24 = vpop.eup %4605 }
 0x2ef   :  { %9802 = vst [vmem:[#allocation22_spill] sm:$0xff] %v5611_v24  ;;  %v1051_v15 = vadd.f32 %v5611_v24, %v5609_v47  ;;  %v5617_v24 = vpop.xlane.xlu2 %749 }
 0x2f1   :  { %v4608_v1 = vpop.eup %4607  ;;  %1052 = vadd.xlane.f32.xlu2 %v1051_v15 }
 0x2f2   :  { %v1184_v36 = vmul.f32 %v4608_v1, %v1005_v0  ;;  %v768_v63 = vpop.xlane.xlu0 %767  ;;  %vm1189_vm2 = vweird.f32 %v4608_v1 }
 0x2f3   :  { %v838_v23 = vsub.f32 %v5415_v58, %v768_v63  ;;  %v839_v29 = vsub.f32 %v5418_v2, %v768_v63  ;;  %vm1190_vm4 = vmor %vm1188_vm3, %vm1189_vm2  ;;  %v5622_v58 = vld [vmem:[%s9651_s5 + $0x70] sm:$0xff]  ;;  %v5627_v2 = vld [vmem:[%s9651_s5 + $0x78] sm:$0xff] }
 0x2f4   :  { %v1185_v17 = vsub.f32 1.0, %v1184_v36  ;;  %9803 = vst [vmem:[#allocation23_spill] sm:$0xff] %v5622_v58  ;;  %vm9683_vm6 = vcmp.ge.f32.partialorder %v5622_v58, 0.1  ;;  %vm9682_vm7 = vcmp.ge.f32.partialorder %v5627_v2, 0.1 }
 0x2f5   :  { %v950_v19 = vmul.f32 1.442695, %v838_v23  ;;  %v952_v22 = vmul.f32 1.442695, %v839_v29  ;;  %9804 = vst [vmem:[#allocation24_spill] sm:$0xff] %v5627_v2 }
 0x2f6   :  { %v1186_v48 = vmul.f32 %v4608_v1, %v1185_v17 }
 0x2f7   :  { %4609 = vpow2.f32 %v950_v19  ;;  %v5649_v29 = vpop.xlane.xlu2 %743 }
 0x2f8   :  { %4611 = vpow2.f32 %v952_v22  ;;  %v1187_v12 = vadd.f32 %v4608_v1, %v1186_v48 }
 0x2fa   :  { %v1008_v15 = vpop.xlane.xlu0 %1007  ;;  %v1191_v47 = vsel %vm1190_vm4, %v4608_v1, %v1187_v12 }
 0x2fb   :  { %4613 = vrcp.f32 %v1008_v15  ;;  %v1196_v0 = vsel %vm1193_vm5, %v1195_v5, %v1191_v47  ;;  %vm1203_vm9 = vweird.f32 %v1008_v15 }
 0x2fc   :  { %v1572_v36 = vmul.f32 %v5411_v52, %v1196_v0  ;;  %v1573_v12 = vmul.f32 %v5413_v55, %v1196_v0 }
 0x2fd   :  { %v5629_v48 = vpop.eup %4609 }
 0x2fe   :  { %9805 = vst [vmem:[#allocation25_spill] sm:$0xff] %v5629_v48  ;;  %v5633_v38 = vpop.eup %4611  ;;  %v5639_v1 = vmul.f32 1.1111112, %v1572_v36  ;;  %v5641_v63 = vmul.f32 1.1111112, %v1573_v12 }
 0x2ff   :  { %9806 = vst [vmem:[#allocation26_spill] sm:$0xff] %v5633_v38  ;;  %v1054_v62 = vadd.f32 %v5633_v38, %v5629_v48  ;;  %v1207_v48 = vand.u32 2147483647, %v1008_v15 }
 0x300   :  { %1636 = vst [vmem:[#allocation6 + $0x70] sm:$0xff] %v1572_v36  ;;  %v1892_v52 = vsel %vm9683_vm6, %v5639_v1, 0.0  ;;  %v1893_v55 = vsel %vm9682_vm7, %v5641_v63, 0.0 }
 0x301   :  { %9807 = vst [vmem:[#allocation27_spill] sm:$0xff] %v5639_v1  ;;  %v4614_v5 = vpop.eup %4613  ;;  %1055 = vadd.xlane.f32.xlu2 %v1054_v62  ;;  %v1209_v62 = vand.u32 2147483648, %v1008_v15  ;;  %vm1208_vm11 = vcmp.eq.f32.partialorder %v1207_v48, 8.507059e+37  ;;  %v5677_v48 = vld [vmem:[%s9651_s5 + $0x88] sm:$0xff] }
 0x302   :  { %9808 = vst [vmem:[#allocation28_spill] sm:$0xff] %v5641_v63  ;;  %v1199_v47 = vmul.f32 %v4614_v5, %v1008_v15  ;;  %v771_v23 = vpop.xlane.xlu0 %770  ;;  %vm1204_vm8 = vweird.f32 %v4614_v5  ;;  %vm9684_vm13 = vcmp.ge.f32.partialorder %v5677_v48, 0.1 }
 0x303   :  { %1637 = vst [vmem:[#allocation6 + $0x78] sm:$0xff] %v1573_v12  ;;  %v840_v17 = vsub.f32 %v5425_v18, %v771_v23  ;;  %v841_v19 = vsub.f32 %v5427_v30, %v771_v23  ;;  %vm1205_vm10 = vmor %vm1203_vm9, %vm1204_vm8  ;;  %v1210_v30 = vor.u32 1.1754944e-38, %v1209_v62  ;;  %v5663_v23 = vld [vmem:[%s9651_s5 + $0x80] sm:$0xff] }
 0x304   :  { %1956 = vst [vmem:[#allocation7 + $0x70] sm:$0xff] %v1892_v52  ;;  %v1200_v22 = vsub.f32 1.0, %v1199_v47  ;;  %vm9690_vm12 = vcmp.ge.f32.partialorder %v5663_v23, 0.1 }
 0x305   :  { %1957 = vst [vmem:[#allocation7 + $0x78] sm:$0xff] %v1893_v55  ;;  %v954_v0 = vmul.f32 1.442695, %v840_v17  ;;  %v956_v36 = vmul.f32 1.442695, %v841_v19  ;;  %v4931_v55 = vld [vmem:[#allocation9 + $0x10] sm:$0xff] }
 0x306   :  { %v1201_v12 = vmul.f32 %v4614_v5, %v1200_v22  ;;  %v792_v47 = vsub.f32 %v4931_v55, %v5509_v53  ;;  %9809 = vst [vmem:[#allocation29_spill] sm:$0xff] %v5663_v23  ;;  %v4934_v23 = vld [vmem:[#allocation9 + $0x28] sm:$0xff] }
 0x307   :  { %4615 = vpow2.f32 %v954_v0  ;;  %v4932_v0 = vld [vmem:[#allocation9 + $0x18] sm:$0xff] }
 0x308   :  { %4617 = vpow2.f32 %v956_v36  ;;  %v1202_v38 = vadd.f32 %v4614_v5, %v1201_v12  ;;  %v793_v36 = vsub.f32 %v4932_v0, %v5509_v53 }
 0x30a   :  { %v5653_v52 = vpop.xlane.xlu0 %1010  ;;  %v1206_v2 = vsel %vm1205_vm10, %v4614_v5, %v1202_v38  ;;  %v860_v0 = vmul.f32 1.442695, %v793_v36 }
 0x30b   :  { %4619 = vrcp.f32 %v5653_v52  ;;  %v5656_v18 = vpop.xlane.xlu2 %1019  ;;  %v1211_v17 = vsel %vm1208_vm11, %v1210_v30, %v1206_v2  ;;  %v858_v2 = vmul.f32 1.442695, %v792_v47  ;;  %v4933_v30 = vld [vmem:[#allocation9 + $0x20] sm:$0xff]  ;;  %vm1218_vm15 = vweird.f32 %v5653_v52 }
 0x30c   :  { %4621 = vrcp.f32 %v5656_v18  ;;  %v1574_v5 = vmul.f32 %v5433_v46, %v1211_v17  ;;  %v1575_v19 = vmul.f32 %v5437_v33, %v1211_v17  ;;  %v794_v55 = vsub.f32 %v4933_v30, %v5375_v28 }
 0x30d   :  { %v5665_v15 = vpop.eup %4615  ;;  %4623 = vpow2.f32 %v858_v2  ;;  %v1222_v2 = vand.u32 2147483647, %v5653_v52  ;;  %vm1263_vm4 = vweird.f32 %v5656_v18 }
 0x30e   :  { %9810 = vst [vmem:[#allocation30_spill] sm:$0xff] %v5665_v15  ;;  %v5667_v38 = vpop.eup %4617  ;;  %v5680_v12 = vmul.f32 1.1111112, %v1574_v5  ;;  %v5684_v33 = vmul.f32 1.1111112, %v1575_v19 }
 0x30f   :  { %9811 = vst [vmem:[#allocation31_spill] sm:$0xff] %v5667_v38  ;;  %v1057_v22 = vadd.f32 %v5667_v38, %v5665_v15  ;;  %v862_v4 = vmul.f32 1.442695, %v794_v55  ;;  %vm1223_vm5 = vcmp.eq.f32.partialorder %v1222_v2, 8.507059e+37 }
 0x310   :  { %1638 = vst [vmem:[#allocation6 + $0x80] sm:$0xff] %v1574_v5  ;;  %v1894_v53 = vsel %vm9690_vm12, %v5680_v12, 0.0  ;;  %v1895_v1 = vsel %vm9684_vm13, %v5684_v33, 0.0 }
 0x311   :  { %9812 = vst [vmem:[#allocation32_spill] sm:$0xff] %v5680_v12  ;;  %v5682_v46 = vpop.eup %4619  ;;  %1058 = vadd.xlane.f32.xlu2 %v1057_v22  ;;  %v795_v12 = vsub.f32 %v4934_v23, %v5375_v28  ;;  %v1267_v23 = vand.u32 2147483647, %v5656_v18 }
 0x312   :  { %1639 = vst [vmem:[#allocation6 + $0x88] sm:$0xff] %v1575_v19  ;;  %v5686_v62 = vpop.eup %4621  ;;  %v1214_v17 = vmul.f32 %v5682_v46, %v5653_v52  ;;  %v774_v38 = vpop.xlane.xlu0 %773  ;;  %vm1219_vm14 = vweird.f32 %v5682_v46 }
 0x313   :  { %v1259_v47 = vmul.f32 %v5686_v62, %v5656_v18  ;;  %v842_v5 = vsub.f32 %v5439_v35, %v774_v38  ;;  %v843_v19 = vsub.f32 %v5442_v41, %v774_v38  ;;  %v5699_v22 = vpop.xlane.xlu2 %782  ;;  %1958 = vst [vmem:[#allocation7 + $0x80] sm:$0xff] %v1894_v53  ;;  %v1224_v41 = vand.u32 2147483648, %v5653_v52  ;;  %vm5713_vm2 = vmor %vm1218_vm15, %vm1219_vm14 }
 0x314   :  { %v1215_v30 = vsub.f32 1.0, %v1214_v17  ;;  %1959 = vst [vmem:[#allocation7 + $0x88] sm:$0xff] %v1895_v1  ;;  %v1269_v17 = vand.u32 2147483648, %v5656_v18  ;;  %vm1264_vm3 = vweird.f32 %v5686_v62  ;;  %v864_v55 = vmul.f32 1.442695, %v795_v12 }
 0x315   :  { %v1260_v15 = vsub.f32 1.0, %v1259_v47  ;;  %v958_v63 = vmul.f32 1.442695, %v842_v5  ;;  %v960_v58 = vmul.f32 1.442695, %v843_v19  ;;  %v1225_v53 = vor.u32 1.1754944e-38, %v1224_v41  ;;  %vm1265_vm8 = vmor %vm1263_vm4, %vm1264_vm3 }
 0x316   :  { %v1216_v35 = vmul.f32 %v5682_v46, %v1215_v30  ;;  %v1270_v19 = vor.u32 1.1754944e-38, %v1269_v17  ;;  %vm1268_vm9 = vcmp.eq.f32.partialorder %v1267_v23, 8.507059e+37 }
 0x317   :  { %v1261_v38 = vmul.f32 %v5686_v62, %v1260_v15  ;;  %4625 = vpow2.f32 %v958_v63  ;;  %v5720_v15 = vpop.eup %4623 }
 0x318   :  { %v1217_v36 = vadd.f32 %v5682_v46, %v1216_v35  ;;  %4627 = vpow2.f32 %v960_v58  ;;  %9815 = vst [vmem:[#allocation33_spill] sm:$0xff] %v5720_v15  ;;  %v5727_v58 = vld [vmem:[%s9651_s5 + $0xc0] sm:$0xff] }
 0x319   :  { %4629 = vpow2.f32 %v860_v0  ;;  %v1262_v1 = vadd.f32 %v5686_v62, %v1261_v38  ;;  %vm1774_vm10 = vcmp.ge.f32.partialorder %v5727_v58, 0.1  ;;  %v36_v58 = vld [vmem:[%s9647_s1 + $0x20] sm:$0xff] }
 0x31a   :  { %4631 = vpow2.f32 %v862_v4  ;;  %v5722_v63 = vpop.xlane.xlu0 %1013  ;;  %v1221_v52 = vsel %vm5713_vm2, %v5682_v46, %v1217_v36  ;;  %v5741_v46 = vld [vmem:[%s9651_s5 + $0x90] sm:$0xff] }
 0x31b   :  { %4633 = vrcp.f32 %v5722_v63  ;;  %v786_v47 = vpop.xlane.xlu2 %785  ;;  %v1266_v18 = vsel %vm1265_vm8, %v5686_v62, %v1262_v1  ;;  %vm1768_vm11 = vcmp.ge.f32.partialorder %v5741_v46, 0.1  ;;  %v4935_v1 = vld [vmem:[#allocation9] sm:$0xff]  ;;  %vm1233_vm3 = vweird.f32 %v5722_v63  ;;  %v9854_v46 = vld [vmem:[#allocation28_spill] sm:$0xff] }
 0x31c   :  { %v850_v4 = vsub.f32 %v5497_v61, %v786_v47  ;;  %v851_v5 = vsub.f32 %v5499_v42, %v786_v47  ;;  %v5750_v61 = vld [vmem:[%s9651_s5 + $0xc8] sm:$0xff]  ;;  %v1226_v42 = vsel %vm1223_vm5, %v1225_v53, %v1221_v52  ;;  %v1271_v41 = vsel %vm1268_vm9, %v1270_v19, %v1266_v18  ;;  %v5777_v53 = vld [vmem:[%s9651_s5 + $0x98] sm:$0xff] }
 0x31d   :  { %v5743_v12 = vpop.eup %4625  ;;  %v1576_v38 = vmul.f32 %v5459_v56, %v1226_v42  ;;  %v1582_v2 = vmul.f32 %v5468_v44, %v1271_v41  ;;  %v1583_v17 = vmul.f32 %v5472_v25, %v1271_v41  ;;  %v790_v23 = vsub.f32 %v4935_v1, %v5541_v20 }
 0x31e   :  { %v5752_v0 = vpop.eup %4627  ;;  %v974_v30 = vmul.f32 1.442695, %v850_v4  ;;  %v976_v35 = vmul.f32 1.442695, %v851_v5  ;;  %vm1775_vm14 = vcmp.ge.f32.partialorder %v5750_v61, 0.1  ;;  %v1577_v19 = vmul.f32 %v5461_v45, %v1226_v42 }
 0x31f   :  { %v5755_v36 = vpop.eup %4629  ;;  %v1060_v62 = vadd.f32 %v5752_v0, %v5743_v12  ;;  %1640 = vst [vmem:[#allocation6 + $0x90] sm:$0xff] %v1576_v38  ;;  %v5766_v56 = vmul.f32 1.1111112, %v1576_v38  ;;  %v5770_v44 = vmul.f32 1.1111112, %v1582_v2  ;;  %v824_v45 = vsub.f32 %v5377_v32, %v5557_v10 }
 0x320   :  { %9816 = vst [vmem:[#allocation34_spill] sm:$0xff] %v5755_v36  ;;  %v5762_v28 = vpop.eup %4631  ;;  %4635 = vpow2.f32 %v974_v30  ;;  %v5772_v25 = vmul.f32 1.1111112, %v1583_v17  ;;  %v854_v38 = vmul.f32 1.442695, %v790_v23  ;;  %v825_v1 = vsub.f32 %v5379_v34, %v5557_v10 }
 0x321   :  { %v5768_v52 = vpop.eup %4633  ;;  %4637 = vpow2.f32 %v976_v35  ;;  %1061 = vadd.xlane.f32.xlu2 %v1060_v62  ;;  %1646 = vst [vmem:[#allocation6 + $0xc0] sm:$0xff] %v1582_v2  ;;  %v1896_v5 = vsel %vm1768_vm11, %v5766_v56, 0.0  ;;  %vm1769_vm15 = vcmp.ge.f32.partialorder %v5777_v53, 0.1  ;;  %v1239_v32 = vand.u32 2147483648, %v5722_v63 }
 0x322   :  { %4639 = vpow2.f32 %v864_v55  ;;  %v1229_v47 = vmul.f32 %v5768_v52, %v5722_v63  ;;  %v777_v4 = vpop.xlane.xlu0 %776  ;;  %1647 = vst [vmem:[#allocation6 + $0xc8] sm:$0xff] %v1583_v17  ;;  %v1902_v55 = vsel %vm1774_vm10, %v5770_v44, 0.0  ;;  %v1903_v41 = vsel %vm1775_vm14, %v5772_v25, 0.0 }
 0x323   :  { %v844_v18 = vsub.f32 %v5451_v6, %v777_v4  ;;  %v845_v30 = vsub.f32 %v5453_v37, %v777_v4  ;;  %v5787_v35 = vpop.xlane.xlu2 %1025  ;;  %1960 = vst [vmem:[#allocation7 + $0x90] sm:$0xff] %v1896_v5  ;;  %v4936_v6 = vld [vmem:[#allocation9 + $0x8] sm:$0xff]  ;;  %vm1234_vm2 = vweird.f32 %v5768_v52 }
 0x324   :  { %v1230_v62 = vsub.f32 1.0, %v1229_v47  ;;  %4641 = vrcp.f32 %v5787_v35  ;;  %1966 = vst [vmem:[#allocation7 + $0xc0] sm:$0xff] %v1902_v55  ;;  %v791_v37 = vsub.f32 %v4936_v6, %v5541_v20  ;;  %v5806_v47 = vmul.f32 1.1111112, %v1577_v19  ;;  %vm5821_vm4 = vmor %vm1233_vm3, %vm1234_vm2 }
 0x325   :  { %v962_v42 = vmul.f32 1.442695, %v844_v18  ;;  %v964_v2 = vmul.f32 1.442695, %v845_v30  ;;  %1967 = vst [vmem:[#allocation7 + $0xc8] sm:$0xff] %v1903_v41  ;;  %vm1293_vm3 = vweird.f32 %v5787_v35 }
 0x326   :  { %v5800_v17 = vpop.eup %4635  ;;  %v1231_v23 = vmul.f32 %v5768_v52, %v1230_v62  ;;  %1641 = vst [vmem:[#allocation6 + $0x98] sm:$0xff] %v1577_v19  ;;  %v1237_v20 = vand.u32 2147483647, %v5722_v63  ;;  %v1897_v19 = vsel %vm1769_vm15, %v5806_v47, 0.0  ;;  %v856_v18 = vmul.f32 1.442695, %v791_v37 }
 0x327   :  { %v5808_v4 = vpop.eup %4637  ;;  %4643 = vpow2.f32 %v962_v42  ;;  %1961 = vst [vmem:[#allocation7 + $0x98] sm:$0xff] %v1897_v19  ;;  %v922_v55 = vmul.f32 1.442695, %v824_v45  ;;  %v5831_v62 = vadd.f32 %v5755_v36, %v5720_v15  ;;  %v1240_v37 = vor.u32 1.1754944e-38, %v1239_v32  ;;  %v5857_v36 = vld [vmem:[%s9651_s5 + $0xa8] sm:$0xff] }
 0x328   :  { %v5813_v5 = vpop.eup %4639  ;;  %v1232_v34 = vadd.f32 %v5768_v52, %v1231_v23  ;;  %4645 = vpow2.f32 %v964_v2  ;;  %v1072_v10 = vadd.f32 %v5808_v4, %v5800_v17  ;;  %v5846_v23 = vld [vmem:[%s9651_s5 + $0xa0] sm:$0xff]  ;;  %vm1238_vm5 = vcmp.eq.f32.partialorder %v1237_v20, 8.507059e+37 }
 0x329   :  { %9817 = vst [vmem:[#allocation35_spill] sm:$0xff] %v5813_v5  ;;  %v988_v45 = vadd.f32 %v5813_v5, %v5762_v28  ;;  %vm1770_vm9 = vcmp.ge.f32.partialorder %v5846_v23, 0.1  ;;  %vm1771_vm2 = vcmp.ge.f32.partialorder %v5857_v36, 0.1  ;;  %v9847_v36 = vld [vmem:[#allocation32_spill] sm:$0xff] }
 0x32a   :  { %v5825_v63 = vpop.eup %4641  ;;  %1073 = vadd.xlane.f32.xlu0 %v1072_v10  ;;  %v5827_v41 = vpop.xlane.xlu0 %1016  ;;  %v1236_v6 = vsel %vm5821_vm4, %v5768_v52, %v1232_v34  ;;  %v924_v10 = vmul.f32 1.442695, %v825_v1  ;;  %v848_v52 = vsub.f32 %v5479_v43, %v5699_v22  ;;  %v849_v34 = vsub.f32 %v5481_v14, %v5699_v22  ;;  %v5870_v22 = vld [vmem:[%s9651_s5 + $0xe0] sm:$0xff]  ;;  %v9852_v23 = vld [vmem:[#allocation23_spill] sm:$0xff] }
 0x32b   :  { %v1289_v42 = vmul.f32 %v5825_v63, %v5787_v35  ;;  %4647 = vrcp.f32 %v5827_v41  ;;  %v5839_v2 = vpop.xlane.xlu2 %788  ;;  %v1241_v30 = vsel %vm1238_vm5, %v1240_v37, %v1236_v6  ;;  %vm1294_vm8 = vweird.f32 %v5825_v63 }
 0x32c   :  { %4649 = vpow2.f32 %v854_v38  ;;  %v1299_v43 = vand.u32 2147483648, %v5787_v35  ;;  %v1578_v1 = vmul.f32 %v5491_v39, %v1241_v30  ;;  %v1579_v20 = vmul.f32 %v5493_v54, %v1241_v30  ;;  %v5883_v39 = vld [vmem:[%s9651_s5 + $0xe8] sm:$0xff]  ;;  %vm5891_vm4 = vmor %vm1293_vm3, %vm1294_vm8 }
 0x32d   :  { %v5850_v32 = vpop.eup %4643  ;;  %4651 = vpow2.f32 %v856_v18  ;;  %v1290_v19 = vsub.f32 1.0, %v1289_v42  ;;  %v970_v18 = vmul.f32 1.442695, %v848_v52  ;;  %v972_v37 = vmul.f32 1.442695, %v849_v34 }
 0x32e   :  { %9820 = vst [vmem:[#allocation36_spill] sm:$0xff] %v5850_v32  ;;  %v5859_v15 = vpop.eup %4645  ;;  %4653 = vpow2.f32 %v922_v55  ;;  %v1297_v55 = vand.u32 2147483647, %v5787_v35  ;;  %v5885_v54 = vmul.f32 1.1111112, %v1578_v1  ;;  %v1300_v34 = vor.u32 1.1754944e-38, %v1299_v43 }
 0x32f   :  { %9821 = vst [vmem:[#allocation37_spill] sm:$0xff] %v5859_v15  ;;  %v1291_v38 = vmul.f32 %v5825_v63, %v1290_v19  ;;  %v1063_v14 = vadd.f32 %v5859_v15, %v5850_v32  ;;  %4655 = vpow2.f32 %v924_v10  ;;  %vm1778_vm5 = vcmp.ge.f32.partialorder %v5870_v22, 0.1 }
 0x330   :  { %1642 = vst [vmem:[#allocation6 + $0xa0] sm:$0xff] %v1578_v1  ;;  %v5898_v30 = vmul.f32 1.1111112, %v1579_v20  ;;  %vm1298_vm8 = vcmp.eq.f32.partialorder %v1297_v55, 8.507059e+37  ;;  %vm1779_vm3 = vcmp.ge.f32.partialorder %v5883_v39, 0.1  ;;  %vm1248_vm1 = vweird.f32 %v5827_v41 }
 0x331   :  { %v5876_v6 = vpop.eup %4647  ;;  %v1292_v42 = vadd.f32 %v5825_v63, %v1291_v38  ;;  %1064 = vadd.xlane.f32.xlu2 %v1063_v14  ;;  %1643 = vst [vmem:[#allocation6 + $0xa8] sm:$0xff] %v1579_v20 }
 0x332   :  { %v5887_v10 = vpop.eup %4649  ;;  %v1244_v35 = vmul.f32 %v5876_v6, %v5827_v41  ;;  %989 = vadd.xlane.f32.xlu0 %v988_v45  ;;  %v780_v19 = vpop.xlane.xlu0 %779  ;;  %v1898_v45 = vsel %vm1770_vm9, %v5885_v54, 0.0 }
 0x333   :  { %9822 = vst [vmem:[#allocation38_spill] sm:$0xff] %v5887_v10  ;;  %v5900_v38 = vpop.eup %4651  ;;  %v846_v14 = vsub.f32 %v5463_v31, %v780_v19  ;;  %v847_v1 = vsub.f32 %v5466_v40, %v780_v19  ;;  %v5904_v15 = vpop.xlane.xlu2 %1028  ;;  %v1296_v43 = vsel %vm5891_vm4, %v5825_v63, %v1292_v42  ;;  %v1254_v31 = vand.u32 2147483648, %v5827_v41 }
 0x334   :  { %9825 = vst [vmem:[#allocation39_spill] sm:$0xff] %v5900_v38  ;;  %v5912_v32 = vpop.eup %4653  ;;  %v1245_v20 = vsub.f32 1.0, %v1244_v35  ;;  %4657 = vrcp.f32 %v5904_v15  ;;  %v1301_v5 = vsel %vm1298_vm8, %v1300_v34, %v1296_v43  ;;  %vm1249_vm4 = vweird.f32 %v5876_v6 }
 0x335   :  { %9826 = vst [vmem:[#allocation40_spill] sm:$0xff] %v5912_v32  ;;  %v966_v40 = vmul.f32 1.442695, %v846_v14  ;;  %v968_v19 = vmul.f32 1.442695, %v847_v1  ;;  %v5917_v52 = vpop.eup %4655  ;;  %v1586_v42 = vmul.f32 %v5511_v51, %v1301_v5  ;;  %v1587_v55 = vmul.f32 %v5513_v27, %v1301_v5  ;;  %vm5933_vm8 = vmor %vm1248_vm1, %vm1249_vm4 }
 0x336   :  { %1962 = vst [vmem:[#allocation7 + $0xa0] sm:$0xff] %v1898_v45  ;;  %v1246_v63 = vmul.f32 %v5876_v6, %v1245_v20  ;;  %v1252_v35 = vand.u32 2147483647, %v5827_v41  ;;  %v1899_v14 = vsel %vm1771_vm2, %v5898_v30, 0.0  ;;  %v1255_v5 = vor.u32 1.1754944e-38, %v1254_v31 }
 0x337   :  { %9827 = vst [vmem:[#allocation41_spill] sm:$0xff] %v5917_v52  ;;  %4659 = vpow2.f32 %v966_v40  ;;  %v5929_v1 = vmul.f32 1.1111112, %v1586_v42  ;;  %v5931_v43 = vmul.f32 1.1111112, %v1587_v55  ;;  %v5962_v40 = vld [vmem:[%s9651_s5 + $0xb8] sm:$0xff]  ;;  %vm1308_vm7 = vweird.f32 %v5904_v15 }
 0x338   :  { %v1247_v34 = vadd.f32 %v5876_v6, %v1246_v63  ;;  %4661 = vpow2.f32 %v968_v19  ;;  %1650 = vst [vmem:[#allocation6 + $0xe0] sm:$0xff] %v1586_v42  ;;  %vm1253_vm1 = vcmp.eq.f32.partialorder %v1252_v35, 8.507059e+37  ;;  %v852_v42 = vsub.f32 %v5515_v49, %v5839_v2 }
 0x339   :  { %4663 = vpow2.f32 %v970_v18  ;;  %1651 = vst [vmem:[#allocation6 + $0xe8] sm:$0xff] %v1587_v55  ;;  %v1906_v45 = vsel %vm1778_vm5, %v5929_v1, 0.0  ;;  %v1907_v18 = vsel %vm1779_vm3, %v5931_v43, 0.0  ;;  %v1314_v51 = vand.u32 2147483648, %v5904_v15 }
 0x33a   :  { %v5937_v27 = vpop.eup %4657  ;;  %986 = vadd.xlane.f32.xlu0 %v5831_v62  ;;  %v5940_v41 = vpop.xlane.xlu0 %1001  ;;  %v1251_v20 = vsel %vm5933_vm8, %v5876_v6, %v1247_v34  ;;  %1963 = vst [vmem:[#allocation7 + $0xa8] sm:$0xff] %v1899_v14  ;;  %v5957_v62 = vld [vmem:[%s9651_s5 + $0xb0] sm:$0xff]  ;;  %v35_v6 = vld [vmem:[%s9647_s1 + $0x18] sm:$0xff]  ;;  %v853_v34 = vsub.f32 %v5518_v9, %v5839_v2  ;;  %vm1773_vm8 = vcmp.ge.f32.partialorder %v5962_v40, 0.1  ;;  %v982_v2 = vadd.f32 %v5900_v38, %v5887_v10 }
 0x33b   :  { %v1304_v31 = vmul.f32 %v5937_v27, %v5904_v15  ;;  %4665 = vrcp.f32 %v5940_v41  ;;  %1970 = vst [vmem:[#allocation7 + $0xe0] sm:$0xff] %v1906_v45  ;;  %v1256_v19 = vsel %vm1253_vm1, %v1255_v5, %v1251_v20  ;;  %4198 = vmatmul.msk.f32.gmra.mxu0 %vm9701_vm0, %v35_v6  ;;  %4204 = vmatmul.msk.f32.gmra.mxu1 %vm9701_vm0, %v35_v6  ;;  %vm1772_vm4 = vcmp.ge.f32.partialorder %v5957_v62, 0.1  ;;  %v4938_v38 = vld [vmem:[#allocation9 + $0x158] sm:$0xff] }
 0x33c   :  { %4667 = vpow2.f32 %v972_v37  ;;  %1971 = vst [vmem:[#allocation7 + $0xe8] sm:$0xff] %v1907_v18  ;;  %v1580_v35 = vmul.f32 %v5527_v13, %v1256_v19  ;;  %v1581_v37 = vmul.f32 %v5529_v26, %v1256_v19  ;;  %vm1309_vm1 = vweird.f32 %v5937_v27 }
 0x33d   :  { %v5967_v63 = vpop.eup %4659  ;;  %v1305_v55 = vsub.f32 1.0, %v1304_v31  ;;  %v1312_v9 = vand.u32 2147483647, %v5904_v15  ;;  %v978_v20 = vmul.f32 1.442695, %v852_v42  ;;  %vm1310_vm6 = vmor %vm1308_vm7, %vm1309_vm1  ;;  %v1033_v15 = vadd.f32 %v5917_v52, %v5912_v32  ;;  %v6178_v32 = vld [vmem:[%s9651_s5 + $0x40] sm:$0xff] }
 0x33e   :  { %9830 = vst [vmem:[#allocation42_spill] sm:$0xff] %v5967_v63  ;;  %v5975_v14 = vpop.eup %4661  ;;  %v5987_v26 = vmul.f32 1.1111112, %v1580_v35  ;;  %v5989_v45 = vmul.f32 1.1111112, %v1581_v37  ;;  %vm1173_vm1 = vweird.f32 %v5940_v41 }
 0x33f   :  { %9831 = vst [vmem:[#allocation43_spill] sm:$0xff] %v5975_v14  ;;  %v5982_v49 = vpop.eup %4663  ;;  %v1306_v5 = vmul.f32 %v5937_v27, %v1305_v55  ;;  %v1066_v13 = vadd.f32 %v5975_v14, %v5967_v63  ;;  %vm1313_vm13 = vcmp.eq.f32.partialorder %v1312_v9, 8.507059e+37 }
 0x340   :  { %1644 = vst [vmem:[#allocation6 + $0xb0] sm:$0xff] %v1580_v35  ;;  %v1900_v6 = vsel %vm1772_vm4, %v5987_v26, 0.0  ;;  %v1901_v19 = vsel %vm1773_vm8, %v5989_v45, 0.0  ;;  %v980_v35 = vmul.f32 1.442695, %v853_v34  ;;  %v4937_v34 = vld [vmem:[#allocation9 + $0x150] sm:$0xff] }
 0x341   :  { %1645 = vst [vmem:[#allocation6 + $0xb8] sm:$0xff] %v1581_v37  ;;  %v5995_v18 = vpop.eup %4665  ;;  %v1307_v31 = vadd.f32 %v5937_v27, %v1306_v5  ;;  %1067 = vadd.xlane.f32.xlu2 %v1066_v13  ;;  %v1716_v5 = vld [vmem:[%s9651_s5 + $0xf0] sm:$0xff]  ;;  %v1315_v13 = vor.u32 1.1754944e-38, %v1314_v51  ;;  %v833_v51 = vsub.f32 %v4938_v38, %v5581_v3 }
 0x342   :  { %v6004_v55 = vpop.eup %4667  ;;  %v1169_v37 = vmul.f32 %v5995_v18, %v5940_v41  ;;  %983 = vadd.xlane.f32.xlu0 %v982_v2  ;;  %v6009_v42 = vpop.xlane.xlu0 %998  ;;  %1964 = vst [vmem:[#allocation7 + $0xb0] sm:$0xff] %v1900_v6  ;;  %v832_v2 = vsub.f32 %v4937_v34, %v5581_v3  ;;  %v1717_v6 = vld [vmem:[%s9651_s5 + $0xf8] sm:$0xff]  ;;  %vm1780_vm7 = vcmp.ge.f32.partialorder %v1716_v5, 0.1  ;;  %v4939_v34 = vld [vmem:[#allocation9 + $0x140] sm:$0xff] }
 0x343   :  { %4669 = vrcp.f32 %v6009_v42  ;;  %1965 = vst [vmem:[#allocation7 + $0xb8] sm:$0xff] %v1901_v19  ;;  %v1311_v63 = vsel %vm1310_vm6, %v5937_v27, %v1307_v31  ;;  %v1179_v27 = vand.u32 2147483648, %v5940_v41  ;;  %v1069_v31 = vadd.f32 %v6004_v55, %v5982_v49  ;;  %4199 = vmatmul.msk.f32.gmra.mxu0 %vm9701_vm0, %v36_v58  ;;  %4205 = vmatmul.msk.f32.gmra.mxu1 %vm9701_vm0, %v36_v58 }
 0x344   :  { %v1170_v14 = vsub.f32 1.0, %v1169_v37  ;;  %4671 = vpow2.f32 %v978_v20  ;;  %v1316_v10 = vsel %vm1313_vm13, %v1315_v13, %v1311_v63  ;;  %v1177_v37 = vand.u32 2147483647, %v5940_v41 }
 0x345   :  { %4673 = vpow2.f32 %v980_v35  ;;  %v1588_v52 = vmul.f32 %v5539_v60, %v1316_v10  ;;  %v1589_v9 = vmul.f32 %v5543_v16, %v1316_v10  ;;  %vm1781_vm6 = vcmp.ge.f32.partialorder %v1717_v6, 0.1 }
 0x346   :  { %v1171_v19 = vmul.f32 %v5995_v18, %v1170_v14  ;;  %vm1174_vm13 = vweird.f32 %v5995_v18  ;;  %v938_v60 = vmul.f32 1.442695, %v832_v2  ;;  %v940_v20 = vmul.f32 1.442695, %v833_v51 }
 0x347   :  { %1652 = vst [vmem:[#allocation6 + $0xf0] sm:$0xff] %v1588_v52  ;;  %v1844_v38 = vmul.f32 1.1111112, %v1588_v52  ;;  %v1845_v63 = vmul.f32 1.1111112, %v1589_v9  ;;  %v830_v2 = vsub.f32 %v4939_v34, %v5569_v21  ;;  %vm1175_vm12 = vmor %vm1173_vm1, %vm1174_vm13  ;;  %v1180_v41 = vor.u32 1.1754944e-38, %v1179_v27 }
 0x348   :  { %v1172_v3 = vadd.f32 %v5995_v18, %v1171_v19  ;;  %1653 = vst [vmem:[#allocation6 + $0xf8] sm:$0xff] %v1589_v9  ;;  %v4940_v19 = vld [vmem:[#allocation9 + $0x148] sm:$0xff]  ;;  %v1164_v22 = vand.u32 2147483648, %v6009_v42 }
 0x349   :  { %v6034_v14 = vpop.eup %4669  ;;  %1070 = vadd.xlane.f32.xlu2 %v1069_v31  ;;  %v1908_v10 = vsel %vm1780_vm7, %v1844_v38, 0.0  ;;  %4271 = vmatpush.xpose.msk.msrb.mxu0 %vm1780_vm7, %v1844_v38  ;;  %v1909_v35 = vsel %vm1781_vm6, %v1845_v63, 0.0  ;;  %vm1178_vm7 = vcmp.eq.f32.partialorder %v1177_v37, 8.507059e+37  ;;  %v831_v9 = vsub.f32 %v4940_v19, %v5569_v21  ;;  %v6055_v38 = vpop.xlane.xlu1 %752  ;;  %v6071_v27 = vld [vmem:[%s9651_s5 + $0x68] sm:$0xff] }
 0x34a   :  { %v1154_v16 = vmul.f32 %v6034_v14, %v6009_v42  ;;  %1034 = vadd.xlane.f32.xlu0 %v1033_v15  ;;  %v6042_v52 = vpop.xlane.xlu0 %995  ;;  %v6044_v13 = vpop.eup %4671  ;;  %1972 = vst [vmem:[#allocation7 + $0xf0] sm:$0xff] %v1908_v10  ;;  %4287 = vmatpush.xpose.msk.msrb.mxu1 %vm1781_vm6, %v1845_v63  ;;  %v1176_v51 = vsel %vm1175_vm12, %v5995_v18, %v1172_v3  ;;  %v6065_v18 = vld [vmem:[%s9651_s5 + $0x60] sm:$0xff]  ;;  %v934_v3 = vmul.f32 1.442695, %v830_v2  ;;  %v1162_v63 = vand.u32 2147483647, %v6009_v42 }
 0x34b   :  { %4675 = vrcp.f32 %v6042_v52  ;;  %v6051_v5 = vpop.eup %4673  ;;  %1973 = vst [vmem:[#allocation7 + $0xf8] sm:$0xff] %v1909_v35  ;;  %v1181_v31 = vsel %vm1178_vm7, %v1180_v41, %v1176_v51  ;;  %vm1159_vm12 = vweird.f32 %v6034_v14  ;;  %v936_v39 = vmul.f32 1.442695, %v831_v9 }
 0x34c   :  { %v1155_v15 = vsub.f32 1.0, %v1154_v16  ;;  %4677 = vpow2.f32 %v938_v60  ;;  %v1570_v37 = vmul.f32 %v5553_v57, %v1181_v31  ;;  %v1571_v21 = vmul.f32 %v5555_v8, %v1181_v31  ;;  %v4941_v16 = vld [vmem:[#allocation9 + $0x130] sm:$0xff] }
 0x34d   :  { %4679 = vpow2.f32 %v940_v20  ;;  %4272 = vmatpush.xpose.msk.msrb.mxu0 %vm1778_vm5, %v5929_v1  ;;  %v1075_v57 = vadd.f32 %v6051_v5, %v6044_v13  ;;  %v828_v10 = vsub.f32 %v4941_v16, %v6055_v38  ;;  %vm1762_vm5 = vcmp.ge.f32.partialorder %v6065_v18, 0.1  ;;  %v6119_v31 = vld [vmem:[%s9651_s5 + $0x50] sm:$0xff] }
 0x34e   :  { %v1156_v6 = vmul.f32 %v6034_v14, %v1155_v15  ;;  %4288 = vmatpush.xpose.msk.msrb.mxu1 %vm1779_vm3, %v5931_v43  ;;  %1634 = vst [vmem:[#allocation6 + $0x60] sm:$0xff] %v1570_v37  ;;  %v6082_v8 = vmul.f32 1.1111112, %v1570_v37  ;;  %v6084_v60 = vmul.f32 1.1111112, %v1571_v21  ;;  %vm1158_vm6 = vweird.f32 %v6009_v42  ;;  %v4942_v37 = vld [vmem:[#allocation9 + $0x138] sm:$0xff] }
 0x34f   :  { %1635 = vst [vmem:[#allocation6 + $0x68] sm:$0xff] %v1571_v21  ;;  %vm9694_vm3 = vcmp.ge.f32.partialorder %v6071_v27, 0.1  ;;  %vm6100_vm13 = vmor %vm1158_vm6, %vm1159_vm12  ;;  %vm1163_vm1 = vcmp.eq.f32.partialorder %v1162_v63, 8.507059e+37  ;;  %v1165_v41 = vor.u32 1.1754944e-38, %v1164_v22  ;;  %v829_v21 = vsub.f32 %v4942_v37, %v6055_v38 }
 0x350   :  { %v1157_v1 = vadd.f32 %v6034_v14, %v1156_v6  ;;  %v1890_v51 = vsel %vm1762_vm5, %v6082_v8, 0.0  ;;  %v1891_v19 = vsel %vm9694_vm3, %v6084_v60, 0.0  ;;  %v6124_v6 = vld [vmem:[%s9651_s5 + $0x58] sm:$0xff]  ;;  %v930_v63 = vmul.f32 1.442695, %v828_v10 }
 0x351   :  { %v6086_v20 = vpop.eup %4675  ;;  %1076 = vadd.xlane.f32.xlu2 %v1075_v57  ;;  %1954 = vst [vmem:[#allocation7 + $0x60] sm:$0xff] %v1890_v51  ;;  %v1149_v16 = vand.u32 2147483648, %v6042_v52  ;;  %vm9693_vm7 = vcmp.ge.f32.partialorder %v6119_v31, 0.1  ;;  %vm9692_vm12 = vcmp.ge.f32.partialorder %v6124_v6, 0.1 }
 0x352   :  { %v1139_v43 = vmul.f32 %v6086_v20, %v6042_v52  ;;  %v6094_v35 = vpop.xlane.xlu0 %992  ;;  %v6096_v34 = vpop.eup %4677  ;;  %v1161_v9 = vsel %vm6100_vm13, %v6034_v14, %v1157_v1  ;;  %1955 = vst [vmem:[#allocation7 + $0x68] sm:$0xff] %v1891_v19  ;;  %vm1144_vm6 = vweird.f32 %v6086_v20  ;;  %v932_v2 = vmul.f32 1.442695, %v829_v21  ;;  %v4944_v21 = vld [vmem:[#allocation9 + $0x128] sm:$0xff] }
 0x353   :  { %4681 = vrcp.f32 %v6094_v35  ;;  %v6105_v15 = vpop.eup %4679  ;;  %v1166_v22 = vsel %vm1163_vm1, %v1165_v41, %v1161_v9  ;;  %v1147_v41 = vand.u32 2147483647, %v6042_v52  ;;  %vm1143_vm13 = vweird.f32 %v6042_v52  ;;  %v4946_v52 = vld [vmem:[#allocation9 + $0x108] sm:$0xff] }
 0x354   :  { %v1140_v42 = vsub.f32 1.0, %v1139_v43  ;;  %4683 = vpow2.f32 %v934_v3  ;;  %v1568_v57 = vmul.f32 %v5565_v7, %v1166_v22  ;;  %v1569_v1 = vmul.f32 %v5567_v50, %v1166_v22  ;;  %v4943_v50 = vld [vmem:[#allocation9 + $0x120] sm:$0xff]  ;;  %vm6161_vm1 = vmor %vm1143_vm13, %vm1144_vm6 }
 0x355   :  { %4685 = vpow2.f32 %v936_v39  ;;  %v1045_v43 = vadd.f32 %v6105_v15, %v6096_v34  ;;  %v826_v39 = vsub.f32 %v4943_v50, %v5617_v24  ;;  %v827_v22 = vsub.f32 %v4944_v21, %v5617_v24 }
 0x356   :  { %v1141_v14 = vmul.f32 %v6086_v20, %v1140_v42  ;;  %1632 = vst [vmem:[#allocation6 + $0x50] sm:$0xff] %v1568_v57  ;;  %v6137_v3 = vmul.f32 1.1111112, %v1568_v57  ;;  %v6139_v10 = vmul.f32 1.1111112, %v1569_v1  ;;  %vm1148_vm6 = vcmp.eq.f32.partialorder %v1147_v41, 8.507059e+37 }
 0x357   :  { %1633 = vst [vmem:[#allocation6 + $0x58] sm:$0xff] %v1569_v1  ;;  %v1150_v1 = vor.u32 1.1754944e-38, %v1149_v16  ;;  %v926_v50 = vmul.f32 1.442695, %v826_v39  ;;  %v1134_v21 = vand.u32 2147483648, %v6094_v35 }
 0x358   :  { %v1142_v38 = vadd.f32 %v6086_v20, %v1141_v14  ;;  %v1888_v19 = vsel %vm9693_vm7, %v6137_v3, 0.0  ;;  %v1889_v9 = vsel %vm9692_vm12, %v6139_v10, 0.0  ;;  %v47_v14 = vld [vmem:[%s9648_s2 + $0x8] sm:$0xff]  ;;  %v928_v39 = vmul.f32 1.442695, %v827_v22 }
 0x359   :  { %v6141_v7 = vpop.eup %4681  ;;  %1046 = vadd.xlane.f32.xlu2 %v1045_v43  ;;  %1952 = vst [vmem:[#allocation7 + $0x50] sm:$0xff] %v1888_v19  ;;  %vm9698_vm12 = vcmp.ge.f32.partialorder %v6178_v32, 0.1  ;;  %v1135_v22 = vor.u32 1.1754944e-38, %v1134_v21  ;;  %v49_v21 = vld [vmem:[%s9648_s2 + $0x18] sm:$0xff] }
 0x35a   :  { %v1124_v42 = vmul.f32 %v6141_v7, %v6094_v35  ;;  %v6148_v51 = vpop.xlane.xlu0 %1022  ;;  %v6156_v37 = vpop.eup %4683  ;;  %1953 = vst [vmem:[#allocation7 + $0x58] sm:$0xff] %v1889_v9  ;;  %v1146_v24 = vsel %vm6161_vm1, %v6086_v20, %v1142_v38  ;;  %vm1129_vm13 = vweird.f32 %v6141_v7  ;;  %v1132_v20 = vand.u32 2147483647, %v6094_v35 }
 0x35b   :  { %9834 = vst [vmem:[#allocation44_spill] sm:$0xff] %v6156_v37  ;;  %4687 = vrcp.f32 %v6148_v51  ;;  %v6169_v57 = vpop.eup %4685  ;;  %v1151_v38 = vsel %vm1148_vm6, %v1150_v1, %v1146_v24  ;;  %vm1128_vm1 = vweird.f32 %v6094_v35 }
 0x35c   :  { %9837 = vst [vmem:[#allocation45_spill] sm:$0xff] %v6169_v57  ;;  %4689 = vpow2.f32 %v930_v63  ;;  %v1125_v43 = vsub.f32 1.0, %v1124_v42  ;;  %v6183_v63 = vld [vmem:[%s9651_s5 + $0x48] sm:$0xff]  ;;  %v1566_v41 = vmul.f32 %v5577_v11, %v1151_v38  ;;  %v1567_v42 = vmul.f32 %v5579_v59, %v1151_v38  ;;  %vm6196_vm3 = vmor %vm1128_vm1, %vm1129_vm13  ;;  %v4945_v38 = vld [vmem:[#allocation9 + $0x100] sm:$0xff] }
 0x35d   :  { %4691 = vpow2.f32 %v932_v2  ;;  %v1042_v2 = vadd.f32 %v6169_v57, %v6156_v37  ;;  %vm9697_vm7 = vcmp.ge.f32.partialorder %v6183_v63, 0.1  ;;  %vm1133_vm6 = vcmp.eq.f32.partialorder %v1132_v20, 8.507059e+37 }
 0x35e   :  { %v1126_v16 = vmul.f32 %v6141_v7, %v1125_v43  ;;  %59 = vperm.xlu0 %4544, %v47_v14   ;;  %1630 = vst [vmem:[#allocation6 + $0x40] sm:$0xff] %v1566_v41  ;;  %v6200_v14 = vmul.f32 1.1111112, %v1566_v41  ;;  %v6202_v11 = vmul.f32 1.1111112, %v1567_v42  ;;  %v6213_v43 = vld [vmem:[%s9651_s5 + $0x30] sm:$0xff]  ;;  %4693 = vpow2.f32 %v926_v50 }
 0x35f   :  { %1631 = vst [vmem:[#allocation6 + $0x48] sm:$0xff] %v1567_v42  ;;  %4695 = vpow2.f32 %v928_v39  ;;  %v9842_v50 = vld [vmem:[#allocation15_spill] sm:$0xff]  ;;  %v823_v57 = vsub.f32 %v4946_v52, %v5649_v29  ;;  %v1282_v37 = vand.u32 2147483647, %v6148_v51 }
 0x360   :  { %v1127_v19 = vadd.f32 %v6141_v7, %v1126_v16  ;;  %v1886_v16 = vsel %vm9698_vm12, %v6200_v14, 0.0 }
 0x361   :  { %v4688_v9 = vpop.eup %4687  ;;  %1043 = vadd.xlane.f32.xlu2 %v1042_v2  ;;  %v822_v2 = vsub.f32 %v4945_v38, %v5649_v29  ;;  %1950 = vst [vmem:[#allocation7 + $0x40] sm:$0xff] %v1886_v16  ;;  %v920_v52 = vmul.f32 1.442695, %v823_v57  ;;  %vm1283_vm12 = vcmp.eq.f32.partialorder %v1282_v37, 8.507059e+37 }
 0x362   :  { %v6204_v59 = vpop.eup %4689  ;;  %v1274_v35 = vmul.f32 %v4688_v9, %v6148_v51  ;;  %v1131_v1 = vsel %vm6196_vm3, %v6141_v7, %v1127_v19  ;;  %v1887_v7 = vsel %vm9697_vm7, %v6202_v11, 0.0  ;;  %v6231_v19 = vld [vmem:[%s9651_s5 + $0x38] sm:$0xff]  ;;  %vm1756_vm3 = vcmp.ge.f32.partialorder %v6213_v43, 0.1 }
 0x363   :  { %9840 = vst [vmem:[#allocation46_spill] sm:$0xff] %v6204_v59  ;;  %v6215_v24 = vpop.eup %4691  ;;  %v1136_v20 = vsel %vm1133_vm6, %v1135_v22, %v1131_v1  ;;  %v1284_v22 = vand.u32 2147483648, %v6148_v51  ;;  %vm1279_vm13 = vweird.f32 %v4688_v9  ;;  %v9843_v1 = vld [vmem:[#allocation16_spill] sm:$0xff]  ;;  %vm1757_vm1 = vcmp.ge.f32.partialorder %v6231_v19, 0.1 }
 0x364   :  { %9841 = vst [vmem:[#allocation47_spill] sm:$0xff] %v6215_v24  ;;  %v1275_v41 = vsub.f32 1.0, %v1274_v35  ;;  %v1564_v42 = vmul.f32 %v9842_v50, %v1136_v20  ;;  %v1565_v16 = vmul.f32 %v9843_v1, %v1136_v20  ;;  %v1039_v38 = vadd.f32 %v6215_v24, %v6204_v59  ;;  %v1713_v1 = vld [vmem:[%s9651_s5 + $0xd8] sm:$0xff] }
 0x365   :  { %1951 = vst [vmem:[#allocation7 + $0x48] sm:$0xff] %v1887_v7  ;;  %vm1278_vm6 = vweird.f32 %v6148_v51  ;;  %v918_v50 = vmul.f32 1.442695, %v822_v2  ;;  %v1285_v20 = vor.u32 1.1754944e-38, %v1284_v22  ;;  %v1712_v51 = vld [vmem:[%s9651_s5 + $0xd0] sm:$0xff] }
 0x366   :  { %v1276_v39 = vmul.f32 %v4688_v9, %v1275_v41  ;;  %69 = vperm.xlu0 %4544, %v49_v21   ;;  %1628 = vst [vmem:[#allocation6 + $0x30] sm:$0xff] %v1564_v42  ;;  %v6237_v35 = vmul.f32 1.1111112, %v1564_v42  ;;  %v6247_v41 = vmul.f32 1.1111112, %v1565_v16  ;;  %v6249_v21 = vpop.eup %4693  ;;  %vm1280_vm7 = vmor %vm1278_vm6, %vm1279_vm13 }
 0x367   :  { %1629 = vst [vmem:[#allocation6 + $0x38] sm:$0xff] %v1565_v16  ;;  %v6251_v42 = vpop.eup %4695  ;;  %v9844_v16 = vld [vmem:[#allocation17_spill] sm:$0xff]  ;;  %4697 = vpow2.f32 %v918_v50  ;;  %vm1777_vm13 = vcmp.ge.f32.partialorder %v1713_v1, 0.1 }
 0x368   :  { %v1277_v29 = vadd.f32 %v4688_v9, %v1276_v39  ;;  %v1884_v7 = vsel %vm1756_vm3, %v6237_v35, 0.0  ;;  %v1885_v2 = vsel %vm1757_vm1, %v6247_v41, 0.0  ;;  %4699 = vpow2.f32 %v920_v52 }
 0x369   :  { %1040 = vadd.xlane.f32.xlu2 %v1039_v38  ;;  %1948 = vst [vmem:[#allocation7 + $0x30] sm:$0xff] %v1884_v7  ;;  %v9845_v7 = vld [vmem:[#allocation18_spill] sm:$0xff] }
 0x36a   :  { %v1281_v39 = vsel %vm1280_vm7, %v4688_v9, %v1277_v29  ;;  %1949 = vst [vmem:[#allocation7 + $0x38] sm:$0xff] %v1885_v2  ;;  %vm1776_vm7 = vcmp.ge.f32.partialorder %v1712_v51, 0.1  ;;  %v1036_v29 = vadd.f32 %v6251_v42, %v6249_v21 }
 0x36b   :  { %v1286_v22 = vsel %vm1283_vm12, %v1285_v20, %v1281_v39  ;;  %v6266_v20 = vpop.xlane.xlu2 %1049 }
 0x36c   :  { %v1584_v38 = vmul.f32 %v9844_v16, %v1286_v22  ;;  %v1585_v57 = vmul.f32 %v9845_v7, %v1286_v22  ;;  %v1419_v18 = vand.u32 2147483648, %v6266_v20 }
 0x36d   :  { %v6268_v50 = vpop.eup %4697 }
 0x36e   :  { %1648 = vst [vmem:[#allocation6 + $0xd0] sm:$0xff] %v1584_v38  ;;  %v1840_v37 = vmul.f32 1.1111112, %v1584_v38  ;;  %v1841_v9 = vmul.f32 1.1111112, %v1585_v57  ;;  %v6270_v39 = vpop.eup %4699 }
 0x36f   :  { %1649 = vst [vmem:[#allocation6 + $0xd8] sm:$0xff] %v1585_v57  ;;  %v1030_v52 = vadd.f32 %v6270_v39, %v6268_v50 }
 0x370   :  { %v1904_v24 = vsel %vm1776_vm7, %v1840_v37, 0.0  ;;  %4273 = vmatpush.xpose.msk.msrb.mxu0 %vm1776_vm7, %v1840_v37  ;;  %v1905_v59 = vsel %vm1777_vm13, %v1841_v9, 0.0  ;;  %4289 = vmatpush.xpose.msk.msrb.mxu1 %vm1777_vm13, %v1841_v9  ;;  %9846 = vst [vmem:[#allocation15_spill] sm:$0xff] %v6270_v39 }
 0x371   :  { %1968 = vst [vmem:[#allocation7 + $0xd0] sm:$0xff] %v1904_v24  ;;  %1037 = vadd.xlane.f32.xlu2 %v1036_v29 }
 0x372   :  { %1969 = vst [vmem:[#allocation7 + $0xd8] sm:$0xff] %v1905_v59 }
 0x373   :  { %v6286_v59 = vpop.xlane.xlu2 %1052 }
 0x374   :  { %4274 = vmatpush.xpose.msk.msrb.mxu0 %vm1774_vm10, %v5770_v44  ;;  %4290 = vmatpush.xpose.msk.msrb.mxu1 %vm1775_vm14, %v5772_v25  ;;  %v9848_v44 = vld [vmem:[#allocation29_spill] sm:$0xff]  ;;  %vm9850_vm14 = vcmp.ge.f32.partialorder %v5677_v48, 0.1  ;;  %v9851_v25 = vld [vmem:[#allocation27_spill] sm:$0xff] }
 0x375   :  { %vm9849_vm10 = vcmp.ge.f32.partialorder %v9848_v44, 0.1 }
 0x378   :  { %4275 = vmatpush.xpose.msk.msrb.mxu0 %vm1772_vm4, %v5987_v26  ;;  %4291 = vmatpush.xpose.msk.msrb.mxu1 %vm1773_vm8, %v5989_v45  ;;  %vm9859_vm4 = vcmp.ge.f32.partialorder %v6124_v6, 0.1  ;;  %vm9860_vm8 = vcmp.ge.f32.partialorder %v6178_v32, 0.1 }
 0x379   :  { %1031 = vadd.xlane.f32.xlu2 %v1030_v52 }
 0x37b   :  { %v6305_v61 = vpop.xlane.xlu2 %1055 }
 0x37c   :  { %4276 = vmatpush.xpose.msk.msrb.mxu0 %vm1770_vm9, %v5885_v54  ;;  %4292 = vmatpush.xpose.msk.msrb.mxu1 %vm1771_vm2, %v5898_v30  ;;  %vm9853_vm9 = vcmp.ge.f32.partialorder %v9852_v23, 0.1  ;;  %vm9858_vm2 = vcmp.ge.f32.partialorder %v6119_v31, 0.1  ;;  %v1449_v9 = vand.u32 2147483648, %v6305_v61 }
 0x380   :  { %4277 = vmatpush.xpose.msk.msrb.mxu0 %vm1768_vm11, %v5766_v56  ;;  %4293 = vmatpush.xpose.msk.msrb.mxu1 %vm1769_vm15, %v5806_v47  ;;  %v9855_v56 = vld [vmem:[#allocation24_spill] sm:$0xff]  ;;  %vm9857_vm15 = vcmp.ge.f32.partialorder %v6071_v27, 0.1 }
 0x381   :  { %vm9856_vm11 = vcmp.ge.f32.partialorder %v9855_v56, 0.1 }
 0x384   :  { %4278 = vmatpush.xpose.msk.msrb.mxu0 %vm9849_vm10, %v9847_v36  ;;  %4294 = vmatpush.xpose.msk.msrb.mxu1 %vm9850_vm14, %v5684_v33  ;;  %v1059_v53 = vpop.xlane.xlu2 %1058  ;;  %v50_v33 = vld [vmem:[%s9648_s2 + $0x20] sm:$0xff] }
 0x385   :  { %4701 = vrcp.f32 %v1059_v53  ;;  %v1464_v51 = vand.u32 2147483648, %v1059_v53 }
 0x386   :  { %4703 = vrcp.f32 %v6266_v20 }
 0x387   :  { %v1465_v58 = vor.u32 1.1754944e-38, %v1464_v51 }
 0x388   :  { %4279 = vmatpush.xpose.msk.msrb.mxu0 %vm9853_vm9, %v9851_v25  ;;  %4295 = vmatpush.xpose.msk.msrb.mxu1 %vm9856_vm11, %v9854_v46 }
 0x38b   :  { %v4702_v47 = vpop.eup %4701 }
 0x38c   :  { %4280 = vmatpush.xpose.msk.msrb.mxu0 %vm1762_vm5, %v6082_v8  ;;  %4296 = vmatpush.xpose.msk.msrb.mxu1 %vm9857_vm15, %v6084_v60  ;;  %vm9861_vm5 = vcmp.ge.f32.partialorder %v6183_v63, 0.1  ;;  %v1454_v32 = vmul.f32 %v4702_v47, %v1059_v53  ;;  %v6351_v54 = vpop.eup %4703  ;;  %v1434_v60 = vand.u32 2147483648, %v6286_v59  ;;  %vm1459_vm12 = vweird.f32 %v4702_v47 }
 0x38d   :  { %v6362_v8 = vmul.f32 %v6351_v54, %v6266_v20 }
 0x38e   :  { %v1455_v26 = vsub.f32 1.0, %v1454_v32  ;;  %v6373_v43 = vor.u32 1.1754944e-38, %v1434_v60 }
 0x390   :  { %4281 = vmatpush.xpose.msk.msrb.mxu0 %vm9858_vm2, %v6137_v3  ;;  %4297 = vmatpush.xpose.msk.msrb.mxu1 %vm9859_vm4, %v6139_v10  ;;  %v1456_v6 = vmul.f32 %v4702_v47, %v1455_v26  ;;  %v6368_v10 = vor.u32 1.1754944e-38, %v1419_v18 }
 0x391   :  { %74 = vperm.xlu2 %4545, %v50_v33  }
 0x392   :  { %v1457_v22 = vadd.f32 %v4702_v47, %v1456_v6 }
 0x394   :  { %v6332_v48 = vpop.xlane.xlu2 %1061  ;;  %4282 = vmatpush.xpose.msk.msrb.mxu0 %vm9860_vm8, %v6200_v14  ;;  %4298 = vmatpush.xpose.msk.msrb.mxu1 %vm9861_vm5, %v6202_v11  ;;  %v1410_v14 = vsub.f32 1.0, %v6362_v8  ;;  %v1432_v11 = vand.u32 2147483647, %v6286_v59  ;;  %vm1443_vm8 = vweird.f32 %v6305_v61 }
 0x395   :  { %4705 = vrcp.f32 %v6332_v48  ;;  %v1479_v1 = vand.u32 2147483648, %v6332_v48  ;;  %v1477_v57 = vand.u32 2147483647, %v6332_v48  ;;  %vm1473_vm13 = vweird.f32 %v6332_v48 }
 0x396   :  { %4707 = vrcp.f32 %v6305_v61 }
 0x397   :  { %v1480_v36 = vor.u32 1.1754944e-38, %v1479_v1  ;;  %vm1478_vm9 = vcmp.eq.f32.partialorder %v1477_v57, 8.507059e+37 }
 0x398   :  { %4283 = vmatpush.xpose.msk.msrb.mxu0 %vm1756_vm3, %v6237_v35  ;;  %4299 = vmatpush.xpose.msk.msrb.mxu1 %vm1757_vm1, %v6247_v41  ;;  %v1447_v35 = vand.u32 2147483647, %v6305_v61  ;;  %v1462_v41 = vand.u32 2147483647, %v1059_v53  ;;  %vm1458_vm1 = vweird.f32 %v1059_v53 }
 0x399   :  { %vm1460_vm6 = vmor %vm1458_vm1, %vm1459_vm12 }
 0x39a   :  { %vm1463_vm7 = vcmp.eq.f32.partialorder %v1462_v41, 8.507059e+37  ;;  %v1461_v23 = vsel %vm1460_vm6, %v4702_v47, %v1457_v22  ;;  %v1450_v41 = vor.u32 1.1754944e-38, %v1449_v9 }
 0x39b   :  { %v4706_v30 = vpop.eup %4705  ;;  %v6392_v53 = vsel %vm1463_vm7, %v1465_v58, %v1461_v23 }
 0x39c   :  { %v6353_v62 = vpop.eup %4707  ;;  %v1469_v40 = vmul.f32 %v4706_v30, %v6332_v48  ;;  %vm1474_vm3 = vweird.f32 %v4706_v30  ;;  %v9862_v48 = vld [vmem:[#allocation30_spill] sm:$0xff] }
 0x39d   :  { %v6356_v45 = vpop.xlane.xlu0 %1073  ;;  %v1439_v31 = vmul.f32 %v6353_v62, %v6305_v61  ;;  %vm1475_vm10 = vmor %vm1473_vm13, %vm1474_vm3  ;;  %v6399_v26 = vmul.f32 %v9862_v48, %v6392_v53  ;;  %vm1444_vm15 = vweird.f32 %v6353_v62  ;;  %vm1448_vm3 = vcmp.eq.f32.partialorder %v1447_v35, 8.507059e+37 }
 0x39e   :  { %v1470_v27 = vsub.f32 1.0, %v1469_v40  ;;  %4709 = vrcp.f32 %v6356_v45  ;;  %v1539_v25 = vand.u32 2147483648, %v6356_v45  ;;  %v1537_v46 = vand.u32 2147483647, %v6356_v45  ;;  %vm1445_vm5 = vmor %vm1443_vm8, %vm1444_vm15 }
 0x39f   :  { %4711 = vrcp.f32 %v6286_v59  ;;  %v1440_v24 = vsub.f32 1.0, %v1439_v31  ;;  %vm1533_vm11 = vweird.f32 %v6356_v45  ;;  %1672 = vst [vmem:[#allocation6 + $0x190] sm:$0xff] %v6399_v26 }
 0x3a0   :  { %v1471_v63 = vmul.f32 %v4706_v30, %v1470_v27  ;;  %v1540_v60 = vor.u32 1.1754944e-38, %v1539_v25  ;;  %vm1538_vm4 = vcmp.eq.f32.partialorder %v1537_v46, 8.507059e+37  ;;  %v9865_v25 = vld [vmem:[#allocation25_spill] sm:$0xff] }
 0x3a1   :  { %v1441_v37 = vmul.f32 %v6353_v62, %v1440_v24  ;;  %v6423_v24 = vmul.f32 %v6351_v54, %v1410_v14  ;;  %v6435_v14 = vld [vmem:[%s9651_s5 + $0x1e0] sm:$0xff] }
 0x3a2   :  { %v1472_v7 = vadd.f32 %v4706_v30, %v1471_v63  ;;  %vm1810_vm6 = vcmp.ge.f32.partialorder %v6435_v14, 0.1 }
 0x3a3   :  { %v1442_v8 = vadd.f32 %v6353_v62, %v1441_v37 }
 0x3a4   :  { %v4710_v19 = vpop.eup %4709  ;;  %v6377_v2 = vpop.xlane.xlu2 %1064  ;;  %v1476_v56 = vsel %vm1475_vm10, %v4706_v30, %v1472_v7 }
 0x3a5   :  { %v1529_v16 = vmul.f32 %v4710_v19, %v6356_v45  ;;  %4713 = vrcp.f32 %v6377_v2  ;;  %v6381_v38 = vpop.xlane.xlu0 %989  ;;  %v6387_v52 = vpop.eup %4711  ;;  %vm1534_vm14 = vweird.f32 %v4710_v19  ;;  %v1481_v40 = vsel %vm1478_vm9, %v1480_v36, %v1476_v56 }
 0x3a6   :  { %4715 = vrcp.f32 %v6381_v38  ;;  %vm6404_vm2 = vmor %vm1533_vm11, %vm1534_vm14  ;;  %v1610_v27 = vmul.f32 %v5743_v12, %v1481_v40  ;;  %v6412_v45 = vmul.f32 %v5752_v0, %v1481_v40  ;;  %v6429_v0 = vld [vmem:[%s9651_s5 + $0x1a0] sm:$0xff]  ;;  %v1446_v37 = vsel %vm1445_vm5, %v6353_v62, %v1442_v8 }
 0x3a7   :  { %v1530_v29 = vsub.f32 1.0, %v1529_v16  ;;  %vm9702_vm12 = vcmp.ge.f32.partialorder %v6429_v0, 0.1  ;;  %vm1488_vm1 = vweird.f32 %v6377_v2  ;;  %v1119_v9 = vand.u32 2147483648, %v6381_v38  ;;  %v1690_v40 = vld [vmem:[%s9651_s5 + $0x20] sm:$0xff] }
 0x3a8   :  { %1674 = vst [vmem:[#allocation6 + $0x1a0] sm:$0xff] %v1610_v27  ;;  %v6447_v57 = vmul.f32 1.1111112, %v1610_v27  ;;  %v1117_v61 = vand.u32 2147483647, %v6381_v38  ;;  %v1494_v46 = vand.u32 2147483648, %v6377_v2  ;;  %vm1113_vm10 = vweird.f32 %v6381_v38 }
 0x3a9   :  { %v1531_v44 = vmul.f32 %v4710_v19, %v1530_v29  ;;  %1675 = vst [vmem:[#allocation6 + $0x1a8] sm:$0xff] %v6412_v45  ;;  %v1492_v48 = vand.u32 2147483647, %v6377_v2  ;;  %v1120_v47 = vor.u32 1.1754944e-38, %v1119_v9 }
 0x3aa   :  { %v1930_v62 = vsel %vm9702_vm12, %v6447_v57, 0.0  ;;  %vm1118_vm11 = vcmp.eq.f32.partialorder %v1117_v61, 8.507059e+37  ;;  %vm6807_vm12 = vcmp.eq.f32.partialorder %v1432_v11, 8.507059e+37  ;;  %v6821_v11 = vld [vmem:[%s9651_s5 + $0x190] sm:$0xff] }
 0x3ab   :  { %v6394_v33 = vpop.eup %4713  ;;  %v1532_v32 = vadd.f32 %v4710_v19, %v1531_v44  ;;  %v6472_v44 = vld [vmem:[%s9651_s5 + $0x1e8] sm:$0xff]  ;;  %1994 = vst [vmem:[#allocation7 + $0x1a0] sm:$0xff] %v1930_v62 }
 0x3ac   :  { %v6401_v18 = vpop.eup %4715  ;;  %v1484_v30 = vmul.f32 %v6394_v33, %v6377_v2  ;;  %vm1489_vm13 = vweird.f32 %v6394_v33  ;;  %vm1811_vm15 = vcmp.ge.f32.partialorder %v6472_v44, 0.1 }
 0x3ad   :  { %v1109_v31 = vmul.f32 %v6401_v18, %v6381_v38  ;;  %v6417_v6 = vpop.xlane.xlu0 %986  ;;  %v1536_v63 = vsel %vm6404_vm2, %v4710_v19, %v1532_v32  ;;  %vm1114_vm7 = vweird.f32 %v6401_v18  ;;  %vm6499_vm9 = vmor %vm1488_vm1, %vm1489_vm13  ;;  %vm1754_vm2 = vcmp.ge.f32.partialorder %v1690_v40, 0.1 }
 0x3ae   :  { %v1485_v12 = vsub.f32 1.0, %v1484_v30  ;;  %4717 = vrcp.f32 %v6417_v6  ;;  %v1541_v19 = vsel %vm1538_vm4, %v1540_v60, %v1536_v63  ;;  %vm1115_vm14 = vmor %vm1113_vm10, %vm1114_vm7  ;;  %v1691_v60 = vld [vmem:[%s9651_s5 + $0x28] sm:$0xff]  ;;  %vm1493_vm4 = vcmp.eq.f32.partialorder %v1492_v48, 8.507059e+37 }
 0x3af   :  { %v1110_v51 = vsub.f32 1.0, %v1109_v31  ;;  %v1618_v22 = vmul.f32 %v5800_v17, %v1541_v19  ;;  %v1619_v16 = vmul.f32 %v5808_v4, %v1541_v19  ;;  %v6453_v17 = vsel %vm1448_vm3, %v1450_v41, %v1446_v37  ;;  %v9868_v19 = vld [vmem:[#allocation35_spill] sm:$0xff] }
 0x3b0   :  { %v1486_v1 = vmul.f32 %v6394_v33, %v1485_v12  ;;  %v6476_v23 = vmul.f32 %v9865_v25, %v6453_v17  ;;  %v6510_v31 = vmul.f32 %v6387_v52, %v6286_v59  ;;  %vm1755_vm8 = vcmp.ge.f32.partialorder %v1691_v60, 0.1  ;;  %v6575_v60 = vld [vmem:[%s9651_s5 + $0x8] sm:$0xff] }
 0x3b1   :  { %v1111_v7 = vmul.f32 %v6401_v18, %v1110_v51  ;;  %1682 = vst [vmem:[#allocation6 + $0x1e0] sm:$0xff] %v1618_v22  ;;  %v6467_v36 = vmul.f32 1.1111112, %v1618_v22  ;;  %v6492_v38 = vmul.f32 1.1111112, %v1619_v16  ;;  %v6524_v22 = vld [vmem:[%s9651_s5 + $0x10] sm:$0xff]  ;;  %v6563_v40 = vadd.f32 %v6351_v54, %v6423_v24 }
 0x3b2   :  { %1683 = vst [vmem:[#allocation6 + $0x1e8] sm:$0xff] %v1619_v16  ;;  %v1487_v29 = vadd.f32 %v6394_v33, %v1486_v1  ;;  %vm1752_vm3 = vcmp.ge.f32.partialorder %v6524_v22, 0.1  ;;  %vm1098_vm1 = vweird.f32 %v6417_v6 }
 0x3b3   :  { %v1112_v4 = vadd.f32 %v6401_v18, %v1111_v7  ;;  %1670 = vst [vmem:[#allocation6 + $0x180] sm:$0xff] %v6476_v23  ;;  %v1938_v2 = vsel %vm1810_vm6, %v6467_v36, 0.0  ;;  %v1102_v7 = vand.u32 2147483647, %v6417_v6 }
 0x3b4   :  { %v6461_v35 = vpop.eup %4717  ;;  %v6465_v58 = vpop.xlane.xlu2 %1067  ;;  %v1491_v12 = vsel %vm6499_vm9, %v6394_v33, %v1487_v29  ;;  %2002 = vst [vmem:[#allocation7 + $0x1e0] sm:$0xff] %v1938_v2  ;;  %v1939_v33 = vsel %vm1811_vm15, %v6492_v38, 0.0 }
 0x3b5   :  { %v1094_v56 = vmul.f32 %v6461_v35, %v6417_v6  ;;  %4719 = vrcp.f32 %v6465_v58  ;;  %v6483_v32 = vpop.xlane.xlu0 %983  ;;  %v1116_v8 = vsel %vm1115_vm14, %v6401_v18, %v1112_v4  ;;  %v1495_v18 = vor.u32 1.1754944e-38, %v1494_v46  ;;  %v6546_v46 = vld [vmem:[%s9651_s5 + $0x18] sm:$0xff]  ;;  %2003 = vst [vmem:[#allocation7 + $0x1e8] sm:$0xff] %v1939_v33 }
 0x3b6   :  { %4721 = vrcp.f32 %v6483_v32  ;;  %v1121_v63 = vsel %vm1118_vm11, %v1120_v47, %v1116_v8  ;;  %vm1099_vm5 = vweird.f32 %v6461_v35  ;;  %v9869_v47 = vld [vmem:[#allocation36_spill] sm:$0xff]  ;;  %vm1753_vm7 = vcmp.ge.f32.partialorder %v6546_v46, 0.1  ;;  %v9880_v46 = vld [vmem:[#allocation38_spill] sm:$0xff] }
 0x3b7   :  { %v1095_v27 = vsub.f32 1.0, %v1094_v56  ;;  %v1562_v51 = vmul.f32 %v5762_v28, %v1121_v63  ;;  %v1563_v1 = vmul.f32 %v9868_v19, %v1121_v63  ;;  %v1104_v28 = vand.u32 2147483648, %v6417_v6  ;;  %vm1100_vm13 = vmor %vm1098_vm1, %vm1099_vm5 }
 0x3b8   :  { %v6533_v9 = vsel %vm1493_vm4, %v1495_v18, %v1491_v12  ;;  %v6570_v12 = vld [vmem:[%s9651_s5] sm:$0xff]  ;;  %v1507_v18 = vand.u32 2147483647, %v6465_v58  ;;  %vm1103_vm10 = vcmp.eq.f32.partialorder %v1102_v7, 8.507059e+37  ;;  %v1087_v19 = vand.u32 2147483647, %v6483_v32 }
 0x3b9   :  { %v1096_v41 = vmul.f32 %v6461_v35, %v1095_v27  ;;  %1626 = vst [vmem:[#allocation6 + $0x20] sm:$0xff] %v1562_v51  ;;  %v1818_v37 = vmul.f32 1.1111112, %v1562_v51  ;;  %v1819_v29 = vmul.f32 1.1111112, %v1563_v1  ;;  %v6555_v30 = vmul.f32 %v9869_v47, %v6533_v9 }
 0x3ba   :  { %1627 = vst [vmem:[#allocation6 + $0x28] sm:$0xff] %v1563_v1  ;;  %v1425_v27 = vsub.f32 1.0, %v6510_v31  ;;  %v1105_v24 = vor.u32 1.1754944e-38, %v1104_v28  ;;  %v1089_v28 = vand.u32 2147483648, %v6483_v32  ;;  %vm1750_vm9 = vcmp.ge.f32.partialorder %v6570_v12, 0.1 }
 0x3bb   :  { %v6529_v16 = vpop.eup %4719  ;;  %v1097_v61 = vadd.f32 %v6461_v35, %v1096_v41  ;;  %v1882_v48 = vsel %vm1754_vm2, %v1818_v37, 0.0  ;;  %4284 = vmatpush.xpose.msk.msrb.mxu0 %vm1754_vm2, %v1818_v37  ;;  %v1883_v63 = vsel %vm1755_vm8, %v1819_v29, 0.0  ;;  %4300 = vmatpush.xpose.msk.msrb.mxu1 %vm1755_vm8, %v1819_v29  ;;  %v1509_v41 = vand.u32 2147483648, %v6465_v58  ;;  %1676 = vst [vmem:[#allocation6 + $0x1b0] sm:$0xff] %v6555_v30  ;;  %v9871_v29 = vld [vmem:[#allocation34_spill] sm:$0xff] }
 0x3bc   :  { %v6535_v4 = vpop.eup %4721  ;;  %v1499_v62 = vmul.f32 %v6529_v16, %v6465_v58  ;;  %v6541_v25 = vpop.xlane.xlu2 %1070  ;;  %1946 = vst [vmem:[#allocation7 + $0x20] sm:$0xff] %v1882_v48  ;;  %vm1504_vm14 = vweird.f32 %v6529_v16  ;;  %vm1751_vm11 = vcmp.ge.f32.partialorder %v6575_v60, 0.1  ;;  %vm1503_vm4 = vweird.f32 %v6465_v58  ;;  %v6681_v48 = vld [vmem:[%s9651_s5 + $0x1b0] sm:$0xff]  ;;  %v6738_v12 = vld [vmem:[%s9651_s5 + $0x1a8] sm:$0xff] }
 0x3bd   :  { %v1079_v56 = vmul.f32 %v6535_v4, %v6483_v32  ;;  %4723 = vrcp.f32 %v6541_v25  ;;  %1947 = vst [vmem:[#allocation7 + $0x28] sm:$0xff] %v1883_v63  ;;  %v1101_v1 = vsel %vm1100_vm13, %v6461_v35, %v1097_v61  ;;  %vm1084_vm2 = vweird.f32 %v6535_v4  ;;  %v9870_v35 = vld [vmem:[#allocation33_spill] sm:$0xff]  ;;  %vm6613_vm5 = vmor %vm1503_vm4, %vm1504_vm14 }
 0x3be   :  { %v1500_v8 = vsub.f32 1.0, %v1499_v62  ;;  %v1106_v37 = vsel %vm1103_vm10, %v1105_v24, %v1101_v1  ;;  %vm6598_vm8 = vcmp.eq.f32.partialorder %v1507_v18, 8.507059e+37  ;;  %v1510_v47 = vor.u32 1.1754944e-38, %v1509_v41  ;;  %v6622_v18 = vld [vmem:[%s9651_s5 + $0x1d8] sm:$0xff] }
 0x3bf   :  { %v1080_v2 = vsub.f32 1.0, %v1079_v56  ;;  %v1560_v61 = vmul.f32 %v9870_v35, %v1106_v37  ;;  %v1561_v56 = vmul.f32 %v9871_v29, %v1106_v37  ;;  %vm1083_vm1 = vweird.f32 %v6483_v32  ;;  %v6634_v37 = vpop.xlane.xlu0 %1034 }
 0x3c0   :  { %v1501_v6 = vmul.f32 %v6529_v16, %v1500_v8  ;;  %vm6626_vm13 = vmor %vm1083_vm1, %vm1084_vm2  ;;  %vm6630_vm10 = vcmp.eq.f32.partialorder %v1087_v19, 8.507059e+37  ;;  %v1090_v32 = vor.u32 1.1754944e-38, %v1089_v28  ;;  %v1522_v29 = vand.u32 2147483647, %v6541_v25 }
 0x3c1   :  { %v1081_v51 = vmul.f32 %v6535_v4, %v1080_v2  ;;  %v6609_v2 = vld [vmem:[%s9651_s5 + $0x1d0] sm:$0xff]  ;;  %1624 = vst [vmem:[#allocation6 + $0x10] sm:$0xff] %v1560_v61  ;;  %v1816_v58 = vmul.f32 1.1111112, %v1560_v61  ;;  %v6642_v61 = vld [vmem:[%s9651_s5 + $0x1c0] sm:$0xff]  ;;  %vm1518_vm4 = vweird.f32 %v6541_v25  ;;  %v1344_v41 = vand.u32 2147483648, %v6634_v37 }
 0x3c2   :  { %v1502_v33 = vadd.f32 %v6529_v16, %v1501_v6  ;;  %v1817_v6 = vmul.f32 1.1111112, %v1561_v56  ;;  %1625 = vst [vmem:[#allocation6 + $0x18] sm:$0xff] %v1561_v56  ;;  %v1524_v56 = vand.u32 2147483648, %v6541_v25  ;;  %vm9706_vm2 = vcmp.ge.f32.partialorder %v6622_v18, 0.1 }
 0x3c3   :  { %v6591_v7 = vpop.eup %4723  ;;  %v1082_v62 = vadd.f32 %v6535_v4, %v1081_v51  ;;  %v1880_v19 = vsel %vm1752_vm3, %v1816_v58, 0.0  ;;  %4285 = vmatpush.xpose.msk.msrb.mxu0 %vm1752_vm3, %v1816_v58  ;;  %vm9707_vm3 = vcmp.ge.f32.partialorder %v6609_v2, 0.1  ;;  %v6672_v58 = vld [vmem:[%s9651_s5 + $0x1c8] sm:$0xff] }
 0x3c4   :  { %v1514_v8 = vmul.f32 %v6591_v7, %v6541_v25  ;;  %v6604_v63 = vpop.xlane.xlu2 %1076  ;;  %v1506_v35 = vsel %vm6613_vm5, %v6529_v16, %v1502_v33  ;;  %v1881_v28 = vsel %vm1753_vm7, %v1817_v6, 0.0  ;;  %4301 = vmatpush.xpose.msk.msrb.mxu1 %vm1753_vm7, %v1817_v6  ;;  %vm1519_vm14 = vweird.f32 %v6591_v7  ;;  %1944 = vst [vmem:[#allocation7 + $0x10] sm:$0xff] %v1880_v19  ;;  %v9882_v51 = vld [vmem:[#allocation42_spill] sm:$0xff] }
 0x3c5   :  { %4725 = vrcp.f32 %v6604_v63  ;;  %v1086_v16 = vsel %vm6626_vm13, %v6535_v4, %v1082_v62  ;;  %1945 = vst [vmem:[#allocation7 + $0x18] sm:$0xff] %v1881_v28  ;;  %v9881_v4 = vld [vmem:[#allocation39_spill] sm:$0xff]  ;;  %v1511_v24 = vsel %vm6598_vm8, %v1510_v47, %v1506_v35  ;;  %vm9703_vm7 = vcmp.ge.f32.partialorder %v6642_v61, 0.1  ;;  %vm6692_vm8 = vmor %vm1518_vm4, %vm1519_vm14 }
 0x3c6   :  { %v1515_v1 = vsub.f32 1.0, %v1514_v8  ;;  %v1091_v22 = vsel %vm6630_vm10, %v1090_v32, %v1086_v16  ;;  %4727 = vrcp.f32 %v6634_v37  ;;  %v1614_v32 = vmul.f32 %v9882_v51, %v1511_v24 }
 0x3c7   :  { %v1558_v8 = vmul.f32 %v9880_v46, %v1091_v22  ;;  %v1559_v62 = vmul.f32 %v9881_v4, %v1091_v22  ;;  %vm6696_vm5 = vcmp.eq.f32.partialorder %v1522_v29, 8.507059e+37  ;;  %v1525_v16 = vor.u32 1.1754944e-38, %v1524_v56  ;;  %v6712_v29 = vld [vmem:[%s9651_s5 + $0x1f8] sm:$0xff]  ;;  %v9887_v22 = vld [vmem:[#allocation43_spill] sm:$0xff] }
 0x3c8   :  { %v1516_v33 = vmul.f32 %v6591_v7, %v1515_v1  ;;  %v6688_v1 = vmul.f32 %v6387_v52, %v1425_v27  ;;  %v1615_v46 = vmul.f32 %v9887_v22, %v1511_v24  ;;  %vm9705_vm1 = vcmp.ge.f32.partialorder %v6672_v58, 0.1  ;;  %1678 = vst [vmem:[#allocation6 + $0x1c0] sm:$0xff] %v1614_v32 }
 0x3c9   :  { %1622 = vst [vmem:[#allocation6] sm:$0xff] %v1558_v8  ;;  %v1814_v19 = vmul.f32 1.1111112, %v1558_v8  ;;  %v1815_v28 = vmul.f32 1.1111112, %v1559_v62  ;;  %vm1428_vm4 = vweird.f32 %v6286_v59  ;;  %v9903_v59 = vld [vmem:[#allocation26_spill] sm:$0xff] }
 0x3ca   :  { %v1517_v6 = vadd.f32 %v6591_v7, %v1516_v33  ;;  %1623 = vst [vmem:[#allocation6 + $0x8] sm:$0xff] %v1559_v62  ;;  %v6707_v33 = vld [vmem:[%s9651_s5 + $0x1f0] sm:$0xff]  ;;  %vm1813_vm10 = vcmp.ge.f32.partialorder %v6712_v29, 0.1  ;;  %v6748_v35 = vmul.f32 1.1111112, %v6555_v30 }
 0x3cb   :  { %v6683_v47 = vpop.eup %4725  ;;  %v1878_v4 = vsel %vm1750_vm9, %v1814_v19, 0.0  ;;  %4286 = vmatpush.xpose.msk.msrb.mxu0 %vm1750_vm9, %v1814_v19  ;;  %v1879_v62 = vsel %vm1751_vm11, %v1815_v28, 0.0  ;;  %4302 = vmatpush.xpose.msk.msrb.mxu1 %vm1751_vm11, %v1815_v28  ;;  %vm1804_vm9 = vcmp.ge.f32.partialorder %v6681_v48, 0.1  ;;  %vm1429_vm11 = vweird.f32 %v6387_v52  ;;  %1679 = vst [vmem:[#allocation6 + $0x1c8] sm:$0xff] %v1615_v46  ;;  %v6892_v29 = vld [vmem:[%s9651_s5 + $0x180] sm:$0xff] }
 0x3cc   :  { %v1544_v31 = vmul.f32 %v6683_v47, %v6604_v63  ;;  %v6702_v27 = vpop.xlane.xlu2 %1046  ;;  %v1521_v56 = vsel %vm6692_vm8, %v6591_v7, %v1517_v6  ;;  %v6729_v7 = vor.u32 1.1754944e-38, %v1344_v41  ;;  %v1554_v6 = vand.u32 2147483648, %v6604_v63  ;;  %1942 = vst [vmem:[#allocation7] sm:$0xff] %v1878_v4  ;;  %v6740_v60 = vpop.eup %4727 }
 0x3cd   :  { %4729 = vrcp.f32 %v6702_v27  ;;  %v1526_v51 = vsel %vm6696_vm5, %v1525_v16, %v1521_v56  ;;  %1943 = vst [vmem:[#allocation7 + $0x8] sm:$0xff] %v1879_v62  ;;  %vm1812_vm13 = vcmp.ge.f32.partialorder %v6707_v33, 0.1  ;;  %vm1549_vm14 = vweird.f32 %v6683_v47  ;;  %v9888_v56 = vld [vmem:[#allocation13_spill] sm:$0xff] }
 0x3ce   :  { %v1545_v24 = vsub.f32 1.0, %v1544_v31  ;;  %v1616_v41 = vmul.f32 %v5982_v49, %v1526_v51  ;;  %v1617_v25 = vmul.f32 %v6004_v55, %v1526_v51  ;;  %v1552_v28 = vand.u32 2147483647, %v6604_v63  ;;  %v9889_v49 = vld [vmem:[#allocation14_spill] sm:$0xff] }
 0x3cf   :  { %v6753_v31 = vmul.f32 1.1111112, %v1614_v32  ;;  %vm1803_vm8 = vcmp.ge.f32.partialorder %v6738_v12, 0.1  ;;  %v6765_v62 = vmul.f32 %v6740_v60, %v6634_v37  ;;  %vm1548_vm5 = vweird.f32 %v6604_v63 }
 0x3d0   :  { %v1546_v19 = vmul.f32 %v6683_v47, %v1545_v24  ;;  %v60_v16 = vpop.permute.xlu0 %59  ;;  %1680 = vst [vmem:[#allocation6 + $0x1d0] sm:$0xff] %v1616_v41  ;;  %v6758_v55 = vmul.f32 1.1111112, %v1616_v41  ;;  %v6760_v30 = vmul.f32 1.1111112, %v1617_v25  ;;  %v1555_v24 = vor.u32 1.1754944e-38, %v1554_v6  ;;  %vm6773_vm0 = vmor %vm1548_vm5, %vm1549_vm14 }
 0x3d1   :  { %v122_v22 = vadd.f32 %v9888_v56, %v60_v16  ;;  %v157_v4 = vadd.f32 %v9889_v49, %v60_v16  ;;  %1681 = vst [vmem:[#allocation6 + $0x1d8] sm:$0xff] %v1617_v25  ;;  %v6783_v6 = vmul.f32 1.1111112, %v1615_v46  ;;  %v9892_v25 = vld [vmem:[#allocation37_spill] sm:$0xff]  ;;  %v6792_v56 = vld [vmem:[%s9651_s5 + $0x1b8] sm:$0xff]  ;;  %vm1414_vm14 = vweird.f32 %v6351_v54 }
 0x3d2   :  { %v1547_v32 = vadd.f32 %v6683_v47, %v1546_v19  ;;  %v1936_v16 = vsel %vm9707_vm3, %v6758_v55, 0.0  ;;  %v1937_v63 = vsel %vm9706_vm2, %v6760_v30, 0.0  ;;  %v6787_v19 = vmul.f32 %v9892_v25, %v6533_v9  ;;  %vm6862_vm2 = vmor %vm1428_vm4, %vm1429_vm11 }
 0x3d3   :  { %v6769_v51 = vpop.eup %4729  ;;  %173 = vst [vmem:[#allocation2 + $0x10] sm:$0xff] %v122_v22  ;;  %2086 = vxpose.xlu0.b32.start.end [1/1] (short) %v122_v22, 128  ;;  %2118 = vxpose.xlu2.b32.start.end [1/1] (short) %v157_v4, 128  ;;  %vm1553_vm5 = vcmp.eq.f32.partialorder %v1552_v28, 8.507059e+37  ;;  %v1934_v9 = vsel %vm9703_vm7, %v6753_v31, 0.0  ;;  %v1404_v28 = vand.u32 2147483648, %v6702_v27  ;;  %vm1805_vm7 = vcmp.ge.f32.partialorder %v6792_v56, 0.1 }
 0x3d4   :  { %v1551_v22 = vsel %vm6773_vm0, %v6683_v47, %v1547_v32  ;;  %v1394_v46 = vmul.f32 %v6769_v51, %v6702_v27  ;;  %174 = vst [vmem:[#allocation2 + $0x18] sm:$0xff] %v157_v4  ;;  %v6800_v49 = vpop.xlane.xlu2 %1043  ;;  %v1402_v47 = vand.u32 2147483647, %v6702_v27  ;;  %vm1413_vm0 = vweird.f32 %v6266_v20  ;;  %v7112_v56 = vld [vmem:[%s9651_s5 + $0x140] sm:$0xff] }
 0x3d5   :  { %v1556_v8 = vsel %vm1553_vm5, %v1555_v24, %v1551_v22  ;;  %4731 = vrcp.f32 %v6800_v49  ;;  %2000 = vst [vmem:[#allocation7 + $0x1d0] sm:$0xff] %v1936_v16  ;;  %v1427_v24 = vadd.f32 %v6387_v52, %v6688_v1  ;;  %v1935_v16 = vsel %vm9705_vm1, %v6783_v6, 0.0 }
 0x3d6   :  { %v1395_v4 = vsub.f32 1.0, %v1394_v46  ;;  %v1620_v32 = vmul.f32 %v6044_v13, %v1556_v8  ;;  %v1621_v41 = vmul.f32 %v6051_v5, %v1556_v8  ;;  %2001 = vst [vmem:[#allocation7 + $0x1d8] sm:$0xff] %v1937_v63  ;;  %v6829_v13 = vmul.f32 1.1111112, %v6787_v19  ;;  %v9895_v46 = vld [vmem:[#allocation31_spill] sm:$0xff] }
 0x3d7   :  { %1998 = vst [vmem:[#allocation7 + $0x1c0] sm:$0xff] %v1934_v9  ;;  %v6832_v5 = vmul.f32 1.1111112, %v6412_v45  ;;  %v6837_v3 = vmul.f32 %v9895_v46, %v6392_v53  ;;  %v9896_v1 = vand.u32 2147483647, %v6266_v20  ;;  %vm1398_vm1 = vweird.f32 %v6702_v27  ;;  %v6856_v53 = vld [vmem:[%s9651_s5 + $0x198] sm:$0xff] }
 0x3d8   :  { %1684 = vst [vmem:[#allocation6 + $0x1f0] sm:$0xff] %v1620_v32  ;;  %v1876_v63 = vmul.f32 1.1111112, %v1620_v32  ;;  %v1877_v22 = vmul.f32 1.1111112, %v1621_v41  ;;  %v1396_v39 = vmul.f32 %v6769_v51, %v1395_v4  ;;  %v1932_v45 = vsel %vm1804_vm9, %v6748_v35, 0.0 }
 0x3d9   :  { %vm6841_vm5 = vcmp.eq.f32.partialorder %v9896_v1, 8.507059e+37  ;;  %1685 = vst [vmem:[#allocation6 + $0x1f8] sm:$0xff] %v1621_v41  ;;  %v6851_v32 = vmul.f32 1.1111112, %v6399_v26  ;;  %vm6866_vm3 = vcmp.eq.f32.partialorder %v1402_v47, 8.507059e+37  ;;  %v6881_v47 = vmul.f32 %v9903_v59, %v6453_v17  ;;  %v6897_v17 = vld [vmem:[%s9651_s5 + $0x188] sm:$0xff] }
 0x3da   :  { %v1940_v26 = vsel %vm1812_vm13, %v1876_v63, 0.0  ;;  %4303 = vmatpush.xpose.msk.msra.mxu0 %vm1812_vm13, %v1876_v63  ;;  %v1941_v46 = vsel %vm1813_vm10, %v1877_v22, 0.0  ;;  %4319 = vmatpush.xpose.msk.msra.mxu1 %vm1813_vm10, %v1877_v22  ;;  %1999 = vst [vmem:[#allocation7 + $0x1c8] sm:$0xff] %v1935_v16  ;;  %vm1800_vm11 = vcmp.ge.f32.partialorder %v6821_v11, 0.1  ;;  %vm1399_vm4 = vweird.f32 %v6769_v51  ;;  %v6925_v4 = vld [vmem:[%s9651_s5 + $0x170] sm:$0xff] }
 0x3db   :  { %v6883_v1 = vpop.eup %4731  ;;  %v1405_v8 = vor.u32 1.1754944e-38, %v1404_v28  ;;  %2004 = vst [vmem:[#allocation7 + $0x1f0] sm:$0xff] %v1940_v26  ;;  %v1933_v33 = vsel %vm1805_vm7, %v6829_v13, 0.0  ;;  %v1431_v16 = vsel %vm6862_vm2, %v6387_v52, %v1427_v24  ;;  %v1931_v22 = vsel %vm1803_vm8, %v6832_v5, 0.0  ;;  %v7030_v41 = vld [vmem:[%s9651_s5 + $0x168] sm:$0xff] }
 0x3dc   :  { %v1379_v28 = vmul.f32 %v6883_v1, %v6800_v49  ;;  %2005 = vst [vmem:[#allocation7 + $0x1f8] sm:$0xff] %v1941_v46  ;;  %v6904_v63 = vpop.xlane.xlu2 %1040  ;;  %vm1801_vm13 = vcmp.ge.f32.partialorder %v6856_v53, 0.1  ;;  %v6911_v26 = vmul.f32 1.1111112, %v6837_v3  ;;  %v1397_v59 = vadd.f32 %v6769_v51, %v1396_v39  ;;  %v7212_v53 = vpop.f32.mrf.mxu0 }
 0x3dd   :  { %vm1383_vm10 = vweird.f32 %v6800_v49  ;;  %4733 = vrcp.f32 %v6904_v63  ;;  %1996 = vst [vmem:[#allocation7 + $0x1b0] sm:$0xff] %v1932_v45  ;;  %v1928_v52 = vsel %vm1800_vm11, %v6851_v32, 0.0  ;;  %v6920_v24 = vmul.f32 1.1111112, %v6476_v23  ;;  %v9909_v45 = vld [vmem:[#allocation22_spill] sm:$0xff] }
 0x3de   :  { %v1380_v46 = vsub.f32 1.0, %v1379_v28  ;;  %4304 = vmatpush.xpose.msk.msra.mxu0 %vm1810_vm6, %v6467_v36  ;;  %4320 = vmatpush.xpose.msk.msra.mxu1 %vm1811_vm15, %v6492_v38  ;;  %1677 = vst [vmem:[#allocation6 + $0x1b8] sm:$0xff] %v6787_v19  ;;  %vm1798_vm2 = vcmp.ge.f32.partialorder %v6892_v29, 0.1  ;;  %v6936_v39 = vmul.f32 1.1111112, %v6881_v47  ;;  %v1436_v23 = vsel %vm6807_vm12, %v6373_v43, %v1431_v16  ;;  %vm6945_vm6 = vmor %vm1413_vm0, %vm1414_vm14 }
 0x3df   :  { %v1387_v36 = vand.u32 2147483647, %v6800_v49  ;;  %v1389_v44 = vand.u32 2147483648, %v6800_v49  ;;  %1997 = vst [vmem:[#allocation7 + $0x1b8] sm:$0xff] %v1933_v33  ;;  %vm1799_vm15 = vcmp.ge.f32.partialorder %v6897_v17, 0.1  ;;  %vm6957_vm12 = vmor %vm1398_vm1, %vm1399_vm4  ;;  %vm1384_vm14 = vweird.f32 %v6883_v1 }
 0x3e0   :  { %v9906_v38 = vld [vmem:[#allocation21_spill] sm:$0xff]  ;;  %v1381_v20 = vmul.f32 %v6883_v1, %v1380_v46  ;;  %1995 = vst [vmem:[#allocation7 + $0x1a8] sm:$0xff] %v1931_v22  ;;  %v1929_v25 = vsel %vm1801_vm13, %v6911_v26, 0.0  ;;  %v1605_v33 = vmul.f32 %v9909_v45, %v1436_v23  ;;  %v1926_v27 = vsel %vm1798_vm2, %v6920_v24, 0.0  ;;  %v6975_v28 = vld [vmem:[%s9651_s5 + $0x178] sm:$0xff] }
 0x3e1   :  { %v1604_v19 = vmul.f32 %v9906_v38, %v1436_v23  ;;  %1992 = vst [vmem:[#allocation7 + $0x190] sm:$0xff] %v1928_v52  ;;  %v1416_v22 = vsel %vm6945_vm6, %v6351_v54, %v6563_v40  ;;  %v1401_v52 = vsel %vm6957_vm12, %v6769_v51, %v1397_v59  ;;  %vm9910_vm1 = vcmp.ge.f32.partialorder %v6609_v2, 0.1  ;;  %v9936_v17 = vld [vmem:[#allocation41_spill] sm:$0xff] }
 0x3e2   :  { %v1382_v46 = vadd.f32 %v6883_v1, %v1381_v20  ;;  %4305 = vmatpush.xpose.msk.msra.mxu0 %vm9910_vm1, %v6758_v55  ;;  %vm9911_vm0 = vcmp.ge.f32.partialorder %v6622_v18, 0.1  ;;  %1673 = vst [vmem:[#allocation6 + $0x198] sm:$0xff] %v6837_v3  ;;  %v1927_v54 = vsel %vm1799_vm15, %v6936_v39, 0.0  ;;  %vm9708_vm4 = vcmp.ge.f32.partialorder %v6925_v4, 0.1 }
 0x3e3   :  { %v6970_v16 = vmul.f32 1.1111112, %v1604_v19  ;;  %4321 = vmatpush.xpose.msk.msra.mxu1 %vm9911_vm0, %v6760_v30  ;;  %v1421_v40 = vsel %vm6841_vm5, %v6368_v10, %v1416_v22  ;;  %v6999_v51 = vpop.eup %4733  ;;  %1993 = vst [vmem:[#allocation7 + $0x198] sm:$0xff] %v1929_v25  ;;  %v7001_v2 = vmul.f32 1.1111112, %v1605_v33  ;;  %v9912_v55 = vld [vmem:[#allocation19_spill] sm:$0xff]  ;;  %v1406_v23 = vsel %vm6866_vm3, %v1405_v8, %v1401_v52  ;;  %vm7040_vm3 = vmor %vm1383_vm10, %vm1384_vm14 }
 0x3e4   :  { %v1602_v18 = vmul.f32 %v9912_v55, %v1421_v40  ;;  %v7007_v3 = vld [vmem:[%s9651_s5 + $0x160] sm:$0xff]  ;;  %v9913_v30 = vld [vmem:[#allocation20_spill] sm:$0xff]  ;;  %vm7012_vm6 = vcmp.eq.f32.partialorder %v1387_v36, 8.507059e+37  ;;  %v1390_v10 = vor.u32 1.1754944e-38, %v1389_v44  ;;  %v1364_v14 = vmul.f32 %v6999_v51, %v6904_v63  ;;  %v7018_v38 = vpop.xlane.xlu2 %1037  ;;  %1990 = vst [vmem:[#allocation7 + $0x180] sm:$0xff] %v1926_v27 }
 0x3e5   :  { %v1603_v59 = vmul.f32 %v9913_v30, %v1421_v40  ;;  %vm1797_vm5 = vcmp.ge.f32.partialorder %v6975_v28, 0.1  ;;  %v1372_v43 = vand.u32 2147483647, %v6904_v63  ;;  %4735 = vrcp.f32 %v7018_v38  ;;  %1671 = vst [vmem:[#allocation6 + $0x188] sm:$0xff] %v6881_v47  ;;  %v130_v28 = vpop.f32.mrf.mxu0 }
 0x3e6   :  { %v1924_v8 = vsel %vm9708_vm4, %v6970_v16, 0.0  ;;  %v1600_v36 = vmul.f32 %v6096_v34, %v1406_v23  ;;  %v9916_v44 = vsub.f32 1.0, %v6765_v62  ;;  %v1365_v25 = vsub.f32 1.0, %v1364_v14  ;;  %1991 = vst [vmem:[#allocation7 + $0x188] sm:$0xff] %v1927_v54  ;;  %v7134_v14 = vld [vmem:[%s9651_s5 + $0x148] sm:$0xff] }
 0x3e7   :  { %vm9919_vm12 = vcmp.ge.f32.partialorder %v6642_v61, 0.1  ;;  %vm9920_vm1 = vcmp.ge.f32.partialorder %v6672_v58, 0.1  ;;  %vm1794_vm0 = vcmp.ge.f32.partialorder %v7007_v3, 0.1  ;;  %vm1338_vm4 = vweird.f32 %v6634_v37 }
 0x3e8   :  { %v1336_v20 = vmul.f32 %v6740_v60, %v9916_v44  ;;  %4306 = vmatpush.xpose.msk.msra.mxu0 %vm9919_vm12, %v6753_v31  ;;  %4322 = vmatpush.xpose.msk.msra.mxu1 %vm9920_vm1, %v6783_v6  ;;  %v7051_v34 = vmul.f32 1.1111112, %v1602_v18  ;;  %1668 = vst [vmem:[#allocation6 + $0x170] sm:$0xff] %v1604_v19  ;;  %v1925_v62 = vsel %vm1797_vm5, %v7001_v2, 0.0  ;;  %v7057_v49 = vmul.f32 1.1111112, %v1603_v59 }
 0x3e9   :  { %v7062_v61 = vld [vmem:[%s9651_s5 + $0x150] sm:$0xff]  ;;  %v1601_v58 = vmul.f32 %v6105_v15, %v1406_v23  ;;  %v1386_v31 = vsel %vm7040_vm3, %v6883_v1, %v1382_v46  ;;  %v1366_v6 = vmul.f32 %v6999_v51, %v1365_v25  ;;  %vm1369_vm10 = vweird.f32 %v6999_v51  ;;  %1988 = vst [vmem:[#allocation7 + $0x170] sm:$0xff] %v1924_v8  ;;  %v7081_v1 = vld [vmem:[%s9651_s5 + $0x158] sm:$0xff] }
 0x3ea   :  { %v1374_v19 = vand.u32 2147483648, %v6904_v63  ;;  %vm1795_vm14 = vcmp.ge.f32.partialorder %v7030_v41, 0.1  ;;  %vm1339_vm12 = vweird.f32 %v6740_v60  ;;  %1669 = vst [vmem:[#allocation6 + $0x178] sm:$0xff] %v1605_v33  ;;  %v1922_v15 = vsel %vm1794_vm0, %v7051_v34, 0.0  ;;  %v9921_v33 = vld [vmem:[#allocation44_spill] sm:$0xff] }
 0x3eb   :  { %v7076_v45 = vmul.f32 1.1111112, %v1600_v36  ;;  %v1391_v27 = vsel %vm7012_vm6, %v1390_v10, %v1386_v31  ;;  %v1367_v22 = vadd.f32 %v6999_v51, %v1366_v6  ;;  %vm1368_vm3 = vweird.f32 %v6904_v63  ;;  %1989 = vst [vmem:[#allocation7 + $0x178] sm:$0xff] %v1925_v62  ;;  %v7095_v46 = vpop.eup %4735 }
 0x3ec   :  { %4307 = vmatpush.xpose.msk.msra.mxu0 %vm1804_vm9, %v6748_v35  ;;  %4323 = vmatpush.xpose.msk.msra.mxu1 %vm1805_vm7, %v6829_v13  ;;  %vm9710_vm1 = vcmp.ge.f32.partialorder %v7062_v61, 0.1  ;;  %v1598_v52 = vmul.f32 %v9921_v33, %v1391_v27  ;;  %v1337_v54 = vadd.f32 %v6740_v60, %v1336_v20  ;;  %vm7100_vm6 = vmor %vm1368_vm3, %vm1369_vm10  ;;  %1666 = vst [vmem:[#allocation6 + $0x160] sm:$0xff] %v1602_v18  ;;  %v1923_v48 = vsel %vm1795_vm14, %v7057_v49, 0.0  ;;  %v9924_v13 = vld [vmem:[#allocation45_spill] sm:$0xff]  ;;  %v7119_v23 = vpop.xlane.xlu2 %1031  ;;  %v9926_v20 = vld [vmem:[#allocation46_spill] sm:$0xff] }
 0x3ed   :  { %v7107_v35 = vmul.f32 1.1111112, %v1601_v58  ;;  %v7115_v40 = vmul.f32 %v9924_v13, %v1391_v27  ;;  %v1375_v55 = vor.u32 1.1754944e-38, %v1374_v19  ;;  %v1349_v30 = vmul.f32 %v7095_v46, %v7018_v38  ;;  %1986 = vst [vmem:[#allocation7 + $0x160] sm:$0xff] %v1922_v15  ;;  %v7184_v15 = vld [vmem:[%s9651_s5 + $0x138] sm:$0xff] }
 0x3ee   :  { %vm9709_vm7 = vcmp.ge.f32.partialorder %v7081_v1, 0.1  ;;  %v1371_v18 = vsel %vm7100_vm6, %v6999_v51, %v1367_v22  ;;  %vm1373_vm9 = vcmp.eq.f32.partialorder %v1372_v43, 8.507059e+37  ;;  %4737 = vrcp.f32 %v7119_v23  ;;  %1667 = vst [vmem:[#allocation6 + $0x168] sm:$0xff] %v1603_v59 }
 0x3ef   :  { %v1920_v9 = vsel %vm9710_vm1, %v7076_v45, 0.0  ;;  %v7129_v10 = vmul.f32 1.1111112, %v1598_v52  ;;  %v1350_v8 = vsub.f32 1.0, %v1349_v30  ;;  %v1359_v44 = vand.u32 2147483648, %v7018_v38  ;;  %1987 = vst [vmem:[#allocation7 + $0x168] sm:$0xff] %v1923_v48 }
 0x3f0   :  { %vm9925_vm10 = vcmp.ge.f32.partialorder %v6429_v0, 0.1  ;;  %4324 = vmatpush.xpose.msk.msra.mxu1 %vm1803_vm8, %v6832_v5  ;;  %vm1790_vm3 = vcmp.ge.f32.partialorder %v7112_v56, 0.1  ;;  %v1376_v51 = vsel %vm1373_vm9, %v1375_v55, %v1371_v18  ;;  %1664 = vst [vmem:[#allocation6 + $0x150] sm:$0xff] %v1600_v36  ;;  %v1921_v59 = vsel %vm9709_vm7, %v7107_v35, 0.0  ;;  %vm7164_vm8 = vmor %vm1338_vm4, %vm1339_vm12 }
 0x3f1   :  { %4308 = vmatpush.xpose.msk.msra.mxu0 %vm9925_vm10, %v6447_v57  ;;  %v7148_v43 = vmul.f32 1.1111112, %v7115_v40  ;;  %v1596_v47 = vmul.f32 %v9926_v20, %v1376_v51  ;;  %v7154_v0 = vld [vmem:[%s9651_s5 + $0x130] sm:$0xff]  ;;  %v37_v5 = vld [vmem:[%s9647_s1 + $0x28] sm:$0xff]  ;;  %v1351_v25 = vmul.f32 %v7095_v46, %v1350_v8  ;;  %vm1354_vm6 = vweird.f32 %v7095_v46  ;;  %1984 = vst [vmem:[#allocation7 + $0x150] sm:$0xff] %v1920_v9 }
 0x3f2   :  { %v9927_v57 = vld [vmem:[#allocation47_spill] sm:$0xff]  ;;  %v1357_v62 = vand.u32 2147483647, %v7018_v38  ;;  %vm1791_vm9 = vcmp.ge.f32.partialorder %v7134_v14, 0.1  ;;  %vm9930_vm10 = vcmask 261120   ;;  %v1341_v27 = vsel %vm7164_vm8, %v6740_v60, %v1337_v54 }
 0x3f3   :  { %v1597_v12 = vmul.f32 %v9927_v57, %v1376_v51  ;;  %4200 = vmatmul.msk.f32.gmra.mxu0 %vm9930_vm10, %v37_v5  ;;  %vm9931_vm7 = vmmov %vm9930_vm10  ;;  %v9932_v31 = vand.u32 2147483647, %v6634_v37  ;;  %1665 = vst [vmem:[#allocation6 + $0x158] sm:$0xff] %v1601_v58  ;;  %v1918_v6 = vsel %vm1790_vm3, %v7129_v10, 0.0  ;;  %v7179_v19 = vmul.f32 1.1111112, %v1596_v47 }
 0x3f4   :  { %4206 = vmatmul.msk.f32.gmra.mxu1 %vm9931_vm7, %v37_v5  ;;  %v1352_v22 = vadd.f32 %v7095_v46, %v1351_v25  ;;  %vm1353_vm4 = vweird.f32 %v7018_v38  ;;  %1985 = vst [vmem:[#allocation7 + $0x158] sm:$0xff] %v1921_v59  ;;  %vm1788_vm12 = vcmp.ge.f32.partialorder %v7154_v0, 0.1  ;;  %v7199_v58 = vpop.eup %4737  ;;  %v1360_v38 = vor.u32 1.1754944e-38, %v1359_v44  ;;  %v7230_v54 = vld [vmem:[%s9651_s5 + $0x128] sm:$0xff]  ;;  %v7250_v8 = vld [vmem:[%s9651_s5 + $0x110] sm:$0xff] }
 0x3f5   :  { %vm1343_vm1 = vcmp.eq.f32.partialorder %v9932_v31, 8.507059e+37  ;;  %4309 = vmatpush.xpose.msk.msra.mxu0 %vm1800_vm11, %v6851_v32  ;;  %4325 = vmatpush.xpose.msk.msra.mxu1 %vm1801_vm13, %v6911_v26  ;;  %vm7203_vm7 = vmor %vm1353_vm4, %vm1354_vm6  ;;  %1662 = vst [vmem:[#allocation6 + $0x140] sm:$0xff] %v1598_v52  ;;  %v1919_v11 = vsel %vm1791_vm9, %v7148_v43, 0.0  ;;  %v7210_v32 = vmul.f32 1.1111112, %v1597_v12  ;;  %v7214_v26 = vpop.f32.mrf.mxu1  ;;  %vm1358_vm11 = vcmp.eq.f32.partialorder %v1357_v62, 8.507059e+37 }
 0x3f6   :  { %v1346_v37 = vsel %vm1343_vm1, %v6729_v7, %v1341_v27  ;;  %v1319_v7 = vmul.f32 %v7199_v58, %v7119_v23  ;;  %1982 = vst [vmem:[#allocation7 + $0x140] sm:$0xff] %v1918_v6  ;;  %vm1789_vm13 = vcmp.ge.f32.partialorder %v7184_v15, 0.1  ;;  %v1356_v33 = vsel %vm7203_vm7, %v7095_v46, %v1352_v22  ;;  %v7225_v52 = vld [vmem:[%s9651_s5 + $0x120] sm:$0xff]  ;;  %v9935_v46 = vld [vmem:[#allocation40_spill] sm:$0xff]  ;;  %v9940_v27 = vld [vmem:[#allocation15_spill] sm:$0xff] }
 0x3f7   :  { %v1327_v63 = vand.u32 2147483647, %v7119_v23  ;;  %1663 = vst [vmem:[#allocation6 + $0x148] sm:$0xff] %v7115_v40  ;;  %v1916_v48 = vsel %vm1788_vm12, %v7179_v19, 0.0  ;;  %v1361_v13 = vsel %vm1358_vm11, %v1360_v38, %v1356_v33  ;;  %v1592_v55 = vmul.f32 %v9935_v46, %v1346_v37  ;;  %v1721_v51 = vld [vmem:[%s9651_s5 + $0x118] sm:$0xff]  ;;  %v1718_v31 = vld [vmem:[%s9651_s5 + $0x100] sm:$0xff] }
 0x3f8   :  { %v1320_v30 = vsub.f32 1.0, %v1319_v7  ;;  %v1329_v18 = vand.u32 2147483648, %v7119_v23  ;;  %1983 = vst [vmem:[#allocation7 + $0x148] sm:$0xff] %v1919_v11  ;;  %v1594_v40 = vmul.f32 %v6249_v21, %v1361_v13  ;;  %v1595_v9 = vmul.f32 %v6251_v42, %v1361_v13 }
 0x3f9   :  { %4310 = vmatpush.xpose.msk.msra.mxu0 %vm1798_vm2, %v6920_v24  ;;  %4326 = vmatpush.xpose.msk.msra.mxu1 %vm1799_vm15, %v6936_v39  ;;  %1660 = vst [vmem:[#allocation6 + $0x130] sm:$0xff] %v1596_v47  ;;  %v1917_v29 = vsel %vm1789_vm13, %v7210_v32, 0.0  ;;  %vm1786_vm2 = vcmp.ge.f32.partialorder %v7225_v52, 0.1  ;;  %vm1787_vm1 = vcmp.ge.f32.partialorder %v7230_v54, 0.1  ;;  %v1593_v24 = vmul.f32 %v9936_v17, %v1346_v37  ;;  %v75_v47 = vpop.permute.xlu2 %74 }
 0x3fa   :  { %v1321_v21 = vmul.f32 %v7199_v58, %v1320_v30  ;;  %vm1324_vm15 = vweird.f32 %v7199_v58  ;;  %1980 = vst [vmem:[#allocation7 + $0x130] sm:$0xff] %v1916_v48  ;;  %v1850_v42 = vmul.f32 1.1111112, %v1594_v40  ;;  %v1851_v39 = vmul.f32 1.1111112, %v1595_v9 }
 0x3fb   :  { %1661 = vst [vmem:[#allocation6 + $0x138] sm:$0xff] %v1597_v12  ;;  %v1848_v44 = vmul.f32 1.1111112, %v1592_v55  ;;  %vm1323_vm8 = vweird.f32 %v7119_v23  ;;  %vm9937_vm6 = vcmp.ge.f32.partialorder %v6925_v4, 0.1  ;;  %v1330_v23 = vor.u32 1.1754944e-38, %v1329_v18 }
 0x3fc   :  { %v1322_v59 = vadd.f32 %v7199_v58, %v1321_v21  ;;  %1981 = vst [vmem:[#allocation7 + $0x138] sm:$0xff] %v1917_v29  ;;  %v1914_v20 = vsel %vm1786_vm2, %v1850_v42, 0.0  ;;  %vm1784_vm10 = vcmp.ge.f32.partialorder %v7250_v8, 0.1  ;;  %vm7276_vm4 = vmor %vm1323_vm8, %vm1324_vm15  ;;  %v1915_v4 = vsel %vm1787_vm1, %v1851_v39, 0.0 }
 0x3fd   :  { %4311 = vmatpush.xpose.msk.msra.mxu0 %vm9937_vm6, %v6970_v16  ;;  %4327 = vmatpush.xpose.msk.msra.mxu1 %vm1797_vm5, %v7001_v2  ;;  %1658 = vst [vmem:[#allocation6 + $0x120] sm:$0xff] %v1594_v40  ;;  %v1849_v16 = vmul.f32 1.1111112, %v1593_v24  ;;  %vm1328_vm5 = vcmp.eq.f32.partialorder %v1327_v63, 8.507059e+37  ;;  %vm1785_vm7 = vcmp.ge.f32.partialorder %v1721_v51, 0.1  ;;  %v165_v2 = vpop.f32.mrf.mxu1  ;;  %v131_v36 = vadd.f32 %v130_v28, %v75_v47 }
 0x3fe   :  { %1978 = vst [vmem:[#allocation7 + $0x120] sm:$0xff] %v1914_v20  ;;  %v1326_v12 = vsel %vm7276_vm4, %v7199_v58, %v1322_v59  ;;  %v1912_v5 = vsel %vm1784_vm10, %v1848_v44, 0.0  ;;  %v166_v25 = vadd.f32 %v165_v2, %v75_v47  ;;  %v1719_v58 = vld [vmem:[%s9651_s5 + $0x108] sm:$0xff]  ;;  %vm9942_vm11 = vcmp.ge.f32.partialorder %v7081_v1, 0.1 }
 0x3ff   :  { %1659 = vst [vmem:[#allocation6 + $0x128] sm:$0xff] %v1595_v9  ;;  %v1331_v62 = vsel %vm1328_vm5, %v1330_v23, %v1326_v12  ;;  %v1913_v37 = vsel %vm1785_vm7, %v1849_v16, 0.0  ;;  %2022 = vmatmul.f32.vlgmr.msrb.gmra.mxu0 %v131_v36  ;;  %vm1783_vm15 = vcmp.ge.f32.partialorder %v1719_v58, 0.1 }
 0x400   :  { %1979 = vst [vmem:[#allocation7 + $0x128] sm:$0xff] %v1915_v4  ;;  %v1590_v6 = vmul.f32 %v6268_v50, %v1331_v62  ;;  %v1591_v22 = vmul.f32 %v9940_v27, %v1331_v62  ;;  %2042 = vmatmul.f32.vlgmr.msrb.gmra.mxu1 %v166_v25 }
 0x401   :  { %4312 = vmatpush.xpose.msk.msra.mxu0 %vm1794_vm0, %v7051_v34  ;;  %4328 = vmatpush.xpose.msk.msra.mxu1 %vm1795_vm14, %v7057_v49  ;;  %1656 = vst [vmem:[#allocation6 + $0x110] sm:$0xff] %v1592_v55  ;;  %vm1782_vm0 = vcmp.ge.f32.partialorder %v1718_v31, 0.1  ;;  %vm9941_vm14 = vcmp.ge.f32.partialorder %v7062_v61, 0.1  ;;  %v70_v49 = vpop.permute.xlu0 %69 }
 0x402   :  { %1976 = vst [vmem:[#allocation7 + $0x110] sm:$0xff] %v1912_v5  ;;  %v1846_v3 = vmul.f32 1.1111112, %v1590_v6  ;;  %v1847_v41 = vmul.f32 1.1111112, %v1591_v22  ;;  %v128_v61 = vadd.f32 %v7212_v53, %v70_v49 }
 0x403   :  { %1657 = vst [vmem:[#allocation6 + $0x118] sm:$0xff] %v1593_v24 }
 0x404   :  { %1977 = vst [vmem:[#allocation7 + $0x118] sm:$0xff] %v1913_v37  ;;  %v1910_v50 = vsel %vm1782_vm0, %v1846_v3, 0.0  ;;  %v1911_v34 = vsel %vm1783_vm15, %v1847_v41, 0.0 }
 0x405   :  { %4313 = vmatpush.xpose.msk.msra.mxu0 %vm9941_vm14, %v7076_v45  ;;  %4329 = vmatpush.xpose.msk.msra.mxu1 %vm9942_vm11, %v7107_v35  ;;  %175 = vst [vmem:[#allocation4] sm:$0xff] %v131_v36  ;;  %v163_v45 = vadd.f32 %v7214_v26, %v70_v49 }
 0x406   :  { %176 = vst [vmem:[#allocation4 + $0x8] sm:$0xff] %v166_v25 }
 0x407   :  { %1654 = vst [vmem:[#allocation6 + $0x100] sm:$0xff] %v1590_v6 }
 0x408   :  { %1974 = vst [vmem:[#allocation7 + $0x100] sm:$0xff] %v1910_v50 }
 0x409   :  { %4314 = vmatpush.xpose.msk.msra.mxu0 %vm1790_vm3, %v7129_v10  ;;  %4330 = vmatpush.xpose.msk.msra.mxu1 %vm1791_vm9, %v7148_v43  ;;  %1655 = vst [vmem:[#allocation6 + $0x108] sm:$0xff] %v1591_v22  ;;  %vm9943_vm3 = vcmask 64512  }
 0x40a   :  { %1975 = vst [vmem:[#allocation7 + $0x108] sm:$0xff] %v1911_v34  ;;  %vm9944_vm9 = vmmov %vm9943_vm3 }
 0x40d   :  { %4315 = vmatpush.xpose.msk.msra.mxu0 %vm1788_vm12, %v7179_v19  ;;  %4331 = vmatpush.xpose.msk.msra.mxu1 %vm1789_vm13, %v7210_v32  ;;  %vm9945_vm12 = vmmov %vm9943_vm3 }
 0x40e   :  { %vm9946_vm13 = vmmov %vm9943_vm3 }
 0x411   :  { %4316 = vmatpush.xpose.msk.msra.mxu0 %vm1786_vm2, %v1850_v42  ;;  %4332 = vmatpush.xpose.msk.msra.mxu1 %vm1787_vm1, %v1851_v39  ;;  %vm9947_vm2 = vmmov %vm9943_vm3 }
 0x412   :  { %vm9948_vm1 = vmmov %vm9947_vm2 }
 0x413   :  { %vm9949_vm8 = vmmov %vm9948_vm1 }
 0x414   :  { %vm9950_vm6 = vmmov %vm9948_vm1 }
 0x415   :  { %4317 = vmatpush.xpose.msk.msra.mxu0 %vm1784_vm10, %v1848_v44  ;;  %4333 = vmatpush.xpose.msk.msra.mxu1 %vm1785_vm7, %v1849_v16  ;;  %vm9951_vm10 = vmmov %vm9948_vm1 }
 0x416   :  { %vm9952_vm4 = vmmov %vm9948_vm1 }
 0x417   :  { %vm9953_vm5 = vmmov %vm9948_vm1 }
 0x418   :  { %vm9954_vm7 = vmmov %vm9948_vm1 }
 0x419   :  { %4318 = vmatpush.xpose.msk.msra.mxu0 %vm1782_vm0, %v1846_v3  ;;  %4334 = vmatpush.xpose.msk.msra.mxu1 %vm1783_vm15, %v1847_v41  ;;  %vm9955_vm0 = vmmov %vm9948_vm1 }
 0x41a   :  { %vm9956_vm14 = vmmov %vm9955_vm0 }
 0x41b   :  { %vm9957_vm11 = vmmov %vm9955_vm0 }
 0x41c   :  { %2062 = vmatmul.f32.vlgmr.msra.gmra.mxu0 %v131_v36  ;;  %2082 = vmatmul.f32.vlgmr.msra.gmra.mxu1 %v166_v25  ;;  %vm9958_vm15 = vmmov %vm9955_vm0 }
 0x41d   :  { %2261 = vmatpush.msrb.mxu0 %v128_v61  ;;  %2374 = vmatpush.msrb.mxu1 %v163_v45 }
 0x46c   :  { %v2134_v46 = vpop.trf.xlu2 }
 0x470   :  { %v7359_v53 = vpop.f32.mrf.mxu0 }
 0x471   :  { %9969 = vst [vmem:[#allocation16_spill] sm:$0xff] %v7359_v53  ;;  %v7361_v26 = vpop.f32.mrf.mxu1 }
 0x472   :  { %9970 = vst [vmem:[#allocation17_spill] sm:$0xff] %v7361_v26 }
 0x474   :  { %v2135_v9 = vpop.trf.xlu2 }
 0x477   :  { %v2102_v1 = vpop.trf.xlu0 }
 0x478   :  { %4335 = vmatmul.msk.f32.vlgmr.msrb.gmra.mxu0 %vm9943_vm3, %v2102_v1  ;;  %4367 = vmatmul.msk.f32.vlgmr.msrb.gmra.mxu1 %vm9944_vm9, %v2102_v1  ;;  %vm9959_vm3 = vmmov %vm9955_vm0 }
 0x479   :  { %vm9960_vm9 = vmmov %vm9955_vm0 }
 0x47c   :  { %v7365_v33 = vpop.f32.mrf.mxu0  ;;  %v2136_v21 = vpop.trf.xlu2 }
 0x47d   :  { %9973 = vst [vmem:[#allocation18_spill] sm:$0xff] %v7365_v33  ;;  %v7367_v52 = vpop.f32.mrf.mxu1 }
 0x47e   :  { %9974 = vst [vmem:[#allocation32_spill] sm:$0xff] %v7367_v52 }
 0x47f   :  { %v2103_v35 = vpop.trf.xlu0 }
 0x480   :  { %4336 = vmatmul.msk.f32.gmra.mxu0 %vm9945_vm12, %v2103_v35  ;;  %4368 = vmatmul.msk.f32.gmra.mxu1 %vm9946_vm13, %v2103_v35  ;;  %vm9961_vm12 = vmmov %vm9955_vm0 }
 0x481   :  { %vm9962_vm13 = vmmov %vm9955_vm0 }
 0x484   :  { %v2137_v25 = vpop.trf.xlu2 }
 0x487   :  { %v2104_v56 = vpop.trf.xlu0 }
 0x488   :  { %4337 = vmatmul.msk.f32.gmra.mxu0 %vm9947_vm2, %v2104_v56  ;;  %4369 = vmatmul.msk.f32.gmra.mxu1 %vm9948_vm1, %v2104_v56  ;;  %vm9963_vm2 = vmmov %vm9955_vm0 }
 0x489   :  { %vm9964_vm1 = vmmov %vm9955_vm0 }
 0x48c   :  { %v2138_v22 = vpop.trf.xlu2 }
 0x48f   :  { %v2105_v10 = vpop.trf.xlu0 }
 0x490   :  { %4338 = vmatmul.msk.f32.gmra.mxu0 %vm9949_vm8, %v2105_v10  ;;  %4370 = vmatmul.msk.f32.gmra.mxu1 %vm9950_vm6, %v2105_v10  ;;  %vm9965_vm8 = vmmov %vm9955_vm0 }
 0x491   :  { %vm9966_vm6 = vmmov %vm9955_vm0 }
 0x494   :  { %v2139_v50 = vpop.trf.xlu2 }
 0x497   :  { %v2106_v14 = vpop.trf.xlu0 }
 0x498   :  { %4339 = vmatmul.msk.f32.gmra.mxu0 %vm9951_vm10, %v2106_v14  ;;  %4371 = vmatmul.msk.f32.gmra.mxu1 %vm9952_vm4, %v2106_v14  ;;  %vm9967_vm10 = vmmov %vm9955_vm0 }
 0x499   :  { %vm9968_vm4 = vmmov %vm9955_vm0  ;;  %v7371_v63 = vpop.f32.mrf.mxu0  ;;  %v7373_v48 = vpop.f32.mrf.mxu1 }
 0x49a   :  { %9976 = vst [vmem:[#allocation29_spill] sm:$0xff] %v7371_v63 }
 0x49b   :  { %9977 = vst [vmem:[#allocation27_spill] sm:$0xff] %v7373_v48 }
 0x49c   :  { %v2140_v1 = vpop.trf.xlu2 }
 0x49f   :  { %v2107_v43 = vpop.trf.xlu0 }
 0x4a0   :  { %4340 = vmatmul.msk.f32.gmra.mxu0 %vm9953_vm5, %v2107_v43  ;;  %4372 = vmatmul.msk.f32.gmra.mxu1 %vm9954_vm7, %v2107_v43  ;;  %vm9971_vm5 = vmmov %vm9955_vm0 }
 0x4a1   :  { %vm9972_vm7 = vmmov %vm9955_vm0 }
 0x4a4   :  { %v2141_v43 = vpop.trf.xlu2 }
 0x4a7   :  { %v2108_v0 = vpop.trf.xlu0 }
 0x4a8   :  { %4341 = vmatmul.msk.f32.gmra.mxu0 %vm9955_vm0, %v2108_v0  ;;  %4373 = vmatmul.msk.f32.gmra.mxu1 %vm9956_vm14, %v2108_v0  ;;  %vm9975_vm14 = vmmov %vm9955_vm0 }
 0x4af   :  { %v2109_v19 = vpop.trf.xlu0 }
 0x4b0   :  { %4342 = vmatmul.msk.f32.gmra.mxu0 %vm9957_vm11, %v2109_v19  ;;  %4374 = vmatmul.msk.f32.gmra.mxu1 %vm9958_vm15, %v2109_v19  ;;  %vm9978_vm11 = vmmov %vm9955_vm0 }
 0x4b1   :  { %vm9979_vm15 = vmmov %vm9955_vm0 }
 0x4b7   :  { %v2110_v15 = vpop.trf.xlu0 }
 0x4b8   :  { %4343 = vmatmul.msk.f32.gmra.mxu0 %vm9959_vm3, %v2110_v15  ;;  %4375 = vmatmul.msk.f32.gmra.mxu1 %vm9960_vm9, %v2110_v15  ;;  %vm9980_vm3 = vmmov %vm9955_vm0 }
 0x4b9   :  { %vm9981_vm9 = vmmov %vm9955_vm0 }
 0x4bf   :  { %v2111_v60 = vpop.trf.xlu0 }
 0x4c0   :  { %4344 = vmatmul.msk.f32.gmra.mxu0 %vm9961_vm12, %v2111_v60  ;;  %4376 = vmatmul.msk.f32.gmra.mxu1 %vm9962_vm13, %v2111_v60  ;;  %vm9982_vm12 = vmmov %vm9955_vm0 }
 0x4c1   :  { %vm9983_vm13 = vmmov %vm9955_vm0 }
 0x4c7   :  { %v2112_v38 = vpop.trf.xlu0 }
 0x4c8   :  { %4345 = vmatmul.msk.f32.gmra.mxu0 %vm9963_vm2, %v2112_v38  ;;  %4377 = vmatmul.msk.f32.gmra.mxu1 %vm9964_vm1, %v2112_v38  ;;  %vm9985_vm2 = vmmov %vm9955_vm0  ;;  %v2142_v38 = vpop.trf.xlu2 }
 0x4c9   :  { %vm9986_vm1 = vmmov %vm9955_vm0 }
 0x4cf   :  { %v2113_v11 = vpop.trf.xlu0 }
 0x4d0   :  { %4346 = vmatmul.msk.f32.gmra.mxu0 %vm9965_vm8, %v2113_v11  ;;  %4378 = vmatmul.msk.f32.gmra.mxu1 %vm9966_vm6, %v2113_v11  ;;  %vm9987_vm8 = vmmov %vm9955_vm0 }
 0x4d1   :  { %vm9988_vm6 = vmmov %vm9955_vm0 }
 0x4d7   :  { %v2114_v32 = vpop.trf.xlu0 }
 0x4d8   :  { %4347 = vmatmul.msk.f32.gmra.mxu0 %vm9967_vm10, %v2114_v32  ;;  %4379 = vmatmul.msk.f32.gmra.mxu1 %vm9968_vm4, %v2114_v32  ;;  %vm9990_vm10 = vmmov %vm9955_vm0 }
 0x4d9   :  { %vm9991_vm4 = vmmov %vm9955_vm0 }
 0x4df   :  { %v2115_v7 = vpop.trf.xlu0 }
 0x4e0   :  { %4348 = vmatmul.msk.f32.gmra.mxu0 %vm9971_vm5, %v2115_v7  ;;  %4380 = vmatmul.msk.f32.gmra.mxu1 %vm9972_vm7, %v2115_v7  ;;  %vm9992_vm5 = vmmov %vm9955_vm0 }
 0x4e1   :  { %vm9993_vm7 = vmmov %vm9955_vm0 }
 0x4e7   :  { %v2116_v54 = vpop.trf.xlu0 }
 0x4e8   :  { %4349 = vmatmul.msk.f32.gmra.mxu0 %vm9955_vm0, %v2116_v54  ;;  %4381 = vmatmul.msk.f32.gmra.mxu1 %vm9975_vm14, %v2116_v54  ;;  %vm9994_vm14 = vmmov %vm9955_vm0 }
 0x4ef   :  { %v2117_v13 = vpop.trf.xlu0 }
 0x4f0   :  { %4350 = vmatmul.msk.f32.gmra.mxu0 %vm9978_vm11, %v2117_v13  ;;  %4382 = vmatmul.msk.f32.gmra.mxu1 %vm9979_vm15, %v2117_v13  ;;  %vm9995_vm11 = vmmov %vm9955_vm0  ;;  %v2143_v13 = vpop.trf.xlu2 }
 0x4f1   :  { %vm9996_vm15 = vmmov %vm9955_vm0 }
 0x4f5   :  { %v2263_v55 = vpop.f32.mrf.mxu0  ;;  %v2376_v30 = vpop.f32.mrf.mxu1 }
 0x4f6   :  { %v7377_v18 = vmul.f32 2.3784142, %v2263_v55  ;;  %v7379_v40 = vmul.f32 2.3784142, %v2376_v30 }
 0x4f8   :  { %2537 = vst [vmem:[#allocation9 + $0x200] sm:$0xff] %v7377_v18  ;;  %4351 = vmatmul.msk.f32.gmra.mxu0 %vm9980_vm3, %v2134_v46  ;;  %4383 = vmatmul.msk.f32.gmra.mxu1 %vm9981_vm9, %v2134_v46  ;;  %vm9997_vm3 = vmmov %vm9955_vm0 }
 0x4f9   :  { %2538 = vst [vmem:[#allocation9 + $0x208] sm:$0xff] %v7379_v40  ;;  %vm9998_vm9 = vmmov %vm9955_vm0 }
 0x4fd   :  { %v2266_v8 = vpop.f32.mrf.mxu0  ;;  %v2379_v29 = vpop.f32.mrf.mxu1 }
 0x4fe   :  { %v7385_v17 = vmul.f32 2.3784142, %v2266_v8  ;;  %v7387_v24 = vmul.f32 2.3784142, %v2379_v29  ;;  %v2144_v8 = vpop.trf.xlu2 }
 0x500   :  { %2539 = vst [vmem:[#allocation9 + $0x210] sm:$0xff] %v7385_v17  ;;  %4352 = vmatmul.msk.f32.gmra.mxu0 %vm9982_vm12, %v2135_v9  ;;  %4384 = vmatmul.msk.f32.gmra.mxu1 %vm9983_vm13, %v2135_v9  ;;  %vm9999_vm12 = vmmov %vm9955_vm0 }
 0x501   :  { %2540 = vst [vmem:[#allocation9 + $0x218] sm:$0xff] %v7387_v24  ;;  %vm10000_vm13 = vmmov %vm9955_vm0 }
 0x505   :  { %v2269_v42 = vpop.f32.mrf.mxu0  ;;  %v2382_v39 = vpop.f32.mrf.mxu1 }
 0x506   :  { %v7393_v44 = vmul.f32 2.3784142, %v2269_v42  ;;  %v7395_v51 = vmul.f32 2.3784142, %v2382_v39 }
 0x508   :  { %9984 = vst [vmem:[#allocation23_spill] sm:$0xff] %v7393_v44  ;;  %4353 = vmatmul.msk.f32.gmra.mxu0 %vm9985_vm2, %v2136_v21  ;;  %4385 = vmatmul.msk.f32.gmra.mxu1 %vm9986_vm1, %v2136_v21  ;;  %vm10001_vm2 = vmmov %vm9955_vm0 }
 0x509   :  { %2541 = vst [vmem:[#allocation9 + $0x220] sm:$0xff] %v7393_v44  ;;  %vm10002_vm1 = vmmov %vm9955_vm0 }
 0x50a   :  { %2542 = vst [vmem:[#allocation9 + $0x228] sm:$0xff] %v7395_v51 }
 0x50d   :  { %v2272_v59 = vpop.f32.mrf.mxu0  ;;  %v2385_v20 = vpop.f32.mrf.mxu1 }
 0x50e   :  { %v7401_v47 = vmul.f32 2.3784142, %v2272_v59  ;;  %v7403_v57 = vmul.f32 2.3784142, %v2385_v20  ;;  %v2145_v20 = vpop.trf.xlu2 }
 0x510   :  { %2543 = vst [vmem:[#allocation9 + $0x230] sm:$0xff] %v7401_v47  ;;  %4354 = vmatmul.msk.f32.gmra.mxu0 %vm9987_vm8, %v2137_v25  ;;  %4386 = vmatmul.msk.f32.gmra.mxu1 %vm9988_vm6, %v2137_v25  ;;  %vm10003_vm8 = vmmov %vm9955_vm0 }
 0x511   :  { %2544 = vst [vmem:[#allocation9 + $0x238] sm:$0xff] %v7403_v57  ;;  %vm10004_vm6 = vmmov %vm9955_vm0 }
 0x515   :  { %v2275_v23 = vpop.f32.mrf.mxu0  ;;  %v2388_v4 = vpop.f32.mrf.mxu1 }
 0x516   :  { %v7407_v16 = vmul.f32 2.3784142, %v2275_v23  ;;  %v7409_v28 = vmul.f32 2.3784142, %v2388_v4 }
 0x518   :  { %2545 = vst [vmem:[#allocation9 + $0x240] sm:$0xff] %v7407_v16  ;;  %4355 = vmatmul.msk.f32.gmra.mxu0 %vm9990_vm10, %v2138_v22  ;;  %4387 = vmatmul.msk.f32.gmra.mxu1 %vm9991_vm4, %v2138_v22  ;;  %vm10005_vm10 = vmmov %vm9955_vm0 }
 0x519   :  { %2546 = vst [vmem:[#allocation9 + $0x248] sm:$0xff] %v7409_v28  ;;  %vm10006_vm4 = vmmov %vm9955_vm0 }
 0x51d   :  { %v2278_v2 = vpop.f32.mrf.mxu0  ;;  %v2391_v12 = vpop.f32.mrf.mxu1 }
 0x51e   :  { %v7413_v5 = vmul.f32 2.3784142, %v2278_v2  ;;  %v7415_v36 = vmul.f32 2.3784142, %v2391_v12 }
 0x520   :  { %2547 = vst [vmem:[#allocation9 + $0x250] sm:$0xff] %v7413_v5  ;;  %4356 = vmatmul.msk.f32.gmra.mxu0 %vm9992_vm5, %v2139_v50  ;;  %4388 = vmatmul.msk.f32.gmra.mxu1 %vm9993_vm7, %v2139_v50  ;;  %vm10007_vm5 = vmmov %vm9955_vm0 }
 0x521   :  { %2548 = vst [vmem:[#allocation9 + $0x258] sm:$0xff] %v7415_v36  ;;  %vm10008_vm7 = vmmov %vm9955_vm0 }
 0x525   :  { %v2281_v62 = vpop.f32.mrf.mxu0  ;;  %v2394_v31 = vpop.f32.mrf.mxu1 }
 0x526   :  { %v7421_v6 = vmul.f32 2.3784142, %v2281_v62  ;;  %v7423_v27 = vmul.f32 2.3784142, %v2394_v31  ;;  %v2146_v31 = vpop.trf.xlu2 }
 0x528   :  { %9989 = vst [vmem:[#allocation28_spill] sm:$0xff] %v7421_v6  ;;  %4357 = vmatmul.msk.f32.gmra.mxu0 %vm9955_vm0, %v2140_v1  ;;  %4389 = vmatmul.msk.f32.gmra.mxu1 %vm9994_vm14, %v2140_v1  ;;  %vm10011_vm14 = vmmov %vm9955_vm0 }
 0x529   :  { %2549 = vst [vmem:[#allocation9 + $0x260] sm:$0xff] %v7421_v6 }
 0x52a   :  { %2550 = vst [vmem:[#allocation9 + $0x268] sm:$0xff] %v7423_v27 }
 0x52d   :  { %v2284_v37 = vpop.f32.mrf.mxu0  ;;  %v2397_v58 = vpop.f32.mrf.mxu1 }
 0x52e   :  { %v7429_v3 = vmul.f32 2.3784142, %v2284_v37  ;;  %v7431_v41 = vmul.f32 2.3784142, %v2397_v58  ;;  %v2147_v1 = vpop.trf.xlu2 }
 0x530   :  { %2551 = vst [vmem:[#allocation9 + $0x270] sm:$0xff] %v7429_v3  ;;  %4358 = vmatmul.msk.f32.gmra.mxu0 %vm9995_vm11, %v2141_v43  ;;  %4390 = vmatmul.msk.f32.gmra.mxu1 %vm9996_vm15, %v2141_v43  ;;  %vm10014_vm11 = vmmov %vm9955_vm0 }
 0x531   :  { %2552 = vst [vmem:[#allocation9 + $0x278] sm:$0xff] %v7431_v41  ;;  %vm10015_vm15 = vmmov %vm9955_vm0 }
 0x535   :  { %v2287_v34 = vpop.f32.mrf.mxu0  ;;  %v2400_v49 = vpop.f32.mrf.mxu1 }
 0x536   :  { %v7437_v61 = vmul.f32 2.3784142, %v2287_v34  ;;  %v7439_v45 = vmul.f32 2.3784142, %v2400_v49 }
 0x538   :  { %2553 = vst [vmem:[#allocation9 + $0x280] sm:$0xff] %v7437_v61  ;;  %4359 = vmatmul.msk.f32.gmra.mxu0 %vm9997_vm3, %v2142_v38  ;;  %4391 = vmatmul.msk.f32.gmra.mxu1 %vm9998_vm9, %v2142_v38  ;;  %v2601_v38 = vmax.f32 %v7377_v18, %v7379_v40 }
 0x539   :  { %2554 = vst [vmem:[#allocation9 + $0x288] sm:$0xff] %v7439_v45 }
 0x53d   :  { %v2290_v35 = vpop.f32.mrf.mxu0  ;;  %v2403_v56 = vpop.f32.mrf.mxu1 }
 0x53e   :  { %v7445_v10 = vmul.f32 2.3784142, %v2290_v35  ;;  %v7447_v14 = vmul.f32 2.3784142, %v2403_v56 }
 0x540   :  { %2555 = vst [vmem:[#allocation9 + $0x290] sm:$0xff] %v7445_v10  ;;  %4360 = vmatmul.msk.f32.gmra.mxu0 %vm9999_vm12, %v2143_v13  ;;  %4392 = vmatmul.msk.f32.gmra.mxu1 %vm10000_vm13, %v2143_v13 }
 0x541   :  { %2556 = vst [vmem:[#allocation9 + $0x298] sm:$0xff] %v7447_v14 }
 0x545   :  { %v2293_v0 = vpop.f32.mrf.mxu0  ;;  %v2406_v19 = vpop.f32.mrf.mxu1 }
 0x546   :  { %v7453_v15 = vmul.f32 2.3784142, %v2293_v0  ;;  %v7455_v60 = vmul.f32 2.3784142, %v2406_v19 }
 0x548   :  { %2557 = vst [vmem:[#allocation9 + $0x2a0] sm:$0xff] %v7453_v15  ;;  %4361 = vmatmul.msk.f32.gmra.mxu0 %vm10001_vm2, %v2144_v8  ;;  %4393 = vmatmul.msk.f32.gmra.mxu1 %vm10002_vm1, %v2144_v8  ;;  %v2631_v19 = vmax.f32 %v7453_v15, %v7455_v60  ;;  %v2628_v8 = vmax.f32 %v7445_v10, %v7447_v14 }
 0x549   :  { %2558 = vst [vmem:[#allocation9 + $0x2a8] sm:$0xff] %v7455_v60 }
 0x54d   :  { %v2296_v11 = vpop.f32.mrf.mxu0  ;;  %v2409_v32 = vpop.f32.mrf.mxu1 }
 0x54e   :  { %v7461_v7 = vmul.f32 2.3784142, %v2296_v11  ;;  %v7463_v54 = vmul.f32 2.3784142, %v2409_v32  ;;  %v2148_v11 = vpop.trf.xlu2 }
 0x550   :  { %2559 = vst [vmem:[#allocation9 + $0x2b0] sm:$0xff] %v7461_v7  ;;  %4362 = vmatmul.msk.f32.gmra.mxu0 %vm10003_vm8, %v2145_v20  ;;  %4394 = vmatmul.msk.f32.gmra.mxu1 %vm10004_vm6, %v2145_v20  ;;  %v2634_v34 = vmax.f32 %v7461_v7, %v7463_v54 }
 0x551   :  { %2560 = vst [vmem:[#allocation9 + $0x2b8] sm:$0xff] %v7463_v54 }
 0x555   :  { %v2299_v46 = vpop.f32.mrf.mxu0  ;;  %v2412_v55 = vpop.f32.mrf.mxu1 }
 0x556   :  { %v7469_v30 = vmul.f32 2.3784142, %v2299_v46  ;;  %v7471_v9 = vmul.f32 2.3784142, %v2412_v55 }
 0x558   :  { %2561 = vst [vmem:[#allocation9 + $0x2c0] sm:$0xff] %v7469_v30  ;;  %v2637_v25 = vmax.f32 %v7469_v30, %v7471_v9  ;;  %4363 = vmatmul.msk.f32.gmra.mxu0 %vm10005_vm10, %v2146_v31  ;;  %4395 = vmatmul.msk.f32.gmra.mxu1 %vm10006_vm4, %v2146_v31  ;;  %v2622_v31 = vmax.f32 %v7429_v3, %v7431_v41 }
 0x559   :  { %2562 = vst [vmem:[#allocation9 + $0x2c8] sm:$0xff] %v7471_v9 }
 0x55d   :  { %v2302_v29 = vpop.f32.mrf.mxu0  ;;  %v2415_v21 = vpop.f32.mrf.mxu1 }
 0x55e   :  { %v7477_v42 = vmul.f32 2.3784142, %v2302_v29  ;;  %v7479_v39 = vmul.f32 2.3784142, %v2415_v21  ;;  %v2149_v29 = vpop.trf.xlu2 }
 0x560   :  { %2563 = vst [vmem:[#allocation9 + $0x2d0] sm:$0xff] %v7477_v42  ;;  %v2640_v59 = vmax.f32 %v7477_v42, %v7479_v39  ;;  %4364 = vmatmul.msk.f32.gmra.mxu0 %vm10007_vm5, %v2147_v1  ;;  %4396 = vmatmul.msk.f32.gmra.mxu1 %vm10008_vm7, %v2147_v1  ;;  %v2616_v1 = vmax.f32 %v7413_v5, %v7415_v36 }
 0x561   :  { %2564 = vst [vmem:[#allocation9 + $0x2d8] sm:$0xff] %v7479_v39 }
 0x562   :  { %2641 = vmax.xlane.f32.xlu1 %v2640_v59 }
 0x565   :  { %v2305_v23 = vpop.f32.mrf.mxu0  ;;  %v2418_v4 = vpop.f32.mrf.mxu1 }
 0x566   :  { %v7487_v2 = vmul.f32 2.3784142, %v2305_v23  ;;  %v7489_v12 = vmul.f32 2.3784142, %v2418_v4  ;;  %v2625_v4 = vmax.f32 %v7437_v61, %v7439_v45 }
 0x568   :  { %2565 = vst [vmem:[#allocation9 + $0x2e0] sm:$0xff] %v7487_v2  ;;  %v2643_v62 = vmax.f32 %v7487_v2, %v7489_v12  ;;  %4365 = vmatmul.msk.f32.gmra.mxu0 %vm9955_vm0, %v2148_v11  ;;  %4397 = vmatmul.msk.f32.gmra.mxu1 %vm10011_vm14, %v2148_v11 }
 0x569   :  { %2566 = vst [vmem:[#allocation9 + $0x2e8] sm:$0xff] %v7489_v12 }
 0x56a   :  { %2638 = vmax.xlane.f32.xlu1 %v2637_v25  ;;  %2644 = vmax.xlane.f32.xlu2 %v2643_v62 }
 0x56d   :  { %v2308_v22 = vpop.f32.mrf.mxu0  ;;  %v2421_v37 = vpop.f32.mrf.mxu1 }
 0x56e   :  { %v7499_v58 = vmul.f32 2.3784142, %v2308_v22  ;;  %v7501_v50 = vmul.f32 2.3784142, %v2421_v37  ;;  %v2619_v37 = vmax.f32 %v7421_v6, %v7423_v27  ;;  %v2613_v27 = vmax.f32 %v7407_v16, %v7409_v28 }
 0x570   :  { %2567 = vst [vmem:[#allocation9 + $0x2f0] sm:$0xff] %v7499_v58  ;;  %v2646_v49 = vmax.f32 %v7499_v58, %v7501_v50  ;;  %4366 = vmatmul.msk.f32.gmra.mxu0 %vm10014_vm11, %v2149_v29  ;;  %4398 = vmatmul.msk.f32.gmra.mxu1 %vm10015_vm15, %v2149_v29  ;;  %v2610_v29 = vmax.f32 %v7401_v47, %v7403_v57 }
 0x571   :  { %2568 = vst [vmem:[#allocation9 + $0x2f8] sm:$0xff] %v7501_v50  ;;  %v2604_v47 = vmax.f32 %v7385_v17, %v7387_v24 }
 0x572   :  { %2635 = vmax.xlane.f32.xlu1 %v2634_v34  ;;  %2647 = vmax.xlane.f32.xlu0 %v2646_v49 }
 0x575   :  { %v2311_v35 = vpop.f32.mrf.mxu0  ;;  %v2424_v56 = vpop.f32.mrf.mxu1 }
 0x576   :  { %v7511_v43 = vmul.f32 2.3784142, %v2311_v35  ;;  %v7513_v0 = vmul.f32 2.3784142, %v2424_v56 }
 0x578   :  { %10009 = vst [vmem:[#allocation24_spill] sm:$0xff] %v7511_v43  ;;  %v2649_v22 = vmax.f32 %v7511_v43, %v7513_v0 }
 0x579   :  { %10010 = vst [vmem:[#allocation30_spill] sm:$0xff] %v7513_v0 }
 0x57a   :  { %2569 = vst [vmem:[#allocation9 + $0x300] sm:$0xff] %v7511_v43  ;;  %2632 = vmax.xlane.f32.xlu1 %v2631_v19  ;;  %2602 = vmax.xlane.f32.xlu0 %v2601_v38 }
 0x57b   :  { %2570 = vst [vmem:[#allocation9 + $0x308] sm:$0xff] %v7513_v0 }
 0x57d   :  { %v2314_v32 = vpop.f32.mrf.mxu0  ;;  %v2427_v13 = vpop.f32.mrf.mxu1 }
 0x57e   :  { %v7523_v46 = vmul.f32 2.3784142, %v2314_v32  ;;  %v7525_v55 = vmul.f32 2.3784142, %v2427_v13 }
 0x580   :  { %10012 = vst [vmem:[#allocation25_spill] sm:$0xff] %v7523_v46  ;;  %v2652_v62 = vmax.f32 %v7523_v46, %v7525_v55 }
 0x581   :  { %10013 = vst [vmem:[#allocation35_spill] sm:$0xff] %v7525_v55 }
 0x582   :  { %2571 = vst [vmem:[#allocation9 + $0x310] sm:$0xff] %v7523_v46  ;;  %2629 = vmax.xlane.f32.xlu1 %v2628_v8 }
 0x583   :  { %2572 = vst [vmem:[#allocation9 + $0x318] sm:$0xff] %v7525_v55 }
 0x585   :  { %v2317_v21 = vpop.f32.mrf.mxu0  ;;  %v2430_v59 = vpop.f32.mrf.mxu1 }
 0x586   :  { %v7533_v20 = vmul.f32 2.3784142, %v2317_v21  ;;  %v7535_v23 = vmul.f32 2.3784142, %v2430_v59 }
 0x588   :  { %10016 = vst [vmem:[#allocation36_spill] sm:$0xff] %v7535_v23  ;;  %v2655_v25 = vmax.f32 %v7533_v20, %v7535_v23 }
 0x589   :  { %2573 = vst [vmem:[#allocation9 + $0x320] sm:$0xff] %v7533_v20 }
 0x58a   :  { %2574 = vst [vmem:[#allocation9 + $0x328] sm:$0xff] %v7535_v23  ;;  %2626 = vmax.xlane.f32.xlu1 %v2625_v4  ;;  %2656 = vmax.xlane.f32.xlu2 %v2655_v25  ;;  %v2607_v4 = vmax.f32 %v7393_v44, %v7395_v51 }
 0x58d   :  { %v2320_v34 = vpop.f32.mrf.mxu0  ;;  %v2433_v49 = vpop.f32.mrf.mxu1 }
 0x58e   :  { %v7553_v35 = vmul.f32 2.3784142, %v2320_v34  ;;  %v7555_v56 = vmul.f32 2.3784142, %v2433_v49 }
 0x590   :  { %2575 = vst [vmem:[#allocation9 + $0x330] sm:$0xff] %v7553_v35 }
 0x591   :  { %2576 = vst [vmem:[#allocation9 + $0x338] sm:$0xff] %v7555_v56 }
 0x592   :  { %2623 = vmax.xlane.f32.xlu1 %v2622_v31  ;;  %2653 = vmax.xlane.f32.xlu2 %v2652_v62 }
 0x595   :  { %v2323_v19 = vpop.f32.mrf.mxu0  ;;  %v2436_v38 = vpop.f32.mrf.mxu1 }
 0x596   :  { %v7561_v11 = vmul.f32 2.3784142, %v2323_v19  ;;  %v7563_v32 = vmul.f32 2.3784142, %v2436_v38 }
 0x598   :  { %10017 = vst [vmem:[#allocation33_spill] sm:$0xff] %v7561_v11  ;;  %v2661_v49 = vmax.f32 %v7561_v11, %v7563_v32 }
 0x599   :  { %10018 = vst [vmem:[#allocation34_spill] sm:$0xff] %v7563_v32 }
 0x59a   :  { %2620 = vmax.xlane.f32.xlu1 %v2619_v37  ;;  %2650 = vmax.xlane.f32.xlu2 %v2649_v22  ;;  %2577 = vst [vmem:[#allocation9 + $0x340] sm:$0xff] %v7561_v11 }
 0x59b   :  { %2578 = vst [vmem:[#allocation9 + $0x348] sm:$0xff] %v7563_v32 }
 0x59d   :  { %v2326_v13 = vpop.f32.mrf.mxu0  ;;  %v2439_v8 = vpop.f32.mrf.mxu1 }
 0x59e   :  { %v7569_v21 = vmul.f32 2.3784142, %v2326_v13  ;;  %v7571_v59 = vmul.f32 2.3784142, %v2439_v8 }
 0x5a0   :  { %2579 = vst [vmem:[#allocation9 + $0x350] sm:$0xff] %v7569_v21  ;;  %v2664_v38 = vmax.f32 %v7569_v21, %v7571_v59 }
 0x5a1   :  { %2580 = vst [vmem:[#allocation9 + $0x358] sm:$0xff] %v7571_v59 }
 0x5a2   :  { %2617 = vmax.xlane.f32.xlu1 %v2616_v1 }
 0x5a5   :  { %v2329_v25 = vpop.f32.mrf.mxu0  ;;  %v2442_v62 = vpop.f32.mrf.mxu1 }
 0x5a6   :  { %v7577_v31 = vmul.f32 2.3784142, %v2329_v25  ;;  %v7579_v22 = vmul.f32 2.3784142, %v2442_v62 }
 0x5a8   :  { %2581 = vst [vmem:[#allocation9 + $0x360] sm:$0xff] %v7577_v31 }
 0x5a9   :  { %2582 = vst [vmem:[#allocation9 + $0x368] sm:$0xff] %v7579_v22 }
 0x5aa   :  { %2614 = vmax.xlane.f32.xlu1 %v2613_v27 }
 0x5ad   :  { %v2332_v57 = vpop.f32.mrf.mxu0  ;;  %v2445_v37 = vpop.f32.mrf.mxu1 }
 0x5ae   :  { %v7585_v34 = vmul.f32 2.3784142, %v2332_v57  ;;  %v7587_v51 = vmul.f32 2.3784142, %v2445_v37 }
 0x5b0   :  { %10019 = vst [vmem:[#allocation38_spill] sm:$0xff] %v7585_v34  ;;  %v2670_v37 = vmax.f32 %v7585_v34, %v7587_v51 }
 0x5b1   :  { %10020 = vst [vmem:[#allocation39_spill] sm:$0xff] %v7587_v51 }
 0x5b2   :  { %2611 = vmax.xlane.f32.xlu1 %v2610_v29  ;;  %2583 = vst [vmem:[#allocation9 + $0x370] sm:$0xff] %v7585_v34 }
 0x5b3   :  { %2584 = vst [vmem:[#allocation9 + $0x378] sm:$0xff] %v7587_v51 }
 0x5b5   :  { %v2335_v1 = vpop.f32.mrf.mxu0  ;;  %v2448_v19 = vpop.f32.mrf.mxu1 }
 0x5b6   :  { %v7595_v27 = vmul.f32 2.3784142, %v2335_v1  ;;  %v7597_v13 = vmul.f32 2.3784142, %v2448_v19 }
 0x5b8   :  { %2585 = vst [vmem:[#allocation9 + $0x380] sm:$0xff] %v7595_v27 }
 0x5b9   :  { %2586 = vst [vmem:[#allocation9 + $0x388] sm:$0xff] %v7597_v13 }
 0x5ba   :  { %2608 = vmax.xlane.f32.xlu1 %v2607_v4  ;;  %v2667_v4 = vmax.f32 %v7577_v31, %v7579_v22 }
 0x5bd   :  { %v2338_v29 = vpop.f32.mrf.mxu0  ;;  %v2451_v62 = vpop.f32.mrf.mxu1 }
 0x5be   :  { %v7605_v25 = vmul.f32 2.3784142, %v2338_v29 }
 0x5c0   :  { %2587 = vst [vmem:[#allocation9 + $0x390] sm:$0xff] %v7605_v25 }
 0x5c2   :  { %2605 = vmax.xlane.f32.xlu1 %v2604_v47  ;;  %v7607_v47 = vmul.f32 2.3784142, %v2451_v62 }
 0x5c4   :  { %2588 = vst [vmem:[#allocation9 + $0x398] sm:$0xff] %v7607_v47  ;;  %v2676_v33 = vmax.f32 %v7605_v25, %v7607_v47 }
 0x5c5   :  { %v2454_v1 = vpop.f32.mrf.mxu1 }
 0x5ca   :  { %2662 = vmax.xlane.f32.xlu1 %v2661_v49  ;;  %v2341_v49 = vpop.f32.mrf.mxu0 }
 0x5cb   :  { %v7615_v19 = vmul.f32 2.3784142, %v2341_v49 }
 0x5cd   :  { %10021 = vst [vmem:[#allocation42_spill] sm:$0xff] %v7615_v19  ;;  %v2457_v48 = vpop.f32.mrf.mxu1 }
 0x5ce   :  { %2589 = vst [vmem:[#allocation9 + $0x3a0] sm:$0xff] %v7615_v19  ;;  %v7627_v52 = vmul.f32 2.3784142, %v2457_v48 }
 0x5d0   :  { %2592 = vst [vmem:[#allocation9 + $0x3b8] sm:$0xff] %v7627_v52 }
 0x5d2   :  { %2665 = vmax.xlane.f32.xlu1 %v2664_v38  ;;  %v7617_v38 = vmul.f32 2.3784142, %v2454_v1  ;;  %v2344_v62 = vpop.f32.mrf.mxu0 }
 0x5d3   :  { %v7625_v63 = vmul.f32 2.3784142, %v2344_v62 }
 0x5d4   :  { %10022 = vst [vmem:[#allocation43_spill] sm:$0xff] %v7617_v38 }
 0x5d5   :  { %v7601_v8 = vpop.xlane.xlu1 %2641  ;;  %2590 = vst [vmem:[#allocation9 + $0x3a8] sm:$0xff] %v7617_v38  ;;  %v2460_v53 = vpop.f32.mrf.mxu1 }
 0x5d6   :  { %2591 = vst [vmem:[#allocation9 + $0x3b0] sm:$0xff] %v7625_v63  ;;  %v7637_v62 = vmul.f32 2.3784142, %v2460_v53 }
 0x5d8   :  { %2594 = vst [vmem:[#allocation9 + $0x3c8] sm:$0xff] %v7637_v62 }
 0x5da   :  { %2668 = vmax.xlane.f32.xlu1 %v2667_v4  ;;  %v2673_v4 = vmax.f32 %v7595_v27, %v7597_v13  ;;  %v2347_v26 = vpop.f32.mrf.mxu0 }
 0x5db   :  { %v7635_v0 = vmul.f32 2.3784142, %v2347_v26 }
 0x5dd   :  { %v7611_v57 = vpop.xlane.xlu1 %2638  ;;  %2593 = vst [vmem:[#allocation9 + $0x3c0] sm:$0xff] %v7635_v0 }
 0x5e2   :  { %2671 = vmax.xlane.f32.xlu1 %v2670_v37 }
 0x5e5   :  { %v7621_v29 = vpop.xlane.xlu1 %2635 }
 0x5ea   :  { %2674 = vmax.xlane.f32.xlu1 %v2673_v4  ;;  %v2350_v4 = vpop.f32.mrf.mxu0 }
 0x5eb   :  { %v7645_v26 = vmul.f32 2.3784142, %v2350_v4 }
 0x5ed   :  { %v2633_v49 = vpop.xlane.xlu1 %2632  ;;  %2595 = vst [vmem:[#allocation9 + $0x3d0] sm:$0xff] %v7645_v26 }
 0x5ee   :  { %v2717_v37 = vsub.f32 %v7453_v15, %v2633_v49  ;;  %v2718_v1 = vsub.f32 %v7455_v60, %v2633_v49  ;;  %v2679_v60 = vmax.f32 %v7615_v19, %v7617_v38  ;;  %v2463_v49 = vpop.f32.mrf.mxu1  ;;  %v2723_v19 = vsub.f32 %v7477_v42, %v7601_v8 }
 0x5ef   :  { %v7647_v53 = vmul.f32 2.3784142, %v2463_v49  ;;  %v2721_v42 = vsub.f32 %v7469_v30, %v7611_v57  ;;  %v2720_v30 = vsub.f32 %v7463_v54, %v7621_v29 }
 0x5f0   :  { %v2801_v48 = vmul.f32 1.442695, %v2717_v37  ;;  %v2803_v43 = vmul.f32 1.442695, %v2718_v1  ;;  %v2813_v44 = vmul.f32 1.442695, %v2723_v19 }
 0x5f1   :  { %2596 = vst [vmem:[#allocation9 + $0x3d8] sm:$0xff] %v7647_v53 }
 0x5f2   :  { %4739 = vpow2.f32 %v2801_v48  ;;  %2677 = vmax.xlane.f32.xlu1 %v2676_v33  ;;  %v2682_v48 = vmax.f32 %v7625_v63, %v7627_v52  ;;  %v2353_v4 = vpop.f32.mrf.mxu0 }
 0x5f3   :  { %4741 = vpow2.f32 %v2803_v43  ;;  %v7661_v32 = vmul.f32 2.3784142, %v2353_v4 }
 0x5f5   :  { %v7641_v15 = vpop.xlane.xlu1 %2629  ;;  %2597 = vst [vmem:[#allocation9 + $0x3e0] sm:$0xff] %v7661_v32 }
 0x5f6   :  { %v2466_v49 = vpop.f32.mrf.mxu1 }
 0x5f7   :  { %v7663_v11 = vmul.f32 2.3784142, %v2466_v49 }
 0x5f8   :  { %v7649_v37 = vpop.eup %4739 }
 0x5f9   :  { %10023 = vst [vmem:[#allocation13_spill] sm:$0xff] %v7649_v37  ;;  %v7651_v1 = vpop.eup %4741  ;;  %v2691_v55 = vmax.f32 %v7661_v32, %v7663_v11 }
 0x5fa   :  { %10024 = vst [vmem:[#allocation14_spill] sm:$0xff] %v7651_v1  ;;  %2680 = vmax.xlane.f32.xlu1 %v2679_v60  ;;  %v2919_v33 = vadd.f32 %v7651_v1, %v7649_v37  ;;  %v2356_v1 = vpop.f32.mrf.mxu0 }
 0x5fb   :  { %2598 = vst [vmem:[#allocation9 + $0x3e8] sm:$0xff] %v7663_v11  ;;  %v7671_v51 = vmul.f32 2.3784142, %v2356_v1  ;;  %v2645_v1 = vpop.xlane.xlu2 %2644 }
 0x5fc   :  { %2920 = vadd.xlane.f32.xlu2 %v2919_v33  ;;  %v2685_v33 = vmax.f32 %v7635_v0, %v7637_v62  ;;  %v2725_v6 = vsub.f32 %v7487_v2, %v2645_v1  ;;  %v2658_v2 = vmax.f32 %v7553_v35, %v7555_v56 }
 0x5fd   :  { %v7657_v43 = vpop.xlane.xlu1 %2626  ;;  %2599 = vst [vmem:[#allocation9 + $0x3f0] sm:$0xff] %v7671_v51 }
 0x5fe   :  { %v2469_v37 = vpop.f32.mrf.mxu1  ;;  %v2817_v46 = vmul.f32 1.442695, %v2725_v6 }
 0x5ff   :  { %v7673_v34 = vmul.f32 2.3784142, %v2469_v37 }
 0x600   :  { %4743 = vpow2.f32 %v2817_v46 }
 0x601   :  { %2600 = vst [vmem:[#allocation9 + $0x3f8] sm:$0xff] %v7673_v34 }
 0x602   :  { %2683 = vmax.xlane.f32.xlu1 %v2682_v48  ;;  %v2688_v48 = vmax.f32 %v7645_v26, %v7647_v53 }
 0x605   :  { %v7667_v60 = vpop.xlane.xlu1 %2623 }
 0x60a   :  { %2686 = vmax.xlane.f32.xlu1 %v2685_v33  ;;  %v2694_v33 = vmax.f32 %v7671_v51, %v7673_v34 }
 0x60d   :  { %v7677_v4 = vpop.xlane.xlu1 %2620 }
 0x60e   :  { %10025 = vst [vmem:[#allocation37_spill] sm:$0xff] %v7677_v4  ;;  %v2726_v4 = vsub.f32 %v7489_v12, %v2645_v1  ;;  %v7699_v12 = vpop.eup %4743 }
 0x610   :  { %v2819_v38 = vmul.f32 1.442695, %v2726_v4 }
 0x612   :  { %2689 = vmax.xlane.f32.xlu1 %v2688_v48  ;;  %4745 = vpow2.f32 %v2819_v38 }
 0x613   :  { %4747 = vpow2.f32 %v2813_v44  ;;  %v2719_v44 = vsub.f32 %v7461_v7, %v7621_v29 }
 0x615   :  { %v7681_v49 = vpop.xlane.xlu1 %2617 }
 0x618   :  { %v7701_v6 = vpop.eup %4745 }
 0x619   :  { %v2931_v46 = vadd.f32 %v7701_v6, %v7699_v12  ;;  %v7711_v38 = vpop.eup %4747 }
 0x61a   :  { %2692 = vmax.xlane.f32.xlu1 %v2691_v55  ;;  %v2724_v55 = vsub.f32 %v7479_v39, %v7601_v8  ;;  %v2722_v39 = vsub.f32 %v7471_v9, %v7611_v57  ;;  %v2809_v8 = vmul.f32 1.442695, %v2721_v42  ;;  %v2807_v57 = vmul.f32 1.442695, %v2720_v30 }
 0x61c   :  { %v2815_v23 = vmul.f32 1.442695, %v2724_v55  ;;  %v2811_v19 = vmul.f32 1.442695, %v2722_v39  ;;  %v2648_v55 = vpop.xlane.xlu0 %2647 }
 0x61d   :  { %v7685_v37 = vpop.xlane.xlu1 %2614  ;;  %v2727_v7 = vsub.f32 %v7499_v58, %v2648_v55 }
 0x61e   :  { %4749 = vpow2.f32 %v2815_v23  ;;  %v2805_v23 = vmul.f32 1.442695, %v2719_v44 }
 0x61f   :  { %4751 = vpow2.f32 %v2809_v8  ;;  %v2821_v29 = vmul.f32 1.442695, %v2727_v7 }
 0x620   :  { %4753 = vpow2.f32 %v2811_v19 }
 0x621   :  { %4755 = vpow2.f32 %v2805_v23 }
 0x622   :  { %2695 = vmax.xlane.f32.xlu1 %v2694_v33  ;;  %4757 = vpow2.f32 %v2807_v57 }
 0x623   :  { %4759 = vpow2.f32 %v2821_v29 }
 0x624   :  { %v7713_v1 = vpop.eup %4749 }
 0x625   :  { %v7691_v48 = vpop.xlane.xlu1 %2611  ;;  %10026 = vst [vmem:[#allocation31_spill] sm:$0xff] %v7713_v1  ;;  %v2928_v9 = vadd.f32 %v7713_v1, %v7711_v38  ;;  %v2713_v1 = vsub.f32 %v7437_v61, %v7657_v43 }
 0x627   :  { %v2793_v61 = vmul.f32 1.442695, %v2713_v1 }
 0x62a   :  { %2659 = vmax.xlane.f32.xlu1 %v2658_v2  ;;  %v7723_v2 = vpop.eup %4751 }
 0x62b   :  { %10027 = vst [vmem:[#allocation26_spill] sm:$0xff] %v7723_v2  ;;  %v7725_v42 = vpop.eup %4753 }
 0x62c   :  { %10028 = vst [vmem:[#allocation21_spill] sm:$0xff] %v7725_v42  ;;  %v2925_v54 = vadd.f32 %v7725_v42, %v7723_v2  ;;  %v7733_v19 = vpop.eup %4755 }
 0x62d   :  { %v7703_v4 = vpop.xlane.xlu1 %2608  ;;  %10029 = vst [vmem:[#allocation22_spill] sm:$0xff] %v7733_v19  ;;  %v7735_v44 = vpop.eup %4757 }
 0x62e   :  { %10030 = vst [vmem:[#allocation19_spill] sm:$0xff] %v7735_v44  ;;  %v2922_v58 = vadd.f32 %v7735_v44, %v7733_v19  ;;  %v2711_v44 = vsub.f32 %v7429_v3, %v7667_v60  ;;  %v2714_v3 = vsub.f32 %v7439_v45, %v7657_v43 }
 0x632   :  { %2932 = vadd.xlane.f32.xlu1 %v2931_v46  ;;  %v2728_v46 = vsub.f32 %v7501_v50, %v2648_v55 }
 0x634   :  { %v2823_v8 = vmul.f32 1.442695, %v2728_v46 }
 0x635   :  { %v7715_v33 = vpop.xlane.xlu1 %2605 }
 0x636   :  { %4761 = vpow2.f32 %v2823_v8 }
 0x63a   :  { %2929 = vadd.xlane.f32.xlu1 %v2928_v9  ;;  %v7741_v9 = vpop.eup %4759 }
 0x63b   :  { %10031 = vst [vmem:[#allocation20_spill] sm:$0xff] %v7741_v9 }
 0x63c   :  { %v7743_v50 = vpop.eup %4761 }
 0x63d   :  { %v7727_v39 = vpop.xlane.xlu1 %2662  ;;  %10032 = vst [vmem:[#allocation44_spill] sm:$0xff] %v7743_v50  ;;  %v2934_v57 = vadd.f32 %v7743_v50, %v7741_v9  ;;  %v2789_v50 = vmul.f32 1.442695, %v2711_v44 }
 0x642   :  { %2926 = vadd.xlane.f32.xlu1 %v2925_v54 }
 0x645   :  { %v7737_v30 = vpop.xlane.xlu1 %2665 }
 0x64a   :  { %2923 = vadd.xlane.f32.xlu1 %v2922_v58 }
 0x64d   :  { %v7745_v23 = vpop.xlane.xlu1 %2668 }
 0x652   :  { %2935 = vadd.xlane.f32.xlu1 %v2934_v57  ;;  %v2712_v57 = vsub.f32 %v7431_v41, %v7667_v60 }
 0x654   :  { %v2791_v9 = vmul.f32 1.442695, %v2712_v57 }
 0x655   :  { %v7749_v55 = vpop.xlane.xlu1 %2671 }
 0x65d   :  { %v2675_v7 = vpop.xlane.xlu1 %2674 }
 0x65e   :  { %v2745_v41 = vsub.f32 %v7595_v27, %v2675_v7  ;;  %v2746_v44 = vsub.f32 %v7597_v13, %v2675_v7  ;;  %v2705_v27 = vsub.f32 %v7407_v16, %v7685_v37  ;;  %v2706_v7 = vsub.f32 %v7409_v28, %v7685_v37 }
 0x660   :  { %v2857_v45 = vmul.f32 1.442695, %v2745_v41  ;;  %v2859_v43 = vmul.f32 1.442695, %v2746_v44  ;;  %v2779_v37 = vmul.f32 1.442695, %v2706_v7  ;;  %v2707_v44 = vsub.f32 %v7413_v5, %v7681_v49 }
 0x665   :  { %v7751_v46 = vpop.xlane.xlu1 %2677 }
 0x666   :  { %v2748_v16 = vsub.f32 %v7607_v47, %v7751_v46 }
 0x668   :  { %v2863_v47 = vmul.f32 1.442695, %v2748_v16  ;;  %v2716_v16 = vsub.f32 %v7447_v14, %v7641_v15 }
 0x66d   :  { %v7753_v54 = vpop.xlane.xlu1 %2680 }
 0x675   :  { %v2684_v29 = vpop.xlane.xlu1 %2683 }
 0x676   :  { %v2751_v8 = vsub.f32 %v7625_v63, %v2684_v29  ;;  %v2752_v58 = vsub.f32 %v7627_v52, %v2684_v29 }
 0x678   :  { %v2869_v19 = vmul.f32 1.442695, %v2751_v8  ;;  %v2871_v42 = vmul.f32 1.442695, %v2752_v58  ;;  %v2747_v58 = vsub.f32 %v7605_v25, %v7751_v46 }
 0x67a   :  { %4763 = vpow2.f32 %v2869_v19  ;;  %v2861_v25 = vmul.f32 1.442695, %v2747_v58 }
 0x67b   :  { %4765 = vpow2.f32 %v2871_v42 }
 0x67c   :  { %4767 = vpow2.f32 %v2789_v50 }
 0x67d   :  { %v2687_v2 = vpop.xlane.xlu1 %2686  ;;  %4769 = vpow2.f32 %v2791_v9 }
 0x67e   :  { %v2753_v63 = vsub.f32 %v7635_v0, %v2687_v2  ;;  %v2754_v52 = vsub.f32 %v7637_v62, %v2687_v2  ;;  %v2795_v62 = vmul.f32 1.442695, %v2714_v3 }
 0x680   :  { %v7767_v29 = vpop.eup %4763  ;;  %v2873_v60 = vmul.f32 1.442695, %v2753_v63  ;;  %v2875_v42 = vmul.f32 1.442695, %v2754_v52 }
 0x681   :  { %10033 = vst [vmem:[#allocation45_spill] sm:$0xff] %v7767_v29  ;;  %v7770_v19 = vpop.eup %4765 }
 0x682   :  { %10034 = vst [vmem:[#allocation46_spill] sm:$0xff] %v7770_v19  ;;  %4771 = vpow2.f32 %v2873_v60  ;;  %v2970_v0 = vadd.f32 %v7770_v19, %v7767_v29  ;;  %v7775_v50 = vpop.eup %4767  ;;  %v7801_v60 = vpop.xlane.xlu2 %2656 }
 0x683   :  { %4773 = vpow2.f32 %v2875_v42  ;;  %v7781_v1 = vpop.eup %4769 }
 0x684   :  { %2971 = vadd.xlane.f32.xlu2 %v2970_v0  ;;  %4775 = vpow2.f32 %v2793_v61 }
 0x685   :  { %v2690_v2 = vpop.xlane.xlu1 %2689  ;;  %4777 = vpow2.f32 %v2795_v62 }
 0x686   :  { %v2755_v9 = vsub.f32 %v7645_v26, %v2690_v2  ;;  %v2756_v13 = vsub.f32 %v7647_v53, %v2690_v2  ;;  %4779 = vpow2.f32 %v2857_v45  ;;  %v2777_v26 = vmul.f32 1.442695, %v2705_v27  ;;  %v7815_v2 = vpop.xlane.xlu0 %2602 }
 0x687   :  { %4781 = vpow2.f32 %v2859_v43  ;;  %v2910_v53 = vadd.f32 %v7781_v1, %v7775_v50  ;;  %v2708_v45 = vsub.f32 %v7415_v36, %v7681_v49  ;;  %v2739_v27 = vsub.f32 %v7569_v21, %v7737_v30 }
 0x688   :  { %v7785_v8 = vpop.eup %4771  ;;  %v2877_v57 = vmul.f32 1.442695, %v2755_v9  ;;  %v2879_v63 = vmul.f32 1.442695, %v2756_v13  ;;  %v2697_v21 = vsub.f32 %v7377_v18, %v7815_v2 }
 0x689   :  { %10035 = vst [vmem:[#allocation47_spill] sm:$0xff] %v7785_v8  ;;  %v7789_v52 = vpop.eup %4773  ;;  %v2783_v7 = vmul.f32 1.442695, %v2708_v45  ;;  %v2741_v45 = vsub.f32 %v7577_v31, %v7745_v23  ;;  %v2733_v31 = vsub.f32 %v7533_v20, %v7801_v60 }
 0x68a   :  { %10036 = vst [vmem:[#allocation40_spill] sm:$0xff] %v7789_v52  ;;  %4783 = vpow2.f32 %v2877_v57  ;;  %v2973_v28 = vadd.f32 %v7789_v52, %v7785_v8  ;;  %v7797_v3 = vpop.eup %4775  ;;  %v10096_v8 = vld [vmem:[#allocation21_spill] sm:$0xff] }
 0x68b   :  { %4785 = vpow2.f32 %v2879_v63  ;;  %v7799_v41 = vpop.eup %4777  ;;  %v2715_v63 = vsub.f32 %v7445_v10, %v7641_v15  ;;  %v2699_v10 = vsub.f32 %v7385_v17, %v7715_v33  ;;  %v2700_v15 = vsub.f32 %v7387_v24, %v7715_v33 }
 0x68c   :  { %2911 = vadd.xlane.f32.xlu2 %v2910_v53  ;;  %2974 = vadd.xlane.f32.xlu1 %v2973_v28  ;;  %v7803_v42 = vpop.eup %4779  ;;  %4787 = vpow2.f32 %v2777_v26  ;;  %v2913_v58 = vadd.f32 %v7799_v41, %v7797_v3  ;;  %v2698_v33 = vsub.f32 %v7379_v40, %v7815_v2  ;;  %v2849_v2 = vmul.f32 1.442695, %v2741_v45 }
 0x68d   :  { %v2693_v46 = vpop.xlane.xlu1 %2692  ;;  %10037 = vst [vmem:[#allocation41_spill] sm:$0xff] %v7803_v42  ;;  %v7809_v62 = vpop.eup %4781  ;;  %4789 = vpow2.f32 %v2779_v37 }
 0x68e   :  { %v2757_v61 = vsub.f32 %v7661_v32, %v2693_v46  ;;  %v2758_v0 = vsub.f32 %v7663_v11, %v2693_v46  ;;  %10038 = vst [vmem:[#allocation15_spill] sm:$0xff] %v7809_v62  ;;  %4791 = vpow2.f32 %v2861_v25  ;;  %v2740_v11 = vsub.f32 %v7571_v59, %v7737_v30  ;;  %v7845_v46 = vpop.xlane.xlu2 %2653 }
 0x68f   :  { %4793 = vpow2.f32 %v2863_v47  ;;  %v2781_v32 = vmul.f32 1.442695, %v2707_v44  ;;  %v2961_v36 = vadd.f32 %v7809_v62, %v7803_v42  ;;  %v2845_v59 = vmul.f32 1.442695, %v2739_v27 }
 0x690   :  { %v7813_v43 = vpop.eup %4783  ;;  %v2881_v5 = vmul.f32 1.442695, %v2757_v61  ;;  %v2883_v9 = vmul.f32 1.442695, %v2758_v0  ;;  %v2847_v26 = vmul.f32 1.442695, %v2740_v11  ;;  %v2742_v27 = vsub.f32 %v7579_v22, %v7745_v23 }
 0x691   :  { %10039 = vst [vmem:[#allocation48_spill] sm:$0xff] %v7813_v43  ;;  %v7819_v13 = vpop.eup %4785  ;;  %v2761_v47 = vmul.f32 1.442695, %v2697_v21  ;;  %v2799_v0 = vmul.f32 1.442695, %v2716_v16 }
 0x692   :  { %10040 = vst [vmem:[#allocation49_spill] sm:$0xff] %v7819_v13  ;;  %4795 = vpow2.f32 %v2881_v5  ;;  %v2976_v49 = vadd.f32 %v7819_v13, %v7813_v43  ;;  %v7831_v57 = vpop.eup %4787  ;;  %v2765_v5 = vmul.f32 1.442695, %v2699_v10  ;;  %v2767_v22 = vmul.f32 1.442695, %v2700_v15  ;;  %v8228_v43 = vld [vmem:[%s9651_s5 + $0x2a8] sm:$0xff] }
 0x693   :  { %4797 = vpow2.f32 %v2883_v9  ;;  %v7833_v30 = vpop.eup %4789  ;;  %v2851_v21 = vmul.f32 1.442695, %v2742_v27  ;;  %v2763_v20 = vmul.f32 1.442695, %v2698_v33  ;;  %v2833_v16 = vmul.f32 1.442695, %v2733_v31 }
 0x694   :  { %2962 = vadd.xlane.f32.xlu2 %v2961_v36  ;;  %2977 = vadd.xlane.f32.xlu0 %v2976_v49  ;;  %v7839_v53 = vpop.eup %4791  ;;  %4799 = vpow2.f32 %v2781_v32  ;;  %v2901_v17 = vadd.f32 %v7833_v30, %v7831_v57  ;;  %v10045_v32 = vld [vmem:[#allocation36_spill] sm:$0xff]  ;;  %v10054_v27 = vld [vmem:[#allocation25_spill] sm:$0xff] }
 0x695   :  { %2914 = vadd.xlane.f32.xlu1 %v2913_v58  ;;  %v2696_v18 = vpop.xlane.xlu1 %2695  ;;  %10041 = vst [vmem:[#allocation50_spill] sm:$0xff] %v7839_v53  ;;  %v7843_v25 = vpop.eup %4793  ;;  %4801 = vpow2.f32 %v2783_v7  ;;  %v2734_v40 = vsub.f32 %v10045_v32, %v7801_v60  ;;  %v10048_v58 = vld [vmem:[#allocation23_spill] sm:$0xff]  ;;  %v10050_v60 = vld [vmem:[#allocation42_spill] sm:$0xff]  ;;  %v10057_v31 = vld [vmem:[#allocation28_spill] sm:$0xff] }
 0x696   :  { %v2759_v28 = vsub.f32 %v7671_v51, %v2696_v18  ;;  %v2760_v37 = vsub.f32 %v7673_v34, %v2696_v18  ;;  %10042 = vst [vmem:[#allocation51_spill] sm:$0xff] %v7843_v25  ;;  %4803 = vpow2.f32 %v2845_v59  ;;  %v2797_v34 = vmul.f32 1.442695, %v2715_v63 }
 0x697   :  { %4805 = vpow2.f32 %v2847_v26  ;;  %v2964_v9 = vadd.f32 %v7843_v25, %v7839_v53  ;;  %v2701_v59 = vsub.f32 %v10048_v58, %v7703_v4  ;;  %v2749_v26 = vsub.f32 %v10050_v60, %v7753_v54 }
 0x698   :  { %v7849_v14 = vpop.eup %4795  ;;  %v2885_v44 = vmul.f32 1.442695, %v2759_v28  ;;  %v2887_v61 = vmul.f32 1.442695, %v2760_v37  ;;  %v2835_v28 = vmul.f32 1.442695, %v2734_v40  ;;  %v7889_v37 = vpop.xlane.xlu2 %2650 }
 0x699   :  { %10043 = vst [vmem:[#allocation52_spill] sm:$0xff] %v7849_v14  ;;  %v7853_v51 = vpop.eup %4797 }
 0x69a   :  { %10044 = vst [vmem:[#allocation53_spill] sm:$0xff] %v7853_v51  ;;  %4807 = vpow2.f32 %v2885_v44  ;;  %v2979_v24 = vadd.f32 %v7853_v51, %v7849_v14  ;;  %v7867_v11 = vpop.eup %4799  ;;  %v4947_v44 = vld [vmem:[#allocation9 + $0x228] sm:$0xff] }
 0x69b   :  { %4809 = vpow2.f32 %v2887_v61  ;;  %v7871_v23 = vpop.eup %4801  ;;  %v2702_v61 = vsub.f32 %v4947_v44, %v7703_v4  ;;  %v2865_v4 = vmul.f32 1.442695, %v2749_v26 }
 0x69c   :  { %4811 = vpow2.f32 %v2761_v47  ;;  %2902 = vadd.xlane.f32.xlu2 %v2901_v17  ;;  %2980 = vadd.xlane.f32.xlu0 %v2979_v24  ;;  %v7877_v49 = vpop.eup %4803  ;;  %v10052_v47 = vld [vmem:[#allocation43_spill] sm:$0xff]  ;;  %v2731_v17 = vsub.f32 %v10054_v27, %v7845_v46  ;;  %v2769_v24 = vmul.f32 1.442695, %v2701_v59  ;;  %v4948_v59 = vld [vmem:[#allocation9 + $0x268] sm:$0xff] }
 0x69d   :  { %4813 = vpow2.f32 %v2797_v34  ;;  %2965 = vadd.xlane.f32.xlu1 %v2964_v9  ;;  %v7875_v36 = vpop.xlane.xlu1 %2659  ;;  %10046 = vst [vmem:[#allocation36_spill] sm:$0xff] %v7877_v49  ;;  %v7879_v7 = vpop.eup %4805  ;;  %v2750_v10 = vsub.f32 %v10052_v47, %v7753_v54  ;;  %v2904_v54 = vadd.f32 %v7871_v23, %v7867_v11  ;;  %v10056_v9 = vld [vmem:[#allocation37_spill] sm:$0xff] }
 0x69e   :  { %4815 = vpow2.f32 %v2799_v0  ;;  %10047 = vst [vmem:[#allocation54_spill] sm:$0xff] %v7879_v7  ;;  %v2952_v34 = vadd.f32 %v7879_v7, %v7877_v49  ;;  %v2829_v58 = vmul.f32 1.442695, %v2731_v17  ;;  %v2735_v26 = vsub.f32 %v7553_v35, %v7875_v36 }
 0x69f   :  { %4817 = vpow2.f32 %v2765_v5  ;;  %v2867_v32 = vmul.f32 1.442695, %v2750_v10  ;;  %v2736_v44 = vsub.f32 %v7555_v56, %v7875_v36 }
 0x6a0   :  { %v7883_v63 = vpop.eup %4807  ;;  %4819 = vpow2.f32 %v2767_v22  ;;  %v2709_v22 = vsub.f32 %v10057_v31, %v10056_v9  ;;  %v7926_v10 = vpop.xlane.xlu2 %2920  ;;  %v2837_v31 = vmul.f32 1.442695, %v2735_v26  ;;  %v4950_v26 = vld [vmem:[#allocation9 + $0x238] sm:$0xff] }
 0x6a1   :  { %10049 = vst [vmem:[#allocation23_spill] sm:$0xff] %v7883_v63  ;;  %v7887_v18 = vpop.eup %4809  ;;  %4821 = vpow2.f32 %v2849_v2  ;;  %v3144_v42 = vand.u32 2147483647, %v7926_v10  ;;  %vm3140_vm10 = vweird.f32 %v7926_v10 }
 0x6a2   :  { %10051 = vst [vmem:[#allocation42_spill] sm:$0xff] %v7887_v18  ;;  %v7893_v15 = vpop.eup %4811  ;;  %4823 = vpow2.f32 %v2851_v21  ;;  %v2982_v0 = vadd.f32 %v7887_v18, %v7883_v63  ;;  %v2771_v21 = vmul.f32 1.442695, %v2702_v61  ;;  %v2785_v47 = vmul.f32 1.442695, %v2709_v22 }
 0x6a3   :  { %10053 = vst [vmem:[#allocation43_spill] sm:$0xff] %v7893_v15  ;;  %v7900_v45 = vpop.eup %4813  ;;  %4825 = vpow2.f32 %v2763_v20  ;;  %vm8086_vm0 = vcmp.eq.f32.partialorder %v3144_v42, 8.507059e+37 }
 0x6a4   :  { %v7906_v33 = vpop.eup %4815  ;;  %4827 = vpow2.f32 %v2833_v16  ;;  %2953 = vadd.xlane.f32.xlu2 %v2952_v34  ;;  %2983 = vadd.xlane.f32.xlu0 %v2982_v0  ;;  %v2710_v16 = vsub.f32 %v4948_v59, %v10056_v9  ;;  %v10063_v34 = vld [vmem:[#allocation35_spill] sm:$0xff] }
 0x6a5   :  { %v7908_v5 = vpop.eup %4817  ;;  %4829 = vpow2.f32 %v2835_v28  ;;  %2905 = vadd.xlane.f32.xlu1 %v2904_v54  ;;  %v7912_v40 = vpop.xlane.xlu1 %2932  ;;  %v2732_v0 = vsub.f32 %v10063_v34, %v7845_v46  ;;  %v2916_v35 = vadd.f32 %v7906_v33, %v7900_v45  ;;  %v4949_v54 = vld [vmem:[#allocation9 + $0x230] sm:$0xff]  ;;  %v10065_v46 = vld [vmem:[#allocation38_spill] sm:$0xff] }
 0x6a6   :  { %10055 = vst [vmem:[#allocation25_spill] sm:$0xff] %v7908_v5  ;;  %v7914_v2 = vpop.eup %4819  ;;  %4831 = vrcp.f32 %v7912_v40  ;;  %v2743_v9 = vsub.f32 %v10065_v46, %v7749_v55  ;;  %vm3200_vm12 = vweird.f32 %v7912_v40 }
 0x6a7   :  { %10058 = vst [vmem:[#allocation37_spill] sm:$0xff] %v7914_v2  ;;  %v7917_v20 = vpop.eup %4821  ;;  %4833 = vpow2.f32 %v2769_v24  ;;  %v2892_v27 = vadd.f32 %v7914_v2, %v7908_v5  ;;  %v2787_v24 = vmul.f32 1.442695, %v2710_v16  ;;  %v2831_v34 = vmul.f32 1.442695, %v2732_v0  ;;  %v10130_v2 = vld [vmem:[#allocation16_spill] sm:$0xff] }
 0x6a8   :  { %10059 = vst [vmem:[#allocation28_spill] sm:$0xff] %v7917_v20  ;;  %v7920_v60 = vpop.eup %4823  ;;  %4835 = vpow2.f32 %v2865_v4  ;;  %v2703_v4 = vsub.f32 %v4949_v54, %v7691_v48  ;;  %v2853_v46 = vmul.f32 1.442695, %v2743_v9 }
 0x6a9   :  { %10060 = vst [vmem:[#allocation55_spill] sm:$0xff] %v7920_v60  ;;  %v7924_v28 = vpop.eup %4825  ;;  %4837 = vpow2.f32 %v2867_v32  ;;  %v2955_v56 = vadd.f32 %v7920_v60, %v7917_v20  ;;  %v10067_v32 = vld [vmem:[#allocation39_spill] sm:$0xff] }
 0x6aa   :  { %10061 = vst [vmem:[#allocation56_spill] sm:$0xff] %v7924_v28  ;;  %v7930_v61 = vpop.eup %4827  ;;  %4839 = vpow2.f32 %v2771_v21  ;;  %v2744_v21 = vsub.f32 %v10067_v32, %v7749_v55  ;;  %v10073_v32 = vld [vmem:[#allocation34_spill] sm:$0xff] }
 0x6ab   :  { %10062 = vst [vmem:[#allocation57_spill] sm:$0xff] %v7930_v61  ;;  %v7938_v17 = vpop.eup %4829  ;;  %4841 = vpow2.f32 %v2829_v58  ;;  %v2839_v58 = vmul.f32 1.442695, %v2736_v44  ;;  %v10071_v44 = vld [vmem:[#allocation33_spill] sm:$0xff]  ;;  %v2738_v7 = vsub.f32 %v10073_v32, %v7727_v39 }
 0x6ac   :  { %10064 = vst [vmem:[#allocation35_spill] sm:$0xff] %v7938_v17  ;;  %v7943_v36 = vpop.eup %4831  ;;  %4843 = vrcp.f32 %v7926_v10  ;;  %2893 = vadd.xlane.f32.xlu2 %v2892_v27  ;;  %2917 = vadd.xlane.f32.xlu0 %v2916_v35  ;;  %v2704_v27 = vsub.f32 %v4950_v26, %v7691_v48  ;;  %v2773_v35 = vmul.f32 1.442695, %v2703_v4  ;;  %v2943_v4 = vadd.f32 %v7938_v17, %v7930_v61  ;;  %v10078_v17 = vld [vmem:[#allocation30_spill] sm:$0xff] }
 0x6ad   :  { %v7948_v22 = vpop.eup %4833  ;;  %4845 = vpow2.f32 %v2785_v47  ;;  %2956 = vadd.xlane.f32.xlu1 %v2955_v56  ;;  %v7952_v59 = vpop.xlane.xlu1 %2929  ;;  %v3196_v47 = vmul.f32 %v7943_v36, %v7912_v40  ;;  %v2737_v56 = vsub.f32 %v10071_v44, %v7727_v39  ;;  %vm3201_vm3 = vweird.f32 %v7943_v36 }
 0x6ae   :  { %10066 = vst [vmem:[#allocation38_spill] sm:$0xff] %v7948_v22  ;;  %v7954_v16 = vpop.eup %4835  ;;  %4847 = vrcp.f32 %v7952_v59  ;;  %v2775_v9 = vmul.f32 1.442695, %v2704_v27  ;;  %v3189_v25 = vand.u32 2147483647, %v7952_v59  ;;  %vm8033_vm13 = vmor %vm3200_vm12, %vm3201_vm3  ;;  %vm3185_vm2 = vweird.f32 %v7952_v59 }
 0x6af   :  { %10068 = vst [vmem:[#allocation39_spill] sm:$0xff] %v7954_v16  ;;  %v7957_v54 = vpop.eup %4837  ;;  %4849 = vpow2.f32 %v2787_v24  ;;  %v2855_v24 = vmul.f32 1.442695, %v2744_v21  ;;  %v2841_v21 = vmul.f32 1.442695, %v2737_v56 }
 0x6b0   :  { %10069 = vst [vmem:[#allocation58_spill] sm:$0xff] %v7957_v54  ;;  %v7962_v55 = vpop.eup %4839  ;;  %4851 = vpow2.f32 %v2837_v31  ;;  %v2967_v48 = vadd.f32 %v7957_v54, %v7954_v16  ;;  %v3197_v31 = vsub.f32 1.0, %v3196_v47  ;;  %v8066_v16 = vld [vmem:[%s9651_s5 + $0x2e8] sm:$0xff]  ;;  %vm3190_vm6 = vcmp.eq.f32.partialorder %v3189_v25, 8.507059e+37 }
 0x6b1   :  { %10070 = vst [vmem:[#allocation59_spill] sm:$0xff] %v7962_v55  ;;  %v7966_v0 = vpop.eup %4841  ;;  %4853 = vpow2.f32 %v2839_v58  ;;  %v2895_v44 = vadd.f32 %v7962_v55, %v7948_v22  ;;  %vm3688_vm7 = vcmp.ge.f32.partialorder %v8066_v16, 0.1  ;;  %v4001_v16 = vld [vmem:[%s9650_s4 + $0x8] sm:$0xff] }
 0x6b2   :  { %10072 = vst [vmem:[#allocation33_spill] sm:$0xff] %v7966_v0  ;;  %v7970_v49 = vpop.eup %4843  ;;  %4855 = vpow2.f32 %v2831_v34  ;;  %v2843_v34 = vmul.f32 1.442695, %v2738_v7 }
 0x6b3   :  { %v7976_v26 = vpop.eup %4845  ;;  %4857 = vpow2.f32 %v2773_v35  ;;  %v3136_v32 = vmul.f32 %v7970_v49, %v7926_v10  ;;  %vm3141_vm14 = vweird.f32 %v7970_v49 }
 0x6b4   :  { %v7980_v39 = vpop.eup %4847  ;;  %4859 = vpow2.f32 %v2853_v46  ;;  %2968 = vadd.xlane.f32.xlu0 %v2967_v48  ;;  %2944 = vadd.xlane.f32.xlu2 %v2943_v4  ;;  %v3198_v46 = vmul.f32 %v7943_v36, %v3197_v31  ;;  %v10077_v48 = vld [vmem:[#allocation24_spill] sm:$0xff]  ;;  %v3206_v4 = vand.u32 2147483648, %v7912_v40 }
 0x6b5   :  { %v7982_v58 = vpop.eup %4849  ;;  %4861 = vpow2.f32 %v2855_v24  ;;  %v3181_v27 = vmul.f32 %v7980_v39, %v7952_v59  ;;  %2896 = vadd.xlane.f32.xlu1 %v2895_v44  ;;  %v7988_v35 = vpop.xlane.xlu1 %2926  ;;  %v3137_v60 = vsub.f32 1.0, %v3136_v32  ;;  %vm3186_vm9 = vweird.f32 %v7980_v39 }
 0x6b6   :  { %v7990_v47 = vpop.eup %4851  ;;  %4863 = vrcp.f32 %v7988_v35  ;;  %vm8046_vm8 = vmor %vm3185_vm2, %vm3186_vm9  ;;  %v3176_v53 = vand.u32 2147483648, %v7988_v35  ;;  %vm3170_vm15 = vweird.f32 %v7988_v35 }
 0x6b7   :  { %10074 = vst [vmem:[#allocation34_spill] sm:$0xff] %v7990_v47  ;;  %v7993_v56 = vpop.eup %4853  ;;  %4865 = vpow2.f32 %v2775_v9  ;;  %v3182_v7 = vsub.f32 1.0, %v3181_v27  ;;  %v2907_v9 = vadd.f32 %v7982_v58, %v7976_v26  ;;  %v3204_v27 = vand.u32 2147483647, %v7912_v40 }
 0x6b8   :  { %10075 = vst [vmem:[#allocation60_spill] sm:$0xff] %v7993_v56  ;;  %v7996_v24 = vpop.eup %4855  ;;  %4867 = vpow2.f32 %v2841_v21  ;;  %v2946_v21 = vadd.f32 %v7993_v56, %v7990_v47 }
 0x6b9   :  { %10076 = vst [vmem:[#allocation61_spill] sm:$0xff] %v7996_v24  ;;  %v8002_v61 = vpop.eup %4857  ;;  %4869 = vpow2.f32 %v2843_v34  ;;  %v3183_v20 = vmul.f32 %v7980_v39, %v3182_v7  ;;  %v3199_v34 = vadd.f32 %v7943_v36, %v3198_v46  ;;  %v3191_v7 = vand.u32 2147483648, %v7952_v59  ;;  %v8080_v46 = vld [vmem:[%s9651_s5 + $0x2d0] sm:$0xff] }
 0x6ba   :  { %v8007_v31 = vpop.eup %4859  ;;  %v2940_v56 = vadd.f32 %v7996_v24, %v7966_v0  ;;  %vm3205_vm1 = vcmp.eq.f32.partialorder %v3204_v27, 8.507059e+37  ;;  %vm3685_vm11 = vcmp.ge.f32.partialorder %v8080_v46, 0.1  ;;  %v4002_v46 = vld [vmem:[%s9650_s4 + $0x10] sm:$0xff] }
 0x6bb   :  { %10079 = vst [vmem:[#allocation24_spill] sm:$0xff] %v8007_v31  ;;  %v8014_v44 = vpop.eup %4861  ;;  %v3184_v32 = vadd.f32 %v7980_v39, %v3183_v20  ;;  %v3138_v20 = vmul.f32 %v7970_v49, %v3137_v60  ;;  %v3207_v60 = vor.u32 1.1754944e-38, %v3206_v4  ;;  %v3203_v27 = vsel %vm8033_vm13, %v7943_v36, %v3199_v34  ;;  %v8061_v4 = vld [vmem:[%s9651_s5 + $0x2e0] sm:$0xff]  ;;  %vm8168_vm13 = vmor %vm3140_vm10, %vm3141_vm14 }
 0x6bc   :  { %10080 = vst [vmem:[#allocation30_spill] sm:$0xff] %v8014_v44  ;;  %v8020_v62 = vpop.eup %4863  ;;  %2908 = vadd.xlane.f32.xlu0 %v2907_v9  ;;  %v2958_v59 = vadd.f32 %v8014_v44, %v8007_v31  ;;  %vm3687_vm5 = vcmp.ge.f32.partialorder %v8061_v4, 0.1 }
 0x6bd   :  { %v8027_v47 = vpop.eup %4865  ;;  %v3166_v40 = vmul.f32 %v8020_v62, %v7988_v35  ;;  %2947 = vadd.xlane.f32.xlu1 %v2946_v21  ;;  %v8040_v9 = vpop.xlane.xlu1 %2923  ;;  %v3192_v21 = vor.u32 1.1754944e-38, %v3191_v7  ;;  %v3188_v44 = vsel %vm8046_vm8, %v7980_v39, %v3184_v32  ;;  %v3174_v7 = vand.u32 2147483647, %v7988_v35 }
 0x6be   :  { %v8042_v24 = vpop.eup %4867  ;;  %4871 = vrcp.f32 %v8040_v9  ;;  %v3208_v36 = vsel %vm3205_vm1, %v3207_v60, %v3203_v27  ;;  %vm3171_vm4 = vweird.f32 %v8020_v62  ;;  %v8099_v60 = vld [vmem:[%s9651_s5 + $0x2d8] sm:$0xff] }
 0x6bf   :  { %10083 = vst [vmem:[#allocation62_spill] sm:$0xff] %v8042_v24  ;;  %v8053_v0 = vpop.eup %4869  ;;  %v3167_v54 = vsub.f32 1.0, %v3166_v40  ;;  %v3493_v40 = vmul.f32 %v7699_v12, %v3208_v36  ;;  %v3494_v31 = vmul.f32 %v7701_v6, %v3208_v36  ;;  %v3193_v19 = vsel %vm3190_vm6, %v3192_v21, %v3188_v44  ;;  %v10089_v44 = vld [vmem:[#allocation31_spill] sm:$0xff]  ;;  %vm8121_vm3 = vmor %vm3170_vm15, %vm3171_vm4  ;;  %v8134_v36 = vld [vmem:[%s9651_s5 + $0x2c0] sm:$0xff] }
 0x6c0   :  { %10086 = vst [vmem:[#allocation63_spill] sm:$0xff] %v8053_v0  ;;  %v3491_v25 = vmul.f32 %v7711_v38, %v3193_v19  ;;  %v3492_v32 = vmul.f32 %v10089_v44, %v3193_v19  ;;  %v3139_v38 = vadd.f32 %v7970_v49, %v3138_v20  ;;  %vm8125_vm9 = vcmp.eq.f32.partialorder %v3174_v7, 8.507059e+37 }
 0x6c1   :  { %v3168_v34 = vmul.f32 %v8020_v62, %v3167_v54  ;;  %3558 = vst [vmem:[#allocation6 + $0x2e0] sm:$0xff] %v3493_v40  ;;  %v8091_v6 = vmul.f32 1.1111112, %v3493_v40  ;;  %v8093_v39 = vmul.f32 1.1111112, %v3494_v31  ;;  %v10094_v44 = vand.u32 2147483648, %v7926_v10 }
 0x6c2   :  { %3559 = vst [vmem:[#allocation6 + $0x2e8] sm:$0xff] %v3494_v31  ;;  %v8106_v42 = vmul.f32 1.1111112, %v3491_v25  ;;  %vm3686_vm12 = vcmp.ge.f32.partialorder %v8099_v60, 0.1  ;;  %vm3155_vm6 = vweird.f32 %v8040_v9  ;;  %v8215_v54 = vld [vmem:[%s9651_s5 + $0x2b8] sm:$0xff] }
 0x6c3   :  { %v3169_v12 = vadd.f32 %v8020_v62, %v3168_v34  ;;  %v3815_v20 = vsel %vm3687_vm5, %v8091_v6, 0.0  ;;  %v3816_v31 = vsel %vm3688_vm7, %v8093_v39, 0.0  ;;  %3556 = vst [vmem:[#allocation6 + $0x2d0] sm:$0xff] %v3491_v25  ;;  %v8139_v40 = vmul.f32 1.1111112, %v3492_v32  ;;  %v8147_v25 = vld [vmem:[%s9651_s5 + $0x2c8] sm:$0xff] }
 0x6c4   :  { %v8101_v21 = vpop.eup %4871  ;;  %2959 = vadd.xlane.f32.xlu0 %v2958_v59  ;;  %3880 = vst [vmem:[#allocation7 + $0x2e0] sm:$0xff] %v3815_v20  ;;  %v3813_v7 = vsel %vm3685_vm11, %v8106_v42, 0.0  ;;  %v3147_v20 = vor.u32 1.1754944e-38, %v10094_v44  ;;  %v10095_v59 = vld [vmem:[#allocation26_spill] sm:$0xff]  ;;  %vm3683_vm1 = vcmp.ge.f32.partialorder %v8134_v36, 0.1 }
 0x6c5   :  { %v3151_v19 = vmul.f32 %v8101_v21, %v8040_v9  ;;  %2941 = vadd.xlane.f32.xlu1 %v2940_v56  ;;  %v8111_v27 = vpop.xlane.xlu1 %2935  ;;  %v3177_v56 = vor.u32 1.1754944e-38, %v3176_v53  ;;  %3881 = vst [vmem:[#allocation7 + $0x2e8] sm:$0xff] %v3816_v31  ;;  %v3173_v53 = vsel %vm8121_vm3, %v8020_v62, %v3169_v12  ;;  %v3161_v31 = vand.u32 2147483648, %v8040_v9  ;;  %v51_v62 = vld [vmem:[%s9648_s2 + $0x28] sm:$0xff]  ;;  %s4122_s2 = sshll.u32 %s5080_s15, 4  ;;  %s4123_s2 = int_to_ptr.vmem [resolvable:$true] %s4122_s2 }
 0x6c6   :  { %4873 = vrcp.f32 %v8111_v27  ;;  %3878 = vst [vmem:[#allocation7 + $0x2d0] sm:$0xff] %v3813_v7  ;;  %v3814_v12 = vsel %vm3686_vm12, %v8139_v40, 0.0  ;;  %vm3156_vm2 = vweird.f32 %v8101_v21  ;;  %vm3684_vm8 = vcmp.ge.f32.partialorder %v8147_v25, 0.1 }
 0x6c7   :  { %v3152_v34 = vsub.f32 1.0, %v3151_v19  ;;  %v3159_v19 = vand.u32 2147483647, %v8040_v9  ;;  %v3178_v29 = vsel %vm8125_vm9, %v3177_v56, %v3173_v53  ;;  %3557 = vst [vmem:[#allocation6 + $0x2d8] sm:$0xff] %v3492_v32  ;;  %v2898_v32 = vadd.f32 %v8027_v47, %v8002_v61  ;;  %v8185_v56 = vld [vmem:[%s9651_s5 + $0x2b0] sm:$0xff]  ;;  %vm3157_vm4 = vmor %vm3155_vm6, %vm3156_vm2 }
 0x6c8   :  { %v3489_v44 = vmul.f32 %v10095_v59, %v3178_v29  ;;  %v3490_v13 = vmul.f32 %v10096_v8, %v3178_v29  ;;  %3879 = vst [vmem:[#allocation7 + $0x2d8] sm:$0xff] %v3814_v12  ;;  %v8200_v59 = vld [vmem:[%s9651_s5 + $0x2a0] sm:$0xff]  ;;  %v3219_v9 = vand.u32 2147483647, %v8111_v27  ;;  %vm3682_vm15 = vcmp.ge.f32.partialorder %v8215_v54, 0.1 }
 0x6c9   :  { %v3153_v52 = vmul.f32 %v8101_v21, %v3152_v34  ;;  %v3143_v34 = vsel %vm8168_vm13, %v7970_v49, %v3139_v38  ;;  %vm8191_vm10 = vcmp.eq.f32.partialorder %v3159_v19, 8.507059e+37  ;;  %vm3679_vm14 = vcmp.ge.f32.partialorder %v8200_v59, 0.1 }
 0x6ca   :  { %3554 = vst [vmem:[#allocation6 + $0x2c0] sm:$0xff] %v3489_v44  ;;  %v8178_v8 = vmul.f32 1.1111112, %v3489_v44  ;;  %v8180_v10 = vmul.f32 1.1111112, %v3490_v13  ;;  %v3148_v12 = vsel %vm8086_vm0, %v3147_v20, %v3143_v34  ;;  %v3221_v20 = vand.u32 2147483648, %v8111_v27 }
 0x6cb   :  { %v3154_v29 = vadd.f32 %v8101_v21, %v3153_v52  ;;  %v3162_v52 = vor.u32 1.1754944e-38, %v3161_v31  ;;  %3555 = vst [vmem:[#allocation6 + $0x2c8] sm:$0xff] %v3490_v13  ;;  %vm3681_vm0 = vcmp.ge.f32.partialorder %v8185_v56, 0.1  ;;  %v10101_v31 = vld [vmem:[#allocation13_spill] sm:$0xff]  ;;  %vm3215_vm13 = vweird.f32 %v8111_v27 }
 0x6cc   :  { %v4874_v7 = vpop.eup %4873  ;;  %2899 = vadd.xlane.f32.xlu0 %v2898_v32  ;;  %79 = vperm.xlu2 %4545, %v51_v62   ;;  %v3811_v38 = vsel %vm3683_vm1, %v8178_v8, 0.0  ;;  %v3812_v13 = vsel %vm3684_vm8, %v8180_v10, 0.0  ;;  %v3485_v62 = vmul.f32 %v10101_v31, %v3148_v12  ;;  %v10102_v32 = vld [vmem:[#allocation14_spill] sm:$0xff]  ;;  %vm3680_vm9 = vcmp.ge.f32.partialorder %v8228_v43, 0.1 }
 0x6cd   :  { %v3211_v49 = vmul.f32 %v4874_v7, %v8111_v27  ;;  %3876 = vst [vmem:[#allocation7 + $0x2c0] sm:$0xff] %v3811_v38  ;;  %v3158_v19 = vsel %vm3157_vm4, %v8101_v21, %v3154_v29  ;;  %v3486_v34 = vmul.f32 %v10102_v32, %v3148_v12  ;;  %v10103_v38 = vld [vmem:[#allocation22_spill] sm:$0xff]  ;;  %v10104_v29 = vld [vmem:[#allocation19_spill] sm:$0xff]  ;;  %vm3216_vm3 = vweird.f32 %v4874_v7 }
 0x6ce   :  { %3877 = vst [vmem:[#allocation7 + $0x2c8] sm:$0xff] %v3812_v13  ;;  %v3163_v35 = vsel %vm8191_vm10, %v3162_v52, %v3158_v19  ;;  %v4003_v52 = vld [vmem:[%s9650_s4 + $0x18] sm:$0xff]  ;;  %v2949_v13 = vadd.f32 %v8053_v0, %v8042_v24  ;;  %vm3217_vm2 = vmor %vm3215_vm13, %vm3216_vm3  ;;  %vm3220_vm6 = vcmp.eq.f32.partialorder %v3219_v9, 8.507059e+37  ;;  %v4429_v27 = vld [vmem:[%s9651_s5 + $0x2f0] sm:$0xff] }
 0x6cf   :  { %v3212_v44 = vsub.f32 1.0, %v3211_v49  ;;  %v3487_v21 = vmul.f32 %v10103_v38, %v3163_v35  ;;  %v3488_v51 = vmul.f32 %v10104_v29, %v3163_v35  ;;  %3550 = vst [vmem:[#allocation6 + $0x2a0] sm:$0xff] %v3485_v62  ;;  %v8233_v49 = vmul.f32 1.1111112, %v3485_v62 }
 0x6d0   :  { %3551 = vst [vmem:[#allocation6 + $0x2a8] sm:$0xff] %v3486_v34  ;;  %v3744_v12 = vmul.f32 1.1111112, %v3486_v34  ;;  %v3222_v34 = vor.u32 1.1754944e-38, %v3221_v20  ;;  %v4430_v20 = vld [vmem:[%s9651_s5 + $0x2f8] sm:$0xff] }
 0x6d1   :  { %v3213_v53 = vmul.f32 %v4874_v7, %v3212_v44  ;;  %3552 = vst [vmem:[#allocation6 + $0x2b0] sm:$0xff] %v3487_v21  ;;  %v3745_v19 = vmul.f32 1.1111112, %v3487_v21  ;;  %v3746_v31 = vmul.f32 1.1111112, %v3488_v51  ;;  %v3807_v62 = vsel %vm3679_vm14, %v8233_v49, 0.0 }
 0x6d2   :  { %v10105_v44 = vsub.f32 %v10077_v48, %v7889_v37  ;;  %3553 = vst [vmem:[#allocation6 + $0x2b8] sm:$0xff] %v3488_v51  ;;  %v3808_v29 = vsel %vm3680_vm9, %v3744_v12, 0.0  ;;  %v10106_v48 = vsub.f32 %v10078_v17, %v7889_v37  ;;  %vm3689_vm10 = vcmp.ge.f32.partialorder %v4429_v27, 0.1 }
 0x6d3   :  { %v3214_v32 = vadd.f32 %v4874_v7, %v3213_v53  ;;  %v3809_v38 = vsel %vm3681_vm0, %v3745_v19, 0.0  ;;  %v3810_v21 = vsel %vm3682_vm15, %v3746_v31, 0.0  ;;  %3872 = vst [vmem:[#allocation7 + $0x2a0] sm:$0xff] %v3807_v62  ;;  %vm3690_vm4 = vcmp.ge.f32.partialorder %v4430_v20, 0.1 }
 0x6d4   :  { %v2825_v35 = vmul.f32 1.442695, %v10105_v44  ;;  %2950 = vadd.xlane.f32.xlu0 %v2949_v13  ;;  %4021 = vperm.xlu2 %4545, %v4003_v52   ;;  %v2827_v53 = vmul.f32 1.442695, %v10106_v48  ;;  %3874 = vst [vmem:[#allocation7 + $0x2b0] sm:$0xff] %v3809_v38  ;;  %v10107_v13 = vld [vmem:[#allocation20_spill] sm:$0xff] }
 0x6d5   :  { %v3218_v51 = vsel %vm3217_vm2, %v4874_v7, %v3214_v32  ;;  %3875 = vst [vmem:[#allocation7 + $0x2b8] sm:$0xff] %v3810_v21  ;;  %v10108_v44 = vld [vmem:[#allocation44_spill] sm:$0xff]  ;;  %v2889_v7 = vadd.f32 %v7924_v28, %v7893_v15 }
 0x6d6   :  { %v3223_v52 = vsel %vm3220_vm6, %v3222_v34, %v3218_v51  ;;  %3873 = vst [vmem:[#allocation7 + $0x2a8] sm:$0xff] %v3808_v29  ;;  %4875 = vpow2.f32 %v2825_v35 }
 0x6d7   :  { %v3495_v62 = vmul.f32 %v10107_v13, %v3223_v52  ;;  %v3496_v0 = vmul.f32 %v10108_v44, %v3223_v52  ;;  %4877 = vpow2.f32 %v2827_v53 }
 0x6d9   :  { %3560 = vst [vmem:[#allocation6 + $0x2f0] sm:$0xff] %v3495_v62  ;;  %v3753_v37 = vmul.f32 1.1111112, %v3495_v62  ;;  %v3754_v17 = vmul.f32 1.1111112, %v3496_v0 }
 0x6da   :  { %3561 = vst [vmem:[#allocation6 + $0x2f8] sm:$0xff] %v3496_v0 }
 0x6db   :  { %v3817_v9 = vsel %vm3689_vm10, %v3753_v37, 0.0  ;;  %4463 = vmatpush.xpose.msk.msrb.mxu2 %vm3689_vm10, %v3753_v37  ;;  %v3818_v32 = vsel %vm3690_vm4, %v3754_v17, 0.0  ;;  %4479 = vmatpush.xpose.msk.msrb.mxu3 %vm3690_vm4, %v3754_v17 }
 0x6dc   :  { %2890 = vadd.xlane.f32.xlu0 %v2889_v7  ;;  %3882 = vst [vmem:[#allocation7 + $0x2f0] sm:$0xff] %v3817_v9  ;;  %v8267_v34 = vpop.eup %4875 }
 0x6dd   :  { %3883 = vst [vmem:[#allocation7 + $0x2f8] sm:$0xff] %v3818_v32  ;;  %v8269_v35 = vpop.eup %4877 }
 0x6de   :  { %10109 = vst [vmem:[#allocation31_spill] sm:$0xff] %v8267_v34  ;;  %v2937_v0 = vadd.f32 %v8269_v35, %v8267_v34 }
 0x6df   :  { %10110 = vst [vmem:[#allocation26_spill] sm:$0xff] %v8269_v35  ;;  %4464 = vmatpush.xpose.msk.msrb.mxu2 %vm3687_vm5, %v8091_v6  ;;  %4480 = vmatpush.xpose.msk.msrb.mxu3 %vm3688_vm7, %v8093_v39 }
 0x6e3   :  { %4465 = vmatpush.xpose.msk.msrb.mxu2 %vm3685_vm11, %v8106_v42  ;;  %4481 = vmatpush.xpose.msk.msrb.mxu3 %vm3686_vm12, %v8139_v40 }
 0x6e4   :  { %2938 = vadd.xlane.f32.xlu0 %v2937_v0 }
 0x6e7   :  { %4466 = vmatpush.xpose.msk.msrb.mxu2 %vm3683_vm1, %v8178_v8  ;;  %4482 = vmatpush.xpose.msk.msrb.mxu3 %vm3684_vm8, %v8180_v10 }
 0x6eb   :  { %4467 = vmatpush.xpose.msk.msrb.mxu2 %vm3681_vm0, %v3745_v19  ;;  %4483 = vmatpush.xpose.msk.msrb.mxu3 %vm3682_vm15, %v3746_v31 }
 0x6ef   :  { %4468 = vmatpush.xpose.msk.msrb.mxu2 %vm3679_vm14, %v8233_v49  ;;  %4484 = vmatpush.xpose.msk.msrb.mxu3 %vm3680_vm9, %v3744_v12 }
 0x6f7   :  { %v8303_v4 = vpop.xlane.xlu2 %2971 }
 0x6f8   :  { %10111 = vst [vmem:[#allocation21_spill] sm:$0xff] %v8303_v4  ;;  %4011 = vperm.xlu0 %4544, %v4001_v16   ;;  %4879 = vrcp.f32 %v8303_v4  ;;  %v3401_v48 = vand.u32 2147483648, %v8303_v4 }
 0x6fa   :  { %v8370_v9 = vor.u32 1.1754944e-38, %v3401_v48 }
 0x6fc   :  { %10119 = vst [vmem:[#allocation65_spill] sm:$0xff] %v8370_v9 }
 0x6fe   :  { %v8329_v10 = vpop.eup %4879 }
 0x6ff   :  { %v8308_v6 = vpop.xlane.xlu2 %2911  ;;  %v8310_v39 = vpop.xlane.xlu1 %2974  ;;  %10115 = vst [vmem:[#allocation19_spill] sm:$0xff] %v8329_v10  ;;  %v3391_v54 = vmul.f32 %v8329_v10, %v8303_v4 }
 0x700   :  { %4016 = vperm.xlu0 %4544, %v4002_v46   ;;  %10112 = vst [vmem:[#allocation13_spill] sm:$0xff] %v8310_v39  ;;  %4881 = vrcp.f32 %v8310_v39  ;;  %v3416_v51 = vand.u32 2147483648, %v8310_v39  ;;  %v3101_v27 = vand.u32 2147483648, %v8308_v6  ;;  %vm3095_vm8 = vweird.f32 %v8308_v6 }
 0x701   :  { %4883 = vrcp.f32 %v8308_v6  ;;  %v3392_v38 = vsub.f32 1.0, %v3391_v54 }
 0x702   :  { %v8376_v46 = vor.u32 1.1754944e-38, %v3416_v51  ;;  %v8378_v54 = vor.u32 1.1754944e-38, %v3101_v27 }
 0x703   :  { %v3393_v62 = vmul.f32 %v8329_v10, %v3392_v38 }
 0x704   :  { %10120 = vst [vmem:[#allocation66_spill] sm:$0xff] %v8376_v46 }
 0x705   :  { %v8392_v51 = vadd.f32 %v8329_v10, %v3393_v62 }
 0x706   :  { %v8334_v59 = vpop.eup %4881 }
 0x707   :  { %v8312_v60 = vpop.xlane.xlu0 %2977  ;;  %v8314_v43 = vpop.xlane.xlu2 %2962  ;;  %10117 = vst [vmem:[#allocation44_spill] sm:$0xff] %v8334_v59  ;;  %v3406_v21 = vmul.f32 %v8334_v59, %v8310_v39 }
 0x708   :  { %10113 = vst [vmem:[#allocation14_spill] sm:$0xff] %v8314_v43  ;;  %v8320_v40 = vpop.xlane.xlu1 %2914  ;;  %4885 = vrcp.f32 %v8312_v60  ;;  %v8339_v49 = vpop.eup %4883  ;;  %v3431_v38 = vand.u32 2147483648, %v8312_v60  ;;  %v3356_v46 = vand.u32 2147483648, %v8314_v43 }
 0x709   :  { %4887 = vrcp.f32 %v8320_v40  ;;  %v3091_v29 = vmul.f32 %v8339_v49, %v8308_v6  ;;  %v3407_v37 = vsub.f32 1.0, %v3406_v21  ;;  %v3116_v44 = vand.u32 2147483648, %v8320_v40  ;;  %10121 = vst [vmem:[#allocation67_spill] sm:$0xff] %v8392_v51 }
 0x70a   :  { %4889 = vrcp.f32 %v8314_v43  ;;  %v8404_v14 = vor.u32 1.1754944e-38, %v3431_v38  ;;  %vm3096_vm11 = vweird.f32 %v8339_v49  ;;  %vm3110_vm12 = vweird.f32 %v8320_v40 }
 0x70b   :  { %v3092_v17 = vsub.f32 1.0, %v3091_v29  ;;  %v3408_v27 = vmul.f32 %v8334_v59, %v3407_v37  ;;  %v8409_v18 = vor.u32 1.1754944e-38, %v3116_v44  ;;  %vm8582_vm4 = vmor %vm3095_vm8, %vm3096_vm11 }
 0x70c   :  { %10123 = vst [vmem:[#allocation69_spill] sm:$0xff] %v8404_v14 }
 0x70d   :  { %v3093_v35 = vmul.f32 %v8339_v49, %v3092_v17 }
 0x70e   :  { %v8347_v31 = vpop.eup %4885 }
 0x70f   :  { %v8316_v42 = vpop.xlane.xlu0 %2980  ;;  %v8318_v36 = vpop.xlane.xlu2 %2902  ;;  %v3421_v52 = vmul.f32 %v8347_v31, %v8312_v60  ;;  %v8417_v63 = vadd.f32 %v8339_v49, %v3093_v35 }
 0x710   :  { %10114 = vst [vmem:[#allocation22_spill] sm:$0xff] %v8316_v42  ;;  %v8331_v56 = vpop.xlane.xlu1 %2965  ;;  %v8354_v53 = vpop.eup %4887  ;;  %v3446_v17 = vand.u32 2147483648, %v8316_v42  ;;  %v3056_v28 = vand.u32 2147483648, %v8318_v36 }
 0x711   :  { %10116 = vst [vmem:[#allocation20_spill] sm:$0xff] %v8331_v56  ;;  %v8359_v20 = vpop.eup %4889  ;;  %v3106_v16 = vmul.f32 %v8354_v53, %v8320_v40  ;;  %v3422_v48 = vsub.f32 1.0, %v3421_v52  ;;  %vm3111_vm5 = vweird.f32 %v8354_v53 }
 0x712   :  { %10118 = vst [vmem:[#allocation64_spill] sm:$0xff] %v8359_v20  ;;  %v3346_v21 = vmul.f32 %v8359_v20, %v8314_v43  ;;  %v8434_v38 = vor.u32 1.1754944e-38, %v3446_v17  ;;  %vm8566_vm10 = vmor %vm3110_vm12, %vm3111_vm5 }
 0x713   :  { %v3107_v9 = vsub.f32 1.0, %v3106_v16  ;;  %v3423_v51 = vmul.f32 %v8347_v31, %v3422_v48  ;;  %v8414_v16 = vadd.f32 %v8334_v59, %v3408_v27  ;;  %v8425_v48 = vor.u32 1.1754944e-38, %v3356_v46 }
 0x714   :  { %v3347_v37 = vsub.f32 1.0, %v3346_v21  ;;  %10126 = vst [vmem:[#allocation72_spill] sm:$0xff] %v8434_v38 }
 0x715   :  { %10124 = vst [vmem:[#allocation70_spill] sm:$0xff] %v8414_v16  ;;  %v3108_v44 = vmul.f32 %v8354_v53, %v3107_v9  ;;  %v8443_v46 = vadd.f32 %v8347_v31, %v3423_v51 }
 0x716   :  { %10125 = vst [vmem:[#allocation71_spill] sm:$0xff] %v8425_v48  ;;  %v3348_v35 = vmul.f32 %v8359_v20, %v3347_v37 }
 0x717   :  { %v8324_v25 = vpop.xlane.xlu0 %2983  ;;  %v8326_v8 = vpop.xlane.xlu2 %2953  ;;  %10127 = vst [vmem:[#allocation73_spill] sm:$0xff] %v8443_v46  ;;  %v8452_v43 = vadd.f32 %v8354_v53, %v3108_v44 }
 0x718   :  { %v8364_v13 = vpop.xlane.xlu1 %2905  ;;  %v3461_v17 = vand.u32 2147483648, %v8324_v25  ;;  %v3311_v22 = vand.u32 2147483648, %v8326_v8  ;;  %vm3455_vm6 = vweird.f32 %v8324_v25  ;;  %v10147_v59 = vand.u32 2147483647, %v8324_v25 }
 0x719   :  { %vm3065_vm12 = vweird.f32 %v8364_v13 }
 0x71a   :  { %vm8623_vm11 = vcmp.eq.f32.partialorder %v10147_v59, 8.507059e+37 }
 0x71f   :  { %v8342_v12 = vpop.xlane.xlu0 %2917  ;;  %v8344_v19 = vpop.xlane.xlu2 %2893 }
 0x720   :  { %4891 = vrcp.f32 %v8342_v12  ;;  %v8429_v27 = vpop.xlane.xlu1 %2956  ;;  %v3131_v46 = vand.u32 2147483648, %v8342_v12  ;;  %v3129_v51 = vand.u32 2147483647, %v8342_v12  ;;  %vm3125_vm1 = vweird.f32 %v8342_v12 }
 0x721   :  { %4893 = vrcp.f32 %v8316_v42 }
 0x722   :  { %4895 = vrcp.f32 %v8331_v56  ;;  %vm3130_vm15 = vcmp.eq.f32.partialorder %v3129_v51, 8.507059e+37  ;;  %v4418_v51 = vld [vmem:[%s9651_s5 + $0x298] sm:$0xff] }
 0x723   :  { %4897 = vrcp.f32 %v8318_v36  ;;  %vm3678_vm13 = vcmp.ge.f32.partialorder %v4418_v51, 0.1 }
 0x724   :  { %4899 = vrcp.f32 %v8324_v25 }
 0x725   :  { %4901 = vrcp.f32 %v8364_v13 }
 0x726   :  { %v8368_v7 = vpop.eup %4891  ;;  %4903 = vrcp.f32 %v8326_v8 }
 0x727   :  { %v8383_v29 = vpop.xlane.xlu0 %2968  ;;  %v3121_v32 = vmul.f32 %v8368_v7, %v8342_v12  ;;  %v8389_v0 = vpop.eup %4893  ;;  %vm3126_vm7 = vweird.f32 %v8368_v7 }
 0x728   :  { %v8397_v34 = vpop.xlane.xlu2 %2944  ;;  %v8399_v52 = vpop.eup %4895  ;;  %vm8491_vm0 = vmor %vm3125_vm1, %vm3126_vm7 }
 0x729   :  { %10122 = vst [vmem:[#allocation68_spill] sm:$0xff] %v8397_v34  ;;  %v3436_v34 = vmul.f32 %v8389_v0, %v8316_v42  ;;  %v3122_v24 = vsub.f32 1.0, %v3121_v32  ;;  %v3361_v21 = vmul.f32 %v8399_v52, %v8331_v56  ;;  %v8422_v62 = vpop.eup %4897  ;;  %v3371_v32 = vand.u32 2147483648, %v8331_v56 }
 0x72a   :  { %v8431_v16 = vpop.eup %4899  ;;  %v3046_v37 = vmul.f32 %v8422_v62, %v8318_v36  ;;  %vm3051_vm8 = vweird.f32 %v8422_v62 }
 0x72b   :  { %v8440_v9 = vpop.eup %4901  ;;  %v3437_v14 = vsub.f32 1.0, %v3436_v34  ;;  %v3123_v48 = vmul.f32 %v8368_v7, %v3122_v24  ;;  %v3362_v4 = vsub.f32 1.0, %v3361_v21  ;;  %v8454_v56 = vor.u32 1.1754944e-38, %v3371_v32 }
 0x72c   :  { %v3451_v34 = vmul.f32 %v8431_v16, %v8324_v25  ;;  %v8460_v24 = vadd.f32 %v8359_v20, %v3348_v35  ;;  %v8462_v21 = vor.u32 1.1754944e-38, %v3056_v28  ;;  %v3061_v38 = vmul.f32 %v8440_v9, %v8364_v13  ;;  %v8477_v20 = vpop.eup %4903 }
 0x72d   :  { %10128 = vst [vmem:[#allocation74_spill] sm:$0xff] %v8454_v56  ;;  %v3124_v32 = vadd.f32 %v8368_v7, %v3123_v48  ;;  %v3438_v28 = vmul.f32 %v8389_v0, %v3437_v14  ;;  %v3363_v35 = vmul.f32 %v8399_v52, %v3362_v4  ;;  %v8475_v56 = vor.u32 1.1754944e-38, %v3461_v17 }
 0x72e   :  { %10129 = vst [vmem:[#allocation75_spill] sm:$0xff] %v8460_v24  ;;  %v3047_v24 = vsub.f32 1.0, %v3046_v37  ;;  %v3452_v44 = vsub.f32 1.0, %v3451_v34  ;;  %v3062_v14 = vsub.f32 1.0, %v3061_v38  ;;  %v3071_v4 = vand.u32 2147483648, %v8364_v13  ;;  %v10134_v34 = vld [vmem:[#allocation17_spill] sm:$0xff]  ;;  %v8507_v38 = vpop.xlane.xlu1 %2896 }
 0x72f   :  { %v8438_v15 = vpop.xlane.xlu0 %2908  ;;  %v3132_v17 = vor.u32 1.1754944e-38, %v3131_v46  ;;  %v4417_v46 = vld [vmem:[%s9651_s5 + $0x290] sm:$0xff]  ;;  %v8536_v42 = vmul.f32 %v8477_v20, %v8326_v8  ;;  %vm3456_vm2 = vweird.f32 %v8431_v16  ;;  %vm3066_vm5 = vweird.f32 %v8440_v9 }
 0x730   :  { %4905 = vrcp.f32 %v8438_v15  ;;  %v80_v39 = vpop.permute.xlu2 %79  ;;  %v3453_v37 = vmul.f32 %v8431_v16, %v3452_v44  ;;  %vm3677_vm9 = vcmp.ge.f32.partialorder %v4417_v46, 0.1 }
 0x731   :  { %v8483_v5 = vadd.f32 %v10130_v2, %v80_v39  ;;  %v8496_v48 = vadd.f32 %v10134_v34, %v80_v39  ;;  %v10136_v2 = vand.u32 2147483647, %v8320_v40  ;;  %4907 = vrcp.f32 %v8344_v19  ;;  %v4414_v40 = vld [vmem:[%s9651_s5 + $0x278] sm:$0xff] }
 0x732   :  { %v3128_v39 = vsel %vm8491_vm0, %v8368_v7, %v3124_v32  ;;  %v8522_v34 = vadd.f32 %v8389_v0, %v3438_v28  ;;  %v10140_v7 = vand.u32 2147483647, %v8308_v6  ;;  %4909 = vrcp.f32 %v8507_v38  ;;  %v4415_v6 = vld [vmem:[%s9651_s5 + $0x280] sm:$0xff] }
 0x733   :  { %10131 = vst [vmem:[#allocation16_spill] sm:$0xff] %v8483_v5  ;;  %vm8502_vm14 = vcmp.eq.f32.partialorder %v10136_v2, 8.507059e+37  ;;  %v3048_v2 = vmul.f32 %v8422_v62, %v3047_v24  ;;  %4911 = vrcp.f32 %v8429_v27  ;;  %vm3675_vm1 = vcmp.ge.f32.partialorder %v4415_v6, 0.1 }
 0x734   :  { %10135 = vst [vmem:[#allocation17_spill] sm:$0xff] %v8496_v48  ;;  %vm8529_vm3 = vcmp.eq.f32.partialorder %v10140_v7, 8.507059e+37  ;;  %vm3080_vm0 = vweird.f32 %v8438_v15  ;;  %v10150_v32 = vand.u32 2147483647, %v8364_v13 }
 0x735   :  { %177 = vst [vmem:[#allocation4 + $0x10] sm:$0xff] %v8483_v5  ;;  %v3133_v5 = vsel %vm3130_vm15, %v3132_v17, %v3128_v39  ;;  %v3063_v17 = vmul.f32 %v8440_v9, %v3062_v14  ;;  %v3326_v39 = vand.u32 2147483648, %v8429_v27  ;;  %v8556_v14 = vor.u32 1.1754944e-38, %v3311_v22 }
 0x736   :  { %v8485_v10 = vpop.eup %4905  ;;  %10139 = vst [vmem:[#allocation76_spill] sm:$0xff] %v8522_v34  ;;  %v3483_v28 = vmul.f32 %v7900_v45, %v3133_v5  ;;  %v3484_v24 = vmul.f32 %v7906_v33, %v3133_v5  ;;  %v8544_v34 = vadd.f32 %v8399_v52, %v3363_v35  ;;  %v8547_v45 = vor.u32 1.1754944e-38, %v3071_v4 }
 0x737   :  { %v8498_v12 = vpop.xlane.xlu0 %2959  ;;  %v3076_v55 = vmul.f32 %v8485_v10, %v8438_v15  ;;  %178 = vst [vmem:[#allocation4 + $0x18] sm:$0xff] %v8496_v48  ;;  %v8550_v5 = vpop.eup %4907  ;;  %vm3081_vm7 = vweird.f32 %v8485_v10  ;;  %v3086_v4 = vand.u32 2147483648, %v8438_v15  ;;  %vm8649_vm15 = vcmp.eq.f32.partialorder %v10150_v32, 8.507059e+37 }
 0x738   :  { %3548 = vst [vmem:[#allocation6 + $0x290] sm:$0xff] %v3483_v28  ;;  %v3741_v7 = vmul.f32 1.1111112, %v3483_v28  ;;  %v3742_v44 = vmul.f32 1.1111112, %v3484_v24 }
 0x739   :  { %v3077_v48 = vsub.f32 1.0, %v3076_v55  ;;  %3549 = vst [vmem:[#allocation6 + $0x298] sm:$0xff] %v3484_v24  ;;  %v8553_v55 = vadd.f32 %v8422_v62, %v3048_v2  ;;  %v8571_v2 = vadd.f32 %v8431_v16, %v3453_v37  ;;  %v8587_v37 = vadd.f32 %v8440_v9, %v3063_v17  ;;  %4130 = dma.vmem_to_hbm [thread:$0]  %s4123_s2, 512, %s4125_s14, [#allocation5], %s5081_s16, %s5081_s16, %s5082_s17  }
 0x73a   :  { %v3805_v28 = vsel %vm3677_vm9, %v3741_v7, 0.0  ;;  %4469 = vmatpush.xpose.msk.msrb.mxu2 %vm3677_vm9, %v3741_v7  ;;  %v3806_v35 = vsel %vm3678_vm13, %v3742_v44, 0.0  ;;  %4485 = vmatpush.xpose.msk.msrb.mxu3 %vm3678_vm13, %v3742_v44  ;;  %v3302_v24 = vsub.f32 1.0, %v8536_v42  ;;  %v8590_v7 = vor.u32 1.1754944e-38, %v3326_v39  ;;  %v8599_v44 = vpop.eup %4909  ;;  %vm8659_vm9 = vmor %vm3080_vm0, %vm3081_vm7 }
 0x73b   :  { %v3078_v46 = vmul.f32 %v8485_v10, %v3077_v48  ;;  %3870 = vst [vmem:[#allocation7 + $0x290] sm:$0xff] %v3805_v28  ;;  %v3113_v48 = vsel %vm8566_vm10, %v8354_v53, %v8452_v43  ;;  %v8604_v17 = vmul.f32 %v8550_v5, %v8344_v19  ;;  %v3011_v39 = vand.u32 2147483648, %v8344_v19  ;;  %v4416_v43 = vld [vmem:[%s9651_s5 + $0x288] sm:$0xff] }
 0x73c   :  { %3871 = vst [vmem:[#allocation7 + $0x298] sm:$0xff] %v3806_v35  ;;  %v3118_v28 = vsel %vm8502_vm14, %v8409_v18, %v3113_v48  ;;  %v3098_v53 = vsel %vm8582_vm4, %v8339_v49, %v8417_v63  ;;  %v3084_v35 = vand.u32 2147483647, %v8438_v15  ;;  %vm3676_vm14 = vcmp.ge.f32.partialorder %v4416_v43, 0.1  ;;  %vm8669_vm4 = vmor %vm3455_vm6, %vm3456_vm2 }
 0x73d   :  { %v3481_v33 = vmul.f32 %v7797_v3, %v3118_v28  ;;  %v3079_v48 = vadd.f32 %v8485_v10, %v3078_v46  ;;  %v3482_v63 = vmul.f32 %v7799_v41, %v3118_v28  ;;  %v3103_v49 = vsel %vm8529_vm3, %v8378_v54, %v3098_v53  ;;  %v4413_v3 = vld [vmem:[%s9651_s5 + $0x270] sm:$0xff]  ;;  %v8645_v54 = vpop.eup %4911 }
 0x73e   :  { %v8642_v46 = vmul.f32 %v8599_v44, %v8507_v38  ;;  %v3479_v59 = vmul.f32 %v7775_v50, %v3103_v49  ;;  %v3480_v22 = vmul.f32 %v7781_v1, %v3103_v49  ;;  %vm3050_vm3 = vweird.f32 %v8318_v36 }
 0x73f   :  { %v8576_v51 = vpop.xlane.xlu0 %2899  ;;  %3546 = vst [vmem:[#allocation6 + $0x280] sm:$0xff] %v3481_v33  ;;  %v3739_v41 = vmul.f32 1.1111112, %v3481_v33  ;;  %v3740_v53 = vmul.f32 1.1111112, %v3482_v63  ;;  %v3087_v33 = vor.u32 1.1754944e-38, %v3086_v4  ;;  %v3083_v6 = vsel %vm8659_vm9, %v8485_v10, %v3079_v48 }
 0x740   :  { %3547 = vst [vmem:[#allocation6 + $0x288] sm:$0xff] %v3482_v63  ;;  %4913 = vrcp.f32 %v8576_v51  ;;  %vm3673_vm13 = vcmp.ge.f32.partialorder %v4413_v3, 0.1  ;;  %vm3674_vm10 = vcmp.ge.f32.partialorder %v4414_v40, 0.1  ;;  %v3458_v43 = vsel %vm8669_vm4, %v8431_v16, %v8571_v2  ;;  %v4411_v10 = vld [vmem:[%s9651_s5 + $0x260] sm:$0xff] }
 0x741   :  { %v3803_v32 = vsel %vm3675_vm1, %v3739_v41, 0.0  ;;  %4470 = vmatpush.xpose.msk.msrb.mxu2 %vm3675_vm1, %v3739_v41  ;;  %v3804_v1 = vsel %vm3676_vm14, %v3740_v53, 0.0  ;;  %4486 = vmatpush.xpose.msk.msrb.mxu3 %vm3676_vm14, %v3740_v53  ;;  %v3737_v4 = vmul.f32 1.1111112, %v3479_v59  ;;  %v3738_v63 = vmul.f32 1.1111112, %v3480_v22  ;;  %vm8722_vm1 = vmor %vm3065_vm12, %vm3066_vm5 }
 0x742   :  { %3868 = vst [vmem:[#allocation7 + $0x280] sm:$0xff] %v3803_v32  ;;  %v10157_v41 = vand.u32 2147483647, %v8318_v36  ;;  %v3009_v53 = vand.u32 2147483647, %v8344_v19  ;;  %4915 = vrcp.f32 %v8383_v29  ;;  %vm3085_vm2 = vcmp.eq.f32.partialorder %v3084_v35, 8.507059e+37  ;;  %vm8755_vm5 = vmor %vm3050_vm3, %vm3051_vm8 }
 0x743   :  { %3869 = vst [vmem:[#allocation7 + $0x288] sm:$0xff] %v3804_v1  ;;  %v8695_v48 = vor.u32 1.1754944e-38, %v3011_v39  ;;  %v3801_v15 = vsel %vm3673_vm13, %v3737_v4, 0.0  ;;  %v3802_v32 = vsel %vm3674_vm10, %v3738_v63, 0.0  ;;  %v4412_v16 = vld [vmem:[%s9651_s5 + $0x268] sm:$0xff]  ;;  %v3026_v50 = vand.u32 2147483648, %v8507_v38 }
 0x744   :  { %vm8682_vm7 = vcmp.eq.f32.partialorder %v10157_v41, 8.507059e+37  ;;  %3544 = vst [vmem:[#allocation6 + $0x270] sm:$0xff] %v3479_v59  ;;  %v3088_v41 = vsel %vm3085_vm2, %v3087_v33, %v3083_v6  ;;  %v3384_v2 = vand.u32 2147483647, %v8383_v29  ;;  %v3024_v35 = vand.u32 2147483647, %v8507_v38 }
 0x745   :  { %3866 = vst [vmem:[#allocation7 + $0x270] sm:$0xff] %v3801_v15  ;;  %4471 = vmatpush.xpose.msk.msrb.mxu2 %vm3673_vm13, %v3737_v4  ;;  %v3477_v39 = vmul.f32 %v7976_v26, %v3088_v41  ;;  %v3002_v1 = vsub.f32 1.0, %v8604_v17  ;;  %v3017_v33 = vsub.f32 1.0, %v8642_v46  ;;  %4487 = vmatpush.xpose.msk.msrb.mxu3 %vm3674_vm10, %v3738_v63  ;;  %vm3671_vm6 = vcmp.ge.f32.partialorder %v4411_v10, 0.1  ;;  %v4410_v46 = vld [vmem:[%s9651_s5 + $0x258] sm:$0xff] }
 0x746   :  { %v8707_v59 = vpop.eup %4913  ;;  %3545 = vst [vmem:[#allocation6 + $0x278] sm:$0xff] %v3480_v22  ;;  %v3478_v6 = vmul.f32 %v7982_v58, %v3088_v41  ;;  %v8716_v15 = vsel %vm8623_vm11, %v8475_v56, %v3458_v43  ;;  %vm3672_vm0 = vcmp.ge.f32.partialorder %v4412_v16, 0.1  ;;  %v4409_v58 = vld [vmem:[%s9651_s5 + $0x250] sm:$0xff]  ;;  %v8733_v56 = vmul.f32 %v8645_v54, %v8429_v27  ;;  %v4408_v26 = vld [vmem:[%s9651_s5 + $0x248] sm:$0xff]  ;;  %v4406_v17 = vld [vmem:[%s9651_s5 + $0x238] sm:$0xff] }
 0x747   :  { %v8678_v49 = vpop.xlane.xlu0 %2950  ;;  %3867 = vst [vmem:[#allocation7 + $0x278] sm:$0xff] %v3802_v32  ;;  %v3031_v22 = vmul.f32 %v8707_v59, %v8576_v51  ;;  %v3735_v3 = vmul.f32 1.1111112, %v3477_v39  ;;  %v3039_v13 = vand.u32 2147483647, %v8576_v51  ;;  %v3068_v40 = vsel %vm8722_vm1, %v8440_v9, %v8587_v37 }
 0x748   :  { %3542 = vst [vmem:[#allocation6 + $0x260] sm:$0xff] %v3477_v39  ;;  %v3736_v18 = vmul.f32 1.1111112, %v3478_v6  ;;  %v8743_v4 = vpop.eup %4915  ;;  %v3041_v43 = vand.u32 2147483648, %v8576_v51  ;;  %v3073_v41 = vsel %vm8649_vm15, %v8547_v45, %v3068_v40  ;;  %vm3036_vm11 = vweird.f32 %v8707_v59 }
 0x749   :  { %v3032_v63 = vsub.f32 1.0, %v3031_v22  ;;  %v3799_v32 = vsel %vm3671_vm6, %v3735_v3, 0.0  ;;  %4472 = vmatpush.xpose.msk.msrb.mxu2 %vm3671_vm6, %v3735_v3  ;;  %3543 = vst [vmem:[#allocation6 + $0x268] sm:$0xff] %v3478_v6  ;;  %v3475_v10 = vmul.f32 %v7867_v11, %v3073_v41  ;;  %v3476_v28 = vmul.f32 %v7871_v23, %v3073_v41  ;;  %v4407_v11 = vld [vmem:[%s9651_s5 + $0x240] sm:$0xff] }
 0x74a   :  { %3864 = vst [vmem:[#allocation7 + $0x260] sm:$0xff] %v3799_v32  ;;  %v3800_v37 = vsel %vm3672_vm0, %v3736_v18, 0.0  ;;  %4488 = vmatpush.xpose.msk.msrb.mxu3 %vm3672_vm0, %v3736_v18  ;;  %vm3020_vm12 = vweird.f32 %v8507_v38  ;;  %vm3669_vm8 = vcmp.ge.f32.partialorder %v4409_v58, 0.1  ;;  %vm3670_vm14 = vcmp.ge.f32.partialorder %v4410_v46, 0.1 }
 0x74b   :  { %v3033_v36 = vmul.f32 %v8707_v59, %v3032_v63  ;;  %3865 = vst [vmem:[#allocation7 + $0x268] sm:$0xff] %v3800_v37  ;;  %v3053_v39 = vsel %vm8755_vm5, %v8422_v62, %v8553_v55  ;;  %vm3006_vm15 = vweird.f32 %v8550_v5  ;;  %v3733_v23 = vmul.f32 1.1111112, %v3475_v10  ;;  %v4405_v63 = vld [vmem:[%s9651_s5 + $0x230] sm:$0xff]  ;;  %v4403_v38 = vld [vmem:[%s9651_s5 + $0x220] sm:$0xff] }
 0x74c   :  { %3540 = vst [vmem:[#allocation6 + $0x250] sm:$0xff] %v3475_v10  ;;  %v3734_v16 = vmul.f32 1.1111112, %v3476_v28  ;;  %v3058_v6 = vsel %vm8682_vm7, %v8462_v21, %v3053_v39  ;;  %v3018_v62 = vmul.f32 %v8599_v44, %v3017_v33  ;;  %vm3035_vm3 = vweird.f32 %v8576_v51 }
 0x74d   :  { %v3034_v55 = vadd.f32 %v8707_v59, %v3033_v36  ;;  %3541 = vst [vmem:[#allocation6 + $0x258] sm:$0xff] %v3476_v28  ;;  %v3473_v22 = vmul.f32 %v7831_v57, %v3058_v6  ;;  %vm3005_vm9 = vweird.f32 %v8344_v19  ;;  %v3797_v25 = vsel %vm3669_vm8, %v3733_v23, 0.0  ;;  %4473 = vmatpush.xpose.msk.msrb.mxu2 %vm3669_vm8, %v3733_v23  ;;  %vm8799_vm10 = vmor %vm3035_vm3, %vm3036_vm11  ;;  %v10178_v19 = vld [vmem:[#allocation59_spill] sm:$0xff] }
 0x74e   :  { %v3798_v21 = vsel %vm3670_vm14, %v3734_v16, 0.0  ;;  %4489 = vmatpush.xpose.msk.msrb.mxu3 %vm3670_vm14, %v3734_v16  ;;  %vm3667_vm13 = vcmp.ge.f32.partialorder %v4407_v11, 0.1  ;;  %v3474_v33 = vmul.f32 %v7833_v30, %v3058_v6  ;;  %v8795_v3 = vmul.f32 %v8743_v4, %v8383_v29  ;;  %3862 = vst [vmem:[#allocation7 + $0x250] sm:$0xff] %v3797_v25  ;;  %v10175_v25 = vld [vmem:[#allocation38_spill] sm:$0xff] }
 0x74f   :  { %v8764_v45 = vpop.xlane.xlu0 %2890  ;;  %v3042_v51 = vor.u32 1.1754944e-38, %v3041_v43  ;;  %v3731_v58 = vmul.f32 1.1111112, %v3473_v22  ;;  %vm3668_vm4 = vcmp.ge.f32.partialorder %v4408_v26, 0.1  ;;  %v3003_v18 = vmul.f32 %v8550_v5, %v3002_v1  ;;  %3863 = vst [vmem:[#allocation7 + $0x258] sm:$0xff] %v3798_v21 }
 0x750   :  { %4917 = vrcp.f32 %v8764_v45  ;;  %vm8808_vm7 = vcmp.eq.f32.partialorder %v3009_v53, 8.507059e+37  ;;  %vm3040_vm2 = vcmp.eq.f32.partialorder %v3039_v13, 8.507059e+37  ;;  %v3732_v40 = vmul.f32 1.1111112, %v3474_v33  ;;  %3538 = vst [vmem:[#allocation6 + $0x240] sm:$0xff] %v3473_v22 }
 0x751   :  { %v3038_v46 = vsel %vm8799_vm10, %v8707_v59, %v3034_v55  ;;  %v3019_v53 = vadd.f32 %v8599_v44, %v3018_v62  ;;  %vm3021_vm6 = vweird.f32 %v8599_v44  ;;  %v3795_v1 = vsel %vm3667_vm13, %v3731_v58, 0.0  ;;  %4474 = vmatpush.xpose.msk.msrb.mxu2 %vm3667_vm13, %v3731_v58  ;;  %3539 = vst [vmem:[#allocation6 + $0x248] sm:$0xff] %v3474_v33  ;;  %v4404_v62 = vld [vmem:[%s9651_s5 + $0x228] sm:$0xff]  ;;  %vm8877_vm13 = vmor %vm3005_vm9, %vm3006_vm15  ;;  %v4402_v58 = vld [vmem:[%s9651_s5 + $0x218] sm:$0xff] }
 0x752   :  { %v3043_v13 = vsel %vm3040_vm2, %v3042_v51, %v3038_v46  ;;  %3860 = vst [vmem:[#allocation7 + $0x240] sm:$0xff] %v3795_v1  ;;  %v3796_v59 = vsel %vm3668_vm4, %v3732_v40, 0.0  ;;  %4490 = vmatpush.xpose.msk.msrb.mxu3 %vm3668_vm4, %v3732_v40  ;;  %v2994_v32 = vand.u32 2147483647, %v8764_v45  ;;  %vm3426_vm1 = vweird.f32 %v8347_v31  ;;  %vm8847_vm14 = vmor %vm3020_vm12, %vm3021_vm6  ;;  %v4401_v51 = vld [vmem:[%s9651_s5 + $0x210] sm:$0xff] }
 0x753   :  { %v3471_v41 = vmul.f32 %v8002_v61, %v3043_v13  ;;  %v3472_v9 = vmul.f32 %v8027_v47, %v3043_v13  ;;  %vm8835_vm0 = vcmp.eq.f32.partialorder %v3024_v35, 8.507059e+37  ;;  %vm3665_vm5 = vcmp.ge.f32.partialorder %v4405_v63, 0.1  ;;  %3861 = vst [vmem:[#allocation7 + $0x248] sm:$0xff] %v3796_v59  ;;  %v10191_v47 = vld [vmem:[#allocation13_spill] sm:$0xff] }
 0x754   :  { %vm3666_vm11 = vcmp.ge.f32.partialorder %v4406_v17, 0.1  ;;  %vm3441_vm8 = vweird.f32 %v8389_v0  ;;  %v3004_v61 = vadd.f32 %v8550_v5, %v3003_v18  ;;  %v3027_v35 = vor.u32 1.1754944e-38, %v3026_v50  ;;  %v10172_v50 = vld [vmem:[#allocation22_spill] sm:$0xff]  ;;  %v10179_v18 = vld [vmem:[#allocation44_spill] sm:$0xff] }
 0x755   :  { %v3729_v28 = vmul.f32 1.1111112, %v3471_v41  ;;  %v3730_v36 = vmul.f32 1.1111112, %v3472_v9  ;;  %vm3425_vm3 = vweird.f32 %v8312_v60  ;;  %v3377_v39 = vsub.f32 1.0, %v8795_v3  ;;  %3536 = vst [vmem:[#allocation6 + $0x230] sm:$0xff] %v3471_v41 }
 0x756   :  { %v8824_v43 = vpop.eup %4917  ;;  %4919 = vrcp.f32 %v8498_v12  ;;  %v3023_v23 = vsel %vm8847_vm14, %v8599_v44, %v3019_v53  ;;  %vm3440_vm12 = vweird.f32 %v10172_v50  ;;  %v2996_v16 = vand.u32 2147483648, %v8764_v45  ;;  %3537 = vst [vmem:[#allocation6 + $0x238] sm:$0xff] %v3472_v9  ;;  %v10183_v53 = vld [vmem:[#allocation19_spill] sm:$0xff]  ;;  %v10190_v9 = vld [vmem:[#allocation37_spill] sm:$0xff] }
 0x757   :  { %v2986_v10 = vmul.f32 %v8824_v43, %v8764_v45  ;;  %v3793_v6 = vsel %vm3665_vm5, %v3729_v28, 0.0  ;;  %4475 = vmatpush.xpose.msk.msrb.mxu2 %vm3665_vm5, %v3729_v28  ;;  %v3794_v26 = vsel %vm3666_vm11, %v3730_v36, 0.0  ;;  %4491 = vmatpush.xpose.msk.msrb.mxu3 %vm3666_vm11, %v3730_v36  ;;  %v3028_v44 = vsel %vm8835_vm0, %v3027_v35, %v3023_v23  ;;  %v4400_v28 = vld [vmem:[%s9651_s5 + $0x208] sm:$0xff]  ;;  %v10192_v36 = vld [vmem:[#allocation21_spill] sm:$0xff] }
 0x758   :  { %vm2990_vm10 = vweird.f32 %v8764_v45  ;;  %vm2991_vm4 = vweird.f32 %v8824_v43  ;;  %3858 = vst [vmem:[#allocation7 + $0x230] sm:$0xff] %v3793_v6  ;;  %v3469_v21 = vmul.f32 %v10175_v25, %v3028_v44  ;;  %vm8885_vm2 = vcmp.eq.f32.partialorder %v2994_v32, 8.507059e+37  ;;  %v10220_v25 = vld [vmem:[#allocation70_spill] sm:$0xff] }
 0x759   :  { %v2987_v11 = vsub.f32 1.0, %v2986_v10  ;;  %3859 = vst [vmem:[#allocation7 + $0x238] sm:$0xff] %v3794_v26  ;;  %vm3663_vm6 = vcmp.ge.f32.partialorder %v4403_v38, 0.1  ;;  %v3470_v3 = vmul.f32 %v10178_v19, %v3028_v44  ;;  %v3008_v57 = vsel %vm8877_vm13, %v8550_v5, %v3004_v61  ;;  %vm8921_vm14 = vmor %vm2990_vm10, %vm2991_vm4  ;;  %v4399_v10 = vld [vmem:[%s9651_s5 + $0x200] sm:$0xff]  ;;  %v10196_v44 = vld [vmem:[#allocation43_spill] sm:$0xff] }
 0x75a   :  { %vm3411_vm15 = vweird.f32 %v10179_v18  ;;  %v10180_v40 = vand.u32 2147483647, %v10172_v50  ;;  %3534 = vst [vmem:[#allocation6 + $0x220] sm:$0xff] %v3469_v21  ;;  %v3727_v5 = vmul.f32 1.1111112, %v3469_v21  ;;  %v3013_v17 = vsel %vm8808_vm7, %v8695_v48, %v3008_v57  ;;  %v10189_v48 = vld [vmem:[#allocation25_spill] sm:$0xff] }
 0x75b   :  { %v2988_v22 = vmul.f32 %v8824_v43, %v2987_v11  ;;  %vm3664_vm0 = vcmp.ge.f32.partialorder %v4404_v62, 0.1  ;;  %vm3396_vm5 = vweird.f32 %v10183_v53  ;;  %v10184_v1 = vand.u32 2147483647, %v8312_v60  ;;  %3535 = vst [vmem:[#allocation6 + $0x228] sm:$0xff] %v3470_v3  ;;  %v4462_v50 = vld [vmem:[%s9651_s5 + $0x3f8] sm:$0xff] }
 0x75c   :  { %vm8902_vm9 = vcmp.eq.f32.partialorder %v10180_v40, 8.507059e+37  ;;  %v2997_v32 = vor.u32 1.1754944e-38, %v2996_v16  ;;  %v3728_v30 = vmul.f32 1.1111112, %v3470_v3  ;;  %v3467_v41 = vmul.f32 %v10189_v48, %v3013_v17  ;;  %v8930_v61 = vpop.eup %4919  ;;  %4476 = vmatpush.xpose.msk.msrb.mxu2 %vm3663_vm6, %v3727_v5  ;;  %v4461_v3 = vld [vmem:[%s9651_s5 + $0x3f0] sm:$0xff]  ;;  %v10209_v48 = vld [vmem:[#allocation68_spill] sm:$0xff] }
 0x75d   :  { %v2989_v63 = vadd.f32 %v8824_v43, %v2988_v22  ;;  %vm8913_vm11 = vcmp.eq.f32.partialorder %v10184_v1, 8.507059e+37  ;;  %v3468_v37 = vmul.f32 %v10190_v9, %v3013_v17  ;;  %vm3410_vm7 = vweird.f32 %v10191_v47  ;;  %v10197_v22 = vld [vmem:[#allocation56_spill] sm:$0xff]  ;;  %v10223_v60 = vld [vmem:[#allocation49_spill] sm:$0xff] }
 0x75e   :  { %v3791_v45 = vsel %vm3663_vm6, %v3727_v5, 0.0  ;;  %vm3661_vm13 = vcmp.ge.f32.partialorder %v4401_v51, 0.1  ;;  %vm3662_vm10 = vcmp.ge.f32.partialorder %v4402_v58, 0.1  ;;  %vm3395_vm4 = vweird.f32 %v10192_v36  ;;  %4492 = vmatpush.xpose.msk.msrb.mxu3 %vm3664_vm0, %v3728_v30  ;;  %3532 = vst [vmem:[#allocation6 + $0x210] sm:$0xff] %v3467_v41 }
 0x75f   :  { %v2993_v35 = vsel %vm8921_vm14, %v8824_v43, %v2989_v63  ;;  %3856 = vst [vmem:[#allocation7 + $0x220] sm:$0xff] %v3791_v45  ;;  %v3792_v11 = vsel %vm3664_vm0, %v3728_v30, 0.0  ;;  %v3725_v23 = vmul.f32 1.1111112, %v3467_v41  ;;  %v3726_v38 = vmul.f32 1.1111112, %v3468_v37  ;;  %vm8959_vm0 = vmor %vm3425_vm3, %vm3426_vm1  ;;  %v9006_v41 = vpop.xlane.xlu1 %2947 }
 0x760   :  { %v2998_v16 = vsel %vm8885_vm2, %v2997_v32, %v2993_v35  ;;  %v10193_v6 = vand.u32 2147483647, %v10191_v47  ;;  %v3378_v26 = vmul.f32 %v8743_v4, %v3377_v39  ;;  %3857 = vst [vmem:[#allocation7 + $0x228] sm:$0xff] %v3792_v11  ;;  %vm3659_vm14 = vcmp.ge.f32.partialorder %v4399_v10, 0.1  ;;  %v10200_v39 = vld [vmem:[#allocation23_spill] sm:$0xff]  ;;  %vm8974_vm1 = vmor %vm3440_vm12, %vm3441_vm8 }
 0x761   :  { %v3465_v55 = vmul.f32 %v10196_v44, %v2998_v16  ;;  %v3466_v62 = vmul.f32 %v10197_v22, %v2998_v16  ;;  %v3789_v21 = vsel %vm3661_vm13, %v3725_v23, 0.0  ;;  %v3790_v33 = vsel %vm3662_vm10, %v3726_v38, 0.0  ;;  %4477 = vmatpush.xpose.msk.msrb.mxu2 %vm3661_vm13, %v3725_v23  ;;  %v10203_v5 = vld [vmem:[#allocation42_spill] sm:$0xff]  ;;  %3533 = vst [vmem:[#allocation6 + $0x218] sm:$0xff] %v3468_v37  ;;  %v10207_v51 = vld [vmem:[#allocation76_spill] sm:$0xff]  ;;  %v10208_v32 = vld [vmem:[#allocation73_spill] sm:$0xff] }
 0x762   :  { %vm8948_vm6 = vcmp.eq.f32.partialorder %v10193_v6, 8.507059e+37  ;;  %vm3660_vm2 = vcmp.ge.f32.partialorder %v4400_v28, 0.1  ;;  %v3527_v19 = vmul.f32 %v10200_v39, %v8716_v15  ;;  %v8981_v57 = vmul.f32 %v8477_v20, %v3302_v24  ;;  %3854 = vst [vmem:[#allocation7 + $0x210] sm:$0xff] %v3789_v21  ;;  %4493 = vmatpush.xpose.msk.msrb.mxu3 %vm3662_vm10, %v3726_v38  ;;  %v10210_v37 = vld [vmem:[#allocation72_spill] sm:$0xff]  ;;  %v4459_v45 = vld [vmem:[%s9651_s5 + $0x3e0] sm:$0xff] }
 0x763   :  { %v3723_v40 = vmul.f32 1.1111112, %v3465_v55  ;;  %v3724_v63 = vmul.f32 1.1111112, %v3466_v62  ;;  %v3528_v17 = vmul.f32 %v10203_v5, %v8716_v15  ;;  %v10204_v1 = vand.u32 2147483647, %v10192_v36 }
 0x764   :  { %v3317_v42 = vsub.f32 1.0, %v8733_v56  ;;  %v3785_v24 = vmul.f32 1.1111112, %v3527_v19  ;;  %v3443_v15 = vsel %vm8974_vm1, %v8389_v0, %v10207_v51  ;;  %v3428_v30 = vsel %vm8959_vm0, %v8347_v31, %v10208_v32  ;;  %3855 = vst [vmem:[#allocation7 + $0x218] sm:$0xff] %v3790_v33  ;;  %v10211_v35 = vld [vmem:[#allocation52_spill] sm:$0xff]  ;;  %v10212_v23 = vld [vmem:[#allocation53_spill] sm:$0xff] }
 0x765   :  { %vm8991_vm8 = vcmp.eq.f32.partialorder %v10204_v1, 8.507059e+37  ;;  %4921 = vrcp.f32 %v10209_v48  ;;  %v3787_v56 = vsel %vm3659_vm14, %v3723_v40, 0.0  ;;  %vm3721_vm3 = vcmp.ge.f32.partialorder %v4461_v3, 0.1  ;;  %3530 = vst [vmem:[#allocation6 + $0x200] sm:$0xff] %v3465_v55  ;;  %4478 = vmatpush.xpose.msk.msrb.mxu2 %vm3659_vm14, %v3723_v40  ;;  %v10213_v16 = vld [vmem:[#allocation69_spill] sm:$0xff] }
 0x766   :  { %v3786_v58 = vmul.f32 1.1111112, %v3528_v17  ;;  %vm3366_vm12 = vweird.f32 %v8399_v52  ;;  %v9011_v9 = vadd.f32 %v8743_v4, %v3378_v26  ;;  %v3788_v0 = vsel %vm3660_vm2, %v3724_v63, 0.0  ;;  %3852 = vst [vmem:[#allocation7 + $0x200] sm:$0xff] %v3787_v56  ;;  %v10216_v26 = vld [vmem:[#allocation20_spill] sm:$0xff]  ;;  %4494 = vmatpush.xpose.msk.msrb.mxu3 %vm3660_vm2, %v3724_v63  ;;  %v4460_v47 = vld [vmem:[%s9651_s5 + $0x3e8] sm:$0xff] }
 0x767   :  { %vm3722_vm13 = vcmp.ge.f32.partialorder %v4462_v50, 0.1  ;;  %v3448_v31 = vsel %vm8902_vm9, %v10210_v37, %v3443_v15  ;;  %vm3381_vm10 = vweird.f32 %v8743_v4  ;;  %v3433_v6 = vsel %vm8913_vm11, %v10213_v16, %v3428_v30  ;;  %vm9033_vm9 = vmor %vm3410_vm7, %vm3411_vm15  ;;  %3531 = vst [vmem:[#allocation6 + $0x208] sm:$0xff] %v3466_v62  ;;  %v10217_v44 = vld [vmem:[#allocation48_spill] sm:$0xff]  ;;  %v4457_v3 = vld [vmem:[%s9651_s5 + $0x3d0] sm:$0xff] }
 0x768   :  { %v3525_v11 = vmul.f32 %v10211_v35, %v3448_v31  ;;  %v9024_v38 = vmul.f32 %v10212_v23, %v3448_v31  ;;  %vm3365_vm0 = vweird.f32 %v10216_v26  ;;  %4923 = vrcp.f32 %v9006_v41  ;;  %vm9056_vm15 = vmor %vm3395_vm4, %vm3396_vm5  ;;  %3853 = vst [vmem:[#allocation7 + $0x208] sm:$0xff] %v3788_v0  ;;  %v10221_v33 = vld [vmem:[#allocation64_spill] sm:$0xff]  ;;  %v10224_v63 = vld [vmem:[#allocation66_spill] sm:$0xff] }
 0x769   :  { %v9041_v10 = vmul.f32 %v8930_v61, %v8498_v12  ;;  %v3849_v13 = vsel %vm3721_vm3, %v3785_v24, 0.0  ;;  %4495 = vmatpush.xpose.msk.msra.mxu2 %vm3721_vm3, %v3785_v24  ;;  %v9050_v55 = vmul.f32 %v10217_v44, %v3433_v6  ;;  %v3850_v28 = vsel %vm3722_vm13, %v3786_v58, 0.0  ;;  %3592 = vst [vmem:[#allocation6 + $0x3f0] sm:$0xff] %v3527_v19  ;;  %v10222_v36 = vld [vmem:[#allocation16_spill] sm:$0xff]  ;;  %v10225_v50 = vld [vmem:[#allocation67_spill] sm:$0xff]  ;;  %v10226_v51 = vld [vmem:[#allocation17_spill] sm:$0xff] }
 0x76a   :  { %4511 = vmatpush.xpose.msk.msra.mxu3 %vm3722_vm13, %v3786_v58  ;;  %vm3719_vm11 = vcmp.ge.f32.partialorder %v4459_v45, 0.1  ;;  %v3783_v62 = vmul.f32 1.1111112, %v3525_v11  ;;  %v3413_v21 = vsel %vm9033_vm9, %v10179_v18, %v10220_v25  ;;  %vm3351_vm7 = vweird.f32 %v10221_v33  ;;  %3932 = vmatmul.f32.vlgmr.msrb.gmra.mxu2 %v10222_v36  ;;  %3914 = vst [vmem:[#allocation7 + $0x3f0] sm:$0xff] %v3849_v13  ;;  %v10227_v15 = vld [vmem:[#allocation14_spill] sm:$0xff] }
 0x76b   :  { %v3784_v39 = vmul.f32 1.1111112, %v9024_v38  ;;  %v9073_v40 = vmul.f32 %v10223_v60, %v3433_v6  ;;  %v3418_v5 = vsel %vm8948_vm6, %v10224_v63, %v3413_v21  ;;  %v3398_v18 = vsel %vm9056_vm15, %v10183_v53, %v10225_v50  ;;  %v9082_v19 = vpop.eup %4921  ;;  %3952 = vmatmul.f32.vlgmr.msrb.gmra.mxu3 %v10226_v51  ;;  %3593 = vst [vmem:[#allocation6 + $0x3f8] sm:$0xff] %v3528_v17  ;;  %v4458_v30 = vld [vmem:[%s9651_s5 + $0x3d8] sm:$0xff]  ;;  %v10231_v56 = vld [vmem:[#allocation47_spill] sm:$0xff]  ;;  %v10236_v31 = vld [vmem:[#allocation65_spill] sm:$0xff] }
 0x76c   :  { %v3318_v1 = vmul.f32 %v8645_v54, %v3317_v42  ;;  %vm3380_vm5 = vweird.f32 %v8383_v29  ;;  %v3386_v24 = vand.u32 2147483648, %v8383_v29  ;;  %vm3720_vm4 = vcmp.ge.f32.partialorder %v4460_v47, 0.1  ;;  %3915 = vst [vmem:[#allocation7 + $0x3f8] sm:$0xff] %v3850_v28  ;;  %v10237_v16 = vld [vmem:[#allocation40_spill] sm:$0xff]  ;;  %v10241_v22 = vld [vmem:[#allocation45_spill] sm:$0xff] }
 0x76d   :  { %vm3350_vm14 = vweird.f32 %v10227_v15  ;;  %v10228_v43 = vand.u32 2147483647, %v10216_v26  ;;  %4925 = vrcp.f32 %v8678_v49  ;;  %v3847_v53 = vsel %vm3719_vm11, %v3783_v62, 0.0  ;;  %4496 = vmatpush.xpose.msk.msra.mxu2 %vm3719_vm11, %v3783_v62  ;;  %vm9107_vm2 = vmor %vm3380_vm5, %vm3381_vm10  ;;  %3590 = vst [vmem:[#allocation6 + $0x3e0] sm:$0xff] %v3525_v11  ;;  %v10244_v60 = vld [vmem:[#allocation46_spill] sm:$0xff]  ;;  %v10245_v51 = vld [vmem:[#allocation39_spill] sm:$0xff] }
 0x76e   :  { %v3781_v42 = vmul.f32 1.1111112, %v9050_v55  ;;  %v9103_v58 = vmul.f32 %v10231_v56, %v3418_v5  ;;  %vm9113_vm1 = vcmp.eq.f32.partialorder %v3384_v2, 8.507059e+37  ;;  %v3332_v37 = vsub.f32 1.0, %v9041_v10  ;;  %4512 = vmatpush.xpose.msk.msra.mxu3 %vm3720_vm4, %v3784_v39  ;;  %v9122_v35 = vpop.eup %4923  ;;  %v4455_v2 = vld [vmem:[%s9651_s5 + $0x3c0] sm:$0xff]  ;;  %3912 = vst [vmem:[#allocation7 + $0x3e0] sm:$0xff] %v3847_v53  ;;  %vm9164_vm10 = vmor %vm3365_vm0, %vm3366_vm12 }
 0x76f   :  { %vm9091_vm6 = vcmp.eq.f32.partialorder %v10228_v43, 8.507059e+37  ;;  %vm3717_vm3 = vcmp.ge.f32.partialorder %v4457_v3, 0.1  ;;  %v3403_v45 = vsel %vm8991_vm8, %v10236_v31, %v3398_v18  ;;  %v3848_v23 = vsel %vm3720_vm4, %v3784_v39, 0.0  ;;  %3591 = vst [vmem:[#allocation6 + $0x3e8] sm:$0xff] %v9024_v38  ;;  %v4453_v3 = vld [vmem:[%s9651_s5 + $0x3b0] sm:$0xff]  ;;  %vm9216_vm5 = vmor %vm3350_vm14, %vm3351_vm7 }
 0x770   :  { %v3782_v29 = vmul.f32 1.1111112, %v9073_v40  ;;  %v9130_v6 = vmul.f32 %v10237_v16, %v3418_v5  ;;  %v3383_v59 = vsel %vm9107_vm2, %v8743_v4, %v9011_v9  ;;  %v9138_v46 = vadd.f32 %v8477_v20, %v8981_v57  ;;  %v4456_v9 = vld [vmem:[%s9651_s5 + $0x3c8] sm:$0xff]  ;;  %3913 = vst [vmem:[#allocation7 + $0x3e8] sm:$0xff] %v3848_v23  ;;  %v4451_v17 = vld [vmem:[%s9651_s5 + $0x3a0] sm:$0xff] }
 0x771   :  { %v3387_v11 = vor.u32 1.1754944e-38, %v3386_v24  ;;  %v3264_v10 = vand.u32 2147483647, %v10209_v48  ;;  %vm3718_vm8 = vcmp.ge.f32.partialorder %v4458_v30, 0.1  ;;  %v9148_v44 = vadd.f32 %v8645_v54, %v3318_v1  ;;  %4497 = vmatpush.xpose.msk.msra.mxu2 %vm3717_vm3, %v3781_v42  ;;  %3588 = vst [vmem:[#allocation6 + $0x3d0] sm:$0xff] %v9050_v55  ;;  %v9200_v1 = vpop.xlane.xlu1 %2941 }
 0x772   :  { %v10238_v13 = vand.u32 2147483647, %v10227_v15  ;;  %v3845_v4 = vsel %vm3717_vm3, %v3781_v42, 0.0  ;;  %v3779_v57 = vmul.f32 1.1111112, %v9103_v58  ;;  %v9158_v28 = vmul.f32 %v10241_v22, %v3403_v45  ;;  %4513 = vmatpush.xpose.msk.msra.mxu3 %vm3718_vm8, %v3782_v29  ;;  %3589 = vst [vmem:[#allocation6 + $0x3d8] sm:$0xff] %v9073_v40 }
 0x773   :  { %v3266_v38 = vand.u32 2147483648, %v10209_v48  ;;  %v3333_v25 = vmul.f32 %v8930_v61, %v3332_v37  ;;  %vm3715_vm9 = vcmp.ge.f32.partialorder %v4455_v2, 0.1  ;;  %v3388_v21 = vsel %vm9113_vm1, %v3387_v11, %v3383_v59  ;;  %v9173_v36 = vpop.eup %4925  ;;  %3910 = vst [vmem:[#allocation7 + $0x3d0] sm:$0xff] %v3845_v4  ;;  %v4454_v24 = vld [vmem:[%s9651_s5 + $0x3b8] sm:$0xff]  ;;  %v10248_v30 = vld [vmem:[#allocation74_spill] sm:$0xff] }
 0x774   :  { %vm9143_vm13 = vcmp.eq.f32.partialorder %v10238_v13, 8.507059e+37  ;;  %vm3321_vm15 = vweird.f32 %v8645_v54  ;;  %v3846_v26 = vsel %vm3718_vm8, %v3782_v29, 0.0  ;;  %v3780_v39 = vmul.f32 1.1111112, %v9130_v6  ;;  %3586 = vst [vmem:[#allocation6 + $0x3c0] sm:$0xff] %v9103_v58  ;;  %v10249_v37 = vld [vmem:[#allocation58_spill] sm:$0xff] }
 0x775   :  { %v9183_v63 = vmul.f32 %v10244_v60, %v3403_v45  ;;  %v3368_v5 = vsel %vm9164_vm10, %v8399_v52, %v8544_v34  ;;  %v9191_v50 = vmul.f32 %v9082_v19, %v10209_v48  ;;  %v9195_v55 = vmul.f32 %v9122_v35, %v9006_v41  ;;  %4498 = vmatpush.xpose.msk.msra.mxu2 %vm3715_vm9, %v3779_v57  ;;  %v10250_v45 = vld [vmem:[#allocation75_spill] sm:$0xff]  ;;  %v4452_v59 = vld [vmem:[%s9651_s5 + $0x3a8] sm:$0xff] }
 0x776   :  { %v3279_v18 = vand.u32 2147483647, %v9006_v41  ;;  %vm3716_vm12 = vcmp.ge.f32.partialorder %v4456_v9, 0.1  ;;  %vm3320_vm0 = vweird.f32 %v8429_v27  ;;  %vm3336_vm11 = vweird.f32 %v8930_v61  ;;  %3911 = vst [vmem:[#allocation7 + $0x3d8] sm:$0xff] %v3846_v26  ;;  %v10254_v11 = vld [vmem:[#allocation50_spill] sm:$0xff] }
 0x777   :  { %v3843_v52 = vsel %vm3715_vm9, %v3779_v57, 0.0  ;;  %v3777_v34 = vmul.f32 1.1111112, %v9158_v28  ;;  %v9210_v43 = vmul.f32 %v10245_v51, %v3388_v21  ;;  %v9221_v40 = vadd.f32 %v8930_v61, %v3333_v25  ;;  %4514 = vmatpush.xpose.msk.msra.mxu3 %vm3716_vm12, %v3780_v39  ;;  %3587 = vst [vmem:[#allocation6 + $0x3c8] sm:$0xff] %v9130_v6  ;;  %v9271_v57 = vpop.xlane.xlu0 %2938  ;;  %v10257_v9 = vld [vmem:[#allocation71_spill] sm:$0xff] }
 0x778   :  { %v3286_v42 = vmul.f32 %v9173_v36, %v8678_v49  ;;  %vm3713_vm4 = vcmp.ge.f32.partialorder %v4453_v3, 0.1  ;;  %v3373_v56 = vsel %vm9091_vm6, %v10248_v30, %v3368_v5  ;;  %vm3306_vm2 = vweird.f32 %v8477_v20  ;;  %3908 = vst [vmem:[#allocation7 + $0x3c0] sm:$0xff] %v3843_v52  ;;  %v10258_v26 = vld [vmem:[#allocation51_spill] sm:$0xff]  ;;  %v4450_v52 = vld [vmem:[%s9651_s5 + $0x398] sm:$0xff] }
 0x779   :  { %v3844_v15 = vsel %vm3716_vm12, %v3780_v39, 0.0  ;;  %v3778_v0 = vmul.f32 1.1111112, %v9183_v63  ;;  %v9237_v31 = vmul.f32 %v10249_v37, %v3388_v21  ;;  %v3353_v32 = vsel %vm9216_vm5, %v10221_v33, %v10250_v45  ;;  %4499 = vmatpush.xpose.msk.msra.mxu2 %vm3713_vm4, %v3777_v34  ;;  %3584 = vst [vmem:[#allocation6 + $0x3b0] sm:$0xff] %v9158_v28  ;;  %v4449_v21 = vld [vmem:[%s9651_s5 + $0x390] sm:$0xff]  ;;  %vm9318_vm12 = vmor %vm3320_vm0, %vm3321_vm15 }
 0x77a   :  { %v3339_v23 = vand.u32 2147483647, %v8498_v12  ;;  %v3341_v58 = vand.u32 2147483648, %v8498_v12  ;;  %4927 = vrcp.f32 %v9200_v1  ;;  %vm3714_vm7 = vcmp.ge.f32.partialorder %v4454_v24, 0.1  ;;  %3909 = vst [vmem:[#allocation7 + $0x3c8] sm:$0xff] %v3844_v15 }
 0x77b   :  { %vm3305_vm14 = vweird.f32 %v8326_v8  ;;  %v10251_v29 = vand.u32 2147483647, %v8429_v27  ;;  %vm3335_vm1 = vweird.f32 %v8498_v12  ;;  %v3841_v33 = vsel %vm3713_vm4, %v3777_v34, 0.0  ;;  %4515 = vmatpush.xpose.msk.msra.mxu3 %vm3714_vm7, %v3778_v0  ;;  %3585 = vst [vmem:[#allocation6 + $0x3b8] sm:$0xff] %v9183_v63  ;;  %v10264_v34 = vld [vmem:[#allocation41_spill] sm:$0xff]  ;;  %v10267_v15 = vld [vmem:[#allocation15_spill] sm:$0xff] }
 0x77c   :  { %v3775_v16 = vmul.f32 1.1111112, %v9210_v43  ;;  %v9262_v13 = vmul.f32 %v10254_v11, %v3373_v56  ;;  %v3257_v4 = vsub.f32 1.0, %v9191_v50  ;;  %vm9267_vm3 = vmor %vm3335_vm1, %vm3336_vm11  ;;  %v3287_v6 = vsub.f32 1.0, %v3286_v42  ;;  %3906 = vst [vmem:[#allocation7 + $0x3b0] sm:$0xff] %v3841_v33  ;;  %v4445_v11 = vld [vmem:[%s9651_s5 + $0x370] sm:$0xff] }
 0x77d   :  { %vm9249_vm6 = vcmp.eq.f32.partialorder %v10251_v29, 8.507059e+37  ;;  %vm3711_vm8 = vcmp.ge.f32.partialorder %v4451_v17, 0.1  ;;  %v3358_v22 = vsel %vm9143_vm13, %v10257_v9, %v3353_v32  ;;  %v3842_v62 = vsel %vm3714_vm7, %v3778_v0, 0.0  ;;  %3582 = vst [vmem:[#allocation6 + $0x3a0] sm:$0xff] %v9210_v43  ;;  %vm9360_vm4 = vmor %vm3305_vm14, %vm3306_vm2  ;;  %v10277_v28 = vld [vmem:[#allocation55_spill] sm:$0xff] }
 0x77e   :  { %v3776_v25 = vmul.f32 1.1111112, %v9237_v31  ;;  %v9284_v39 = vmul.f32 %v10258_v26, %v3373_v56  ;;  %v3338_v3 = vsel %vm9267_vm3, %v8930_v61, %v9221_v40  ;;  %v3272_v47 = vsub.f32 1.0, %v9195_v55  ;;  %4500 = vmatpush.xpose.msk.msra.mxu2 %vm3711_vm8, %v3775_v16  ;;  %3907 = vst [vmem:[#allocation7 + $0x3b8] sm:$0xff] %v3842_v62  ;;  %v4447_v56 = vld [vmem:[%s9651_s5 + $0x380] sm:$0xff]  ;;  %v10274_v62 = vld [vmem:[#allocation28_spill] sm:$0xff] }
 0x77f   :  { %vm9291_vm13 = vcmp.eq.f32.partialorder %v3339_v23, 8.507059e+37  ;;  %v3342_v60 = vor.u32 1.1754944e-38, %v3341_v58  ;;  %vm3712_vm10 = vcmp.ge.f32.partialorder %v4452_v59, 0.1  ;;  %v10261_v5 = vand.u32 2147483647, %v8326_v8 }
 0x780   :  { %4929 = vrcp.f32 %v9271_v57  ;;  %v3839_v61 = vsel %vm3711_vm8, %v3775_v16, 0.0  ;;  %v3773_v55 = vmul.f32 1.1111112, %v9262_v13  ;;  %v9310_v24 = vmul.f32 %v10264_v34, %v3358_v22  ;;  %v9312_v51 = vpop.eup %4927  ;;  %4516 = vmatpush.xpose.msk.msra.mxu3 %vm3712_vm10, %v3776_v25  ;;  %3583 = vst [vmem:[#allocation6 + $0x3a8] sm:$0xff] %v9237_v31  ;;  %v10268_v23 = vld [vmem:[#allocation24_spill] sm:$0xff]  ;;  %v4444_v34 = vld [vmem:[%s9651_s5 + $0x368] sm:$0xff] }
 0x781   :  { %vm9297_vm9 = vcmp.eq.f32.partialorder %v10261_v5, 8.507059e+37  ;;  %v3281_v53 = vand.u32 2147483648, %v9006_v41  ;;  %v3288_v40 = vmul.f32 %v9173_v36, %v3287_v6  ;;  %vm3709_vm11 = vcmp.ge.f32.partialorder %v4449_v21, 0.1  ;;  %3904 = vst [vmem:[#allocation7 + $0x3a0] sm:$0xff] %v3839_v61 }
 0x782   :  { %v3343_v42 = vsel %vm9291_vm13, %v3342_v60, %v3338_v3  ;;  %v3840_v30 = vsel %vm3712_vm10, %v3776_v25, 0.0  ;;  %v3774_v27 = vmul.f32 1.1111112, %v9284_v39  ;;  %v3514_v0 = vmul.f32 %v10267_v15, %v3358_v22  ;;  %4501 = vmatpush.xpose.msk.msra.mxu2 %vm3709_vm11, %v3773_v55  ;;  %3580 = vst [vmem:[#allocation6 + $0x390] sm:$0xff] %v9262_v13  ;;  %v4446_v22 = vld [vmem:[%s9651_s5 + $0x378] sm:$0xff] }
 0x783   :  { %v3323_v17 = vsel %vm9318_vm12, %v8645_v54, %v9148_v44  ;;  %v3258_v37 = vmul.f32 %v9082_v19, %v3257_v4  ;;  %v3273_v45 = vmul.f32 %v9122_v35, %v3272_v47  ;;  %vm3276_vm15 = vweird.f32 %v9122_v35  ;;  %v4448_v44 = vld [vmem:[%s9651_s5 + $0x388] sm:$0xff]  ;;  %3905 = vst [vmem:[#allocation7 + $0x3a8] sm:$0xff] %v3840_v30  ;;  %v4443_v47 = vld [vmem:[%s9651_s5 + $0x360] sm:$0xff] }
 0x784   :  { %vm3710_vm0 = vcmp.ge.f32.partialorder %v4450_v52, 0.1  ;;  %vm3275_vm5 = vweird.f32 %v9006_v41  ;;  %v9344_v43 = vmul.f32 %v9312_v51, %v9200_v1  ;;  %v3837_v32 = vsel %vm3709_vm11, %v3773_v55, 0.0  ;;  %v10271_v4 = vld [vmem:[#allocation30_spill] sm:$0xff]  ;;  %3581 = vst [vmem:[#allocation6 + $0x398] sm:$0xff] %v9284_v39  ;;  %v4441_v41 = vld [vmem:[%s9651_s5 + $0x350] sm:$0xff] }
 0x785   :  { %v3771_v54 = vmul.f32 1.1111112, %v9310_v24  ;;  %v9354_v58 = vmul.f32 %v10268_v23, %v3343_v42  ;;  %v3289_v31 = vadd.f32 %v9173_v36, %v3288_v40  ;;  %vm3291_vm7 = vweird.f32 %v9173_v36  ;;  %4517 = vmatpush.xpose.msk.msra.mxu3 %vm3710_vm0, %v3774_v27  ;;  %3902 = vst [vmem:[#allocation7 + $0x390] sm:$0xff] %v3837_v32  ;;  %vm9446_vm11 = vmor %vm3275_vm5, %vm3276_vm15  ;;  %v10284_v32 = vld [vmem:[#allocation62_spill] sm:$0xff] }
 0x786   :  { %vm3707_vm1 = vcmp.ge.f32.partialorder %v4447_v56, 0.1  ;;  %v3328_v33 = vsel %vm9249_vm6, %v8590_v7, %v3323_v17  ;;  %v9370_v16 = vpop.eup %4929  ;;  %vm3261_vm3 = vweird.f32 %v9082_v19  ;;  %v3838_v8 = vsel %vm3710_vm0, %v3774_v27, 0.0  ;;  %3578 = vst [vmem:[#allocation6 + $0x380] sm:$0xff] %v9310_v24  ;;  %v10280_v24 = vld [vmem:[#allocation36_spill] sm:$0xff]  ;;  %v10283_v56 = vld [vmem:[#allocation54_spill] sm:$0xff] }
 0x787   :  { %v3772_v59 = vmul.f32 1.1111112, %v3514_v0  ;;  %v3512_v12 = vmul.f32 %v10271_v4, %v3343_v42  ;;  %v3308_v7 = vsel %vm9360_vm4, %v8477_v20, %v9138_v46  ;;  %v9384_v2 = vadd.f32 %v9122_v35, %v3273_v45  ;;  %4502 = vmatpush.xpose.msk.msra.mxu2 %vm3707_vm1, %v3771_v54  ;;  %3903 = vst [vmem:[#allocation7 + $0x398] sm:$0xff] %v3838_v8  ;;  %v4439_v8 = vld [vmem:[%s9651_s5 + $0x340] sm:$0xff] }
 0x788   :  { %v3294_v6 = vand.u32 2147483647, %v8678_v49  ;;  %v3296_v13 = vand.u32 2147483648, %v8678_v49  ;;  %vm3708_vm2 = vcmp.ge.f32.partialorder %v4448_v44, 0.1  ;;  %vm9390_vm14 = vcmp.eq.f32.partialorder %v3279_v18, 8.507059e+37 }
 0x789   :  { %vm3290_vm6 = vweird.f32 %v8678_v49  ;;  %v3835_v20 = vsel %vm3707_vm1, %v3771_v54, 0.0  ;;  %v3769_v46 = vmul.f32 1.1111112, %v9354_v58  ;;  %v3509_v25 = vmul.f32 %v10274_v62, %v3328_v33  ;;  %4518 = vmatpush.xpose.msk.msra.mxu3 %vm3708_vm2, %v3772_v59  ;;  %3579 = vst [vmem:[#allocation6 + $0x388] sm:$0xff] %v3514_v0  ;;  %v4437_v62 = vld [vmem:[%s9651_s5 + $0x330] sm:$0xff] }
 0x78a   :  { %v3242_v18 = vsub.f32 1.0, %v9344_v43  ;;  %vm9406_vm8 = vmor %vm3290_vm6, %vm3291_vm7  ;;  %v3226_v21 = vmul.f32 %v9370_v16, %v9271_v57  ;;  %vm3705_vm13 = vcmp.ge.f32.partialorder %v4445_v11, 0.1  ;;  %v3313_v26 = vsel %vm9297_vm9, %v8556_v14, %v3308_v7  ;;  %3900 = vst [vmem:[#allocation7 + $0x380] sm:$0xff] %v3835_v20 }
 0x78b   :  { %v3836_v39 = vsel %vm3708_vm2, %v3772_v59, 0.0  ;;  %v3770_v3 = vmul.f32 1.1111112, %v3512_v12  ;;  %v3510_v60 = vmul.f32 %v10277_v28, %v3328_v33  ;;  %v3293_v5 = vsel %vm9406_vm8, %v9173_v36, %v3289_v31  ;;  %4503 = vmatpush.xpose.msk.msra.mxu2 %vm3705_vm13, %v3769_v46  ;;  %3576 = vst [vmem:[#allocation6 + $0x370] sm:$0xff] %v9354_v58  ;;  %v10287_v59 = vld [vmem:[#allocation63_spill] sm:$0xff]  ;;  %v10294_v28 = vld [vmem:[#allocation57_spill] sm:$0xff] }
 0x78c   :  { %v9426_v61 = vadd.f32 %v9082_v19, %v3258_v37  ;;  %v3282_v14 = vor.u32 1.1754944e-38, %v3281_v53  ;;  %v3297_v50 = vor.u32 1.1754944e-38, %v3296_v13  ;;  %vm3706_vm10 = vcmp.ge.f32.partialorder %v4446_v22, 0.1  ;;  %3901 = vst [vmem:[#allocation7 + $0x388] sm:$0xff] %v3836_v39 }
 0x78d   :  { %vm9432_vm9 = vcmp.eq.f32.partialorder %v3264_v10, 8.507059e+37  ;;  %vm3295_vm12 = vcmp.eq.f32.partialorder %v3294_v6, 8.507059e+37  ;;  %v3833_v52 = vsel %vm3705_vm13, %v3769_v46, 0.0  ;;  %v3767_v36 = vmul.f32 1.1111112, %v3509_v25  ;;  %4519 = vmatpush.xpose.msk.msra.mxu3 %vm3706_vm10, %v3770_v3  ;;  %3577 = vst [vmem:[#allocation6 + $0x378] sm:$0xff] %v3512_v12 }
 0x78e   :  { %v3507_v63 = vmul.f32 %v10280_v24, %v3313_v26  ;;  %v3243_v53 = vmul.f32 %v9312_v51, %v3242_v18  ;;  %v3227_v40 = vsub.f32 1.0, %v3226_v21  ;;  %vm3703_vm0 = vcmp.ge.f32.partialorder %v4443_v47, 0.1  ;;  %3898 = vst [vmem:[#allocation7 + $0x370] sm:$0xff] %v3833_v52  ;;  %v4438_v47 = vld [vmem:[%s9651_s5 + $0x338] sm:$0xff]  ;;  %v10298_v10 = vld [vmem:[#allocation33_spill] sm:$0xff] }
 0x78f   :  { %v3298_v42 = vsel %vm3295_vm12, %v3297_v50, %v3293_v5  ;;  %v3834_v30 = vsel %vm3706_vm10, %v3770_v3, 0.0  ;;  %v3768_v27 = vmul.f32 1.1111112, %v3510_v60  ;;  %v3508_v15 = vmul.f32 %v10283_v56, %v3313_v26  ;;  %4504 = vmatpush.xpose.msk.msra.mxu2 %vm3703_vm0, %v3767_v36  ;;  %3574 = vst [vmem:[#allocation6 + $0x360] sm:$0xff] %v3509_v25  ;;  %v10293_v25 = vld [vmem:[#allocation60_spill] sm:$0xff]  ;;  %v10297_v50 = vld [vmem:[#allocation35_spill] sm:$0xff] }
 0x790   :  { %v3278_v0 = vsel %vm9446_vm11, %v9122_v35, %v9384_v2  ;;  %vm3260_vm15 = vweird.f32 %v10209_v48  ;;  %v3249_v17 = vand.u32 2147483647, %v9200_v1  ;;  %v3251_v37 = vand.u32 2147483648, %v9200_v1  ;;  %v4442_v35 = vld [vmem:[%s9651_s5 + $0x358] sm:$0xff]  ;;  %3899 = vst [vmem:[#allocation7 + $0x378] sm:$0xff] %v3834_v30  ;;  %v4440_v48 = vld [vmem:[%s9651_s5 + $0x348] sm:$0xff] }
 0x791   :  { %vm3704_vm5 = vcmp.ge.f32.partialorder %v4444_v34, 0.1  ;;  %vm3246_vm4 = vweird.f32 %v9312_v51  ;;  %v3831_v45 = vsel %vm3703_vm0, %v3767_v36, 0.0  ;;  %v3765_v43 = vmul.f32 1.1111112, %v3507_v63  ;;  %vm9474_vm7 = vmor %vm3260_vm15, %vm3261_vm3  ;;  %3575 = vst [vmem:[#allocation6 + $0x368] sm:$0xff] %v3510_v60 }
 0x792   :  { %v3505_v54 = vmul.f32 %v10284_v32, %v3298_v42  ;;  %v3244_v23 = vadd.f32 %v9312_v51, %v3243_v53  ;;  %v3228_v58 = vmul.f32 %v9370_v16, %v3227_v40  ;;  %4520 = vmatpush.xpose.msk.msra.mxu3 %vm3704_vm5, %v3768_v27  ;;  %vm3701_vm1 = vcmp.ge.f32.partialorder %v4441_v41, 0.1  ;;  %3896 = vst [vmem:[#allocation7 + $0x360] sm:$0xff] %v3831_v45  ;;  %v4433_v30 = vld [vmem:[%s9651_s5 + $0x310] sm:$0xff]  ;;  %v10301_v32 = vld [vmem:[#allocation26_spill] sm:$0xff] }
 0x793   :  { %v3283_v29 = vsel %vm9390_vm14, %v3282_v14, %v3278_v0  ;;  %v3832_v31 = vsel %vm3704_vm5, %v3768_v27, 0.0  ;;  %v3766_v33 = vmul.f32 1.1111112, %v3508_v15  ;;  %v3506_v11 = vmul.f32 %v10287_v59, %v3298_v42  ;;  %4505 = vmatpush.xpose.msk.msra.mxu2 %vm3701_vm1, %v3765_v43  ;;  %3572 = vst [vmem:[#allocation6 + $0x350] sm:$0xff] %v3507_v63  ;;  %v4435_v14 = vld [vmem:[%s9651_s5 + $0x320] sm:$0xff]  ;;  %v4436_v63 = vld [vmem:[%s9651_s5 + $0x328] sm:$0xff] }
 0x794   :  { %v3263_v4 = vsel %vm9474_vm7, %v9082_v19, %v9426_v61  ;;  %v3267_v12 = vor.u32 1.1754944e-38, %v3266_v38  ;;  %vm3245_vm3 = vweird.f32 %v9200_v1  ;;  %vm9495_vm2 = vcmp.eq.f32.partialorder %v3249_v17, 8.507059e+37  ;;  %v10290_v19 = vld [vmem:[#allocation34_spill] sm:$0xff]  ;;  %3897 = vst [vmem:[#allocation7 + $0x368] sm:$0xff] %v3832_v31  ;;  %v10299_v27 = vld [vmem:[#allocation61_spill] sm:$0xff]  ;;  %v4434_v0 = vld [vmem:[%s9651_s5 + $0x318] sm:$0xff] }
 0x795   :  { %vm3702_vm14 = vcmp.ge.f32.partialorder %v4442_v35, 0.1  ;;  %v3252_v2 = vor.u32 1.1754944e-38, %v3251_v37  ;;  %v3829_v6 = vsel %vm3701_vm1, %v3765_v43, 0.0  ;;  %v3763_v13 = vmul.f32 1.1111112, %v3505_v54  ;;  %vm9507_vm6 = vmor %vm3245_vm3, %vm3246_vm4 }
 0x796   :  { %v3503_v38 = vmul.f32 %v10290_v19, %v3283_v29  ;;  %v3229_v9 = vadd.f32 %v9370_v16, %v3228_v58  ;;  %vm3231_vm8 = vweird.f32 %v9370_v16  ;;  %4521 = vmatpush.xpose.msk.msra.mxu3 %vm3702_vm14, %v3766_v33  ;;  %vm3699_vm13 = vcmp.ge.f32.partialorder %v4439_v8, 0.1  ;;  %3894 = vst [vmem:[#allocation7 + $0x350] sm:$0xff] %v3829_v6  ;;  %v10300_v17 = vld [vmem:[#allocation31_spill] sm:$0xff]  ;;  %v4431_v35 = vld [vmem:[%s9651_s5 + $0x300] sm:$0xff]  ;;  %v4432_v58 = vld [vmem:[%s9651_s5 + $0x308] sm:$0xff] }
 0x797   :  { %v3268_v20 = vsel %vm9432_vm9, %v3267_v12, %v3263_v4  ;;  %v3830_v46 = vsel %vm3702_vm14, %v3766_v33, 0.0  ;;  %v3764_v22 = vmul.f32 1.1111112, %v3506_v11  ;;  %v3504_v18 = vmul.f32 %v10293_v25, %v3283_v29  ;;  %3573 = vst [vmem:[#allocation6 + $0x358] sm:$0xff] %v3508_v15  ;;  %4506 = vmatpush.xpose.msk.msra.mxu2 %vm3699_vm13, %v3763_v13  ;;  %v4951_v59 = vld [vmem:[#allocation4 + $0x10] sm:$0xff]  ;;  %v10303_v6 = vld [vmem:[#allocation32_spill] sm:$0xff] }
 0x798   :  { %v3248_v49 = vsel %vm9507_vm6, %v9312_v51, %v3244_v23  ;;  %v3234_v21 = vand.u32 2147483647, %v9271_v57  ;;  %v3236_v26 = vand.u32 2147483648, %v9271_v57  ;;  %vm3700_vm10 = vcmp.ge.f32.partialorder %v4440_v48, 0.1  ;;  %3895 = vst [vmem:[#allocation7 + $0x358] sm:$0xff] %v3830_v46 }
 0x799   :  { %vm3230_vm9 = vweird.f32 %v9271_v57  ;;  %v3827_v39 = vsel %vm3699_vm13, %v3763_v13, 0.0  ;;  %v3761_v3 = vmul.f32 1.1111112, %v3503_v38  ;;  %v3501_v60 = vmul.f32 %v10294_v28, %v3268_v20  ;;  %3570 = vst [vmem:[#allocation6 + $0x340] sm:$0xff] %v3505_v54  ;;  %v3996_v48 = vld [vmem:[%s9649_s3] sm:$0xff]  ;;  %v3997_v19 = vld [vmem:[%s9649_s3 + $0x8] sm:$0xff] }
 0x79a   :  { %vm9533_vm12 = vmor %vm3230_vm9, %vm3231_vm8  ;;  %4522 = vmatpush.xpose.msk.msra.mxu3 %vm3700_vm10, %v3764_v22  ;;  %vm3697_vm11 = vcmp.ge.f32.partialorder %v4437_v62, 0.1  ;;  %v3253_v57 = vsel %vm9495_vm2, %v3252_v2, %v3248_v49  ;;  %v3828_v5 = vsel %vm3700_vm10, %v3764_v22, 0.0  ;;  %v3762_v61 = vmul.f32 1.1111112, %v3504_v18  ;;  %3892 = vst [vmem:[#allocation7 + $0x340] sm:$0xff] %v3827_v39 }
 0x79b   :  { %v3502_v55 = vmul.f32 %v10297_v50, %v3268_v20  ;;  %v3233_v52 = vsel %vm9533_vm12, %v9370_v16, %v3229_v9  ;;  %v3237_v36 = vor.u32 1.1754944e-38, %v3236_v26  ;;  %vm3698_vm0 = vcmp.ge.f32.partialorder %v4438_v47, 0.1  ;;  %3571 = vst [vmem:[#allocation6 + $0x348] sm:$0xff] %v3506_v11  ;;  %4507 = vmatpush.xpose.msk.msra.mxu2 %vm3697_vm11, %v3761_v3  ;;  %v4952_v11 = vld [vmem:[#allocation4 + $0x18] sm:$0xff]  ;;  %v10302_v2 = vld [vmem:[#allocation18_spill] sm:$0xff] }
 0x79c   :  { %vm3235_vm15 = vcmp.eq.f32.partialorder %v3234_v21, 8.507059e+37  ;;  %v3825_v34 = vsel %vm3697_vm11, %v3761_v3, 0.0  ;;  %v3759_v24 = vmul.f32 1.1111112, %v3501_v60  ;;  %v3499_v53 = vmul.f32 %v10298_v10, %v3253_v57  ;;  %3893 = vst [vmem:[#allocation7 + $0x348] sm:$0xff] %v3828_v5  ;;  %v3999_v1 = vld [vmem:[%s9649_s3 + $0x18] sm:$0xff]  ;;  %v4012_v21 = vpop.permute.xlu0 %4011 }
 0x79d   :  { %vm3695_vm5 = vcmp.ge.f32.partialorder %v4435_v14, 0.1  ;;  %v3238_v40 = vsel %vm3235_vm15, %v3237_v36, %v3233_v52  ;;  %3568 = vst [vmem:[#allocation6 + $0x330] sm:$0xff] %v3503_v38  ;;  %v3826_v16 = vsel %vm3698_vm0, %v3762_v61, 0.0  ;;  %v3760_v42 = vmul.f32 1.1111112, %v3502_v55 }
 0x79e   :  { %4523 = vmatpush.xpose.msk.msra.mxu3 %vm3698_vm0, %v3762_v61  ;;  %v3500_v41 = vmul.f32 %v10299_v27, %v3253_v57  ;;  %3890 = vst [vmem:[#allocation7 + $0x330] sm:$0xff] %v3825_v34  ;;  %vm3696_vm4 = vcmp.ge.f32.partialorder %v4436_v63, 0.1  ;;  %v3823_v56 = vsel %vm3695_vm5, %v3759_v24, 0.0  ;;  %v3757_v15 = vmul.f32 1.1111112, %v3499_v53 }
 0x79f   :  { %3569 = vst [vmem:[#allocation6 + $0x338] sm:$0xff] %v3504_v18  ;;  %4508 = vmatpush.xpose.msk.msra.mxu2 %vm3695_vm5, %v3759_v24  ;;  %v3497_v37 = vmul.f32 %v10300_v17, %v3238_v40  ;;  %vm3693_vm7 = vcmp.ge.f32.partialorder %v4433_v30, 0.1  ;;  %v3824_v45 = vsel %vm3696_vm4, %v3760_v42, 0.0  ;;  %v3498_v54 = vmul.f32 %v10301_v32, %v3238_v40  ;;  %v3998_v38 = vld [vmem:[%s9649_s3 + $0x10] sm:$0xff]  ;;  %v10304_v22 = vld [vmem:[#allocation29_spill] sm:$0xff] }
 0x7a0   :  { %3891 = vst [vmem:[#allocation7 + $0x338] sm:$0xff] %v3826_v16  ;;  %v3758_v43 = vmul.f32 1.1111112, %v3500_v41  ;;  %vm3694_vm1 = vcmp.ge.f32.partialorder %v4434_v0, 0.1  ;;  %v3821_v44 = vsel %vm3693_vm7, %v3757_v15, 0.0  ;;  %v2044_v13 = vadd.f32 %v10303_v6, %v10302_v2 }
 0x7a1   :  { %3566 = vst [vmem:[#allocation6 + $0x320] sm:$0xff] %v3501_v60  ;;  %v3755_v23 = vmul.f32 1.1111112, %v3497_v37  ;;  %vm3691_vm3 = vcmp.ge.f32.partialorder %v4431_v35, 0.1  ;;  %vm4024_vm14 = vcmask 130048   ;;  %v4022_v60 = vpop.permute.xlu2 %4021 }
 0x7a2   :  { %4524 = vmatpush.xpose.msk.msra.mxu3 %vm3696_vm4, %v3760_v42  ;;  %3888 = vst [vmem:[#allocation7 + $0x320] sm:$0xff] %v3823_v56  ;;  %v3822_v29 = vsel %vm3694_vm1, %v3758_v43, 0.0  ;;  %v3756_v31 = vmul.f32 1.1111112, %v3498_v54  ;;  %vm3692_vm2 = vcmp.ge.f32.partialorder %v4432_v58, 0.1 }
 0x7a3   :  { %3567 = vst [vmem:[#allocation6 + $0x328] sm:$0xff] %v3502_v55  ;;  %4509 = vmatpush.xpose.msk.msra.mxu2 %vm3693_vm7, %v3757_v15  ;;  %v3819_v33 = vsel %vm3691_vm3, %v3755_v23, 0.0  ;;  %v10305_v62 = vld [vmem:[#allocation27_spill] sm:$0xff]  ;;  %v4000_v18 = vld [vmem:[%s9650_s4] sm:$0xff]  ;;  %s5084_s5 = smov [#allocation2]  }
 0x7a4   :  { %3889 = vst [vmem:[#allocation7 + $0x328] sm:$0xff] %v3824_v45  ;;  %v3820_v8 = vsel %vm3692_vm2, %v3756_v31, 0.0  ;;  %v2084_v25 = vadd.f32 %v10305_v62, %v10304_v22  ;;  %s4109_s26 = sshll.u32 %s5084_s5, 4  ;;  %4006 = vperm.xlu1 %4546, %v4000_v18   ;;  %v4017_v3 = vpop.permute.xlu0 %4016  ;;  %s4110_s26 = int_to_ptr.vmem [resolvable:$true] %s4109_s26 }
 0x7a5   :  { %3564 = vst [vmem:[#allocation6 + $0x310] sm:$0xff] %v3499_v53  ;;  %4117 = dma.vmem_to_hbm [thread:$0]  %s4110_s26, 512, %s4112_s23, [#allocation3], %s5081_s16, %s5081_s16, %s5082_s17  }
 0x7a6   :  { %4525 = vmatpush.xpose.msk.msra.mxu3 %vm3694_vm1, %v3758_v43  ;;  %3886 = vst [vmem:[#allocation7 + $0x310] sm:$0xff] %v3821_v44 }
 0x7a7   :  { %3565 = vst [vmem:[#allocation6 + $0x318] sm:$0xff] %v3500_v41  ;;  %4510 = vmatpush.xpose.msk.msra.mxu2 %vm3691_vm3, %v3755_v23 }
 0x7a8   :  { %3887 = vst [vmem:[#allocation7 + $0x318] sm:$0xff] %v3822_v29 }
 0x7a9   :  { %3562 = vst [vmem:[#allocation6 + $0x300] sm:$0xff] %v3497_v37 }
 0x7aa   :  { %4526 = vmatpush.xpose.msk.msra.mxu3 %vm3692_vm2, %v3756_v31  ;;  %3884 = vst [vmem:[#allocation7 + $0x300] sm:$0xff] %v3819_v33  ;;  %3972 = vmatmul.f32.vlgmr.msra.gmra.mxu2 %v4951_v59 }
 0x7ab   :  { %3563 = vst [vmem:[#allocation6 + $0x308] sm:$0xff] %v3498_v54 }
 0x7ac   :  { %3885 = vst [vmem:[#allocation7 + $0x308] sm:$0xff] %v3820_v8  ;;  %4143 = dma.vmem_to_hbm [thread:$0]  %s4136_s27, 16384, %s4138_s29, [#allocation5], %s5081_s16, %s5081_s16, %s5082_s17  }
 0x7ad   :  { %3992 = vmatmul.f32.vlgmr.msra.gmra.mxu3 %v4952_v11  ;;  %4156 = dma.vmem_to_hbm [thread:$0]  %s4149_s19, 16384, %s4151_s21, [#allocation8], %s5081_s16, %s5081_s16, %s5082_s17  }
 0x7ae   :  { %4169 = dma.vmem_to_hbm [thread:$0]  %s4162_s13, 16384, %s4164_s30, [#allocation8], %s5081_s16, %s5081_s16, %s5082_s17  }
 0x7ed   :  { %v3933_v4 = vpop.f32.mrf.mxu2 }
 0x7ee   :  { %v3953_v12 = vpop.f32.mrf.mxu3 }
 0x7ef   :  { %v3954_v7 = vadd.f32 %v3953_v12, %v3933_v4 }
 0x7f1   :  { %4051 = vmatpush.msrb.mxu2 %v3954_v7 }
 0x7f3   :  { %4052 = vmatpush.msrb.mxu2 %v2044_v13 }
 0x7f4   :  { %4527 = vmatmul.msk.f32.vlgmr.msrb.gmra.mxu2 %vm4024_vm14, %v3996_v48 }
 0x7fc   :  { %4528 = vmatmul.msk.f32.gmra.mxu2 %vm4024_vm14, %v3997_v19 }
 0x804   :  { %4529 = vmatmul.msk.f32.gmra.mxu2 %vm4024_vm14, %v3998_v38 }
 0x80c   :  { %4530 = vmatmul.msk.f32.gmra.mxu2 %vm4024_vm14, %v3999_v1 }
 0x816   :  { %v4007_v34 = vpop.permute.xlu1 %4006 }
 0x82d   :  { %v3973_v9 = vpop.f32.mrf.mxu2 }
 0x830   :  { %v3993_v20 = vpop.f32.mrf.mxu3 }
 0x831   :  { %v3994_v46 = vadd.f32 %v3993_v20, %v3973_v9 }
 0x833   :  { %4080 = vmatpush.msrb.mxu3 %v3994_v46 }
 0x835   :  { %4081 = vmatpush.msrb.mxu3 %v2084_v25 }
 0x836   :  { %4531 = vmatmul.msk.f32.vlgmr.msrb.gmra.mxu3 %vm4024_vm14, %v3996_v48 }
 0x83e   :  { %4532 = vmatmul.msk.f32.gmra.mxu3 %vm4024_vm14, %v3997_v19 }
 0x846   :  { %4533 = vmatmul.msk.f32.gmra.mxu3 %vm4024_vm14, %v3998_v38 }
 0x84e   :  { %4534 = vmatmul.msk.f32.gmra.mxu3 %vm4024_vm14, %v3999_v1 }
 0x877   :  { %v4054_v49 = vpop.f32.mrf.mxu2 }
 0x878   :  { %v4055_v24 = vadd.f32 %v4054_v49, %v4007_v34 }
 0x87a   :  { %4095 = vst [vmem:[%s9652_s6] sm:$0xff] %v4055_v24 }
 0x87f   :  { %v4057_v26 = vpop.f32.mrf.mxu2 }
 0x880   :  { %v4058_v39 = vadd.f32 %v4057_v26, %v4012_v21 }
 0x882   :  { %4097 = vst [vmem:[%s9652_s6 + $0x10] sm:$0xff] %v4058_v39 }
 0x887   :  { %v4060_v47 = vpop.f32.mrf.mxu2 }
 0x888   :  { %v4061_v28 = vadd.f32 %v4060_v47, %v4017_v3 }
 0x88a   :  { %4099 = vst [vmem:[%s9652_s6 + $0x20] sm:$0xff] %v4061_v28 }
 0x88f   :  { %v4063_v51 = vpop.f32.mrf.mxu2 }
 0x890   :  { %v4064_v57 = vadd.f32 %v4063_v51, %v4022_v60 }
 0x892   :  { %4101 = vst [vmem:[%s9652_s6 + $0x30] sm:$0xff] %v4064_v57 }
 0x8b9   :  { %v4083_v5 = vpop.f32.mrf.mxu3 }
 0x8ba   :  { %v4084_v63 = vadd.f32 %v4083_v5, %v4007_v34 }
 0x8bc   :  { %4096 = vst [vmem:[%s9652_s6 + $0x8] sm:$0xff] %v4084_v63 }
 0x8c1   :  { %v4086_v61 = vpop.f32.mrf.mxu3 }
 0x8c2   :  { %v4087_v14 = vadd.f32 %v4086_v61, %v4012_v21 }
 0x8c4   :  { %4098 = vst [vmem:[%s9652_s6 + $0x18] sm:$0xff] %v4087_v14 }
 0x8c9   :  { %v4089_v50 = vpop.f32.mrf.mxu3 }
 0x8ca   :  { %v4090_v55 = vadd.f32 %v4089_v50, %v4017_v3 }
 0x8cc   :  { %4100 = vst [vmem:[%s9652_s6 + $0x28] sm:$0xff] %v4090_v55 }
 0x8d1   :  { %v4092_v52 = vpop.f32.mrf.mxu3 }
 0x8d2   :  { %v4093_v36 = vadd.f32 %v4092_v52, %v4022_v60 }
 0x8d4   :  { %4102 = vst [vmem:[%s9652_s6 + $0x38] sm:$0xff] %v4093_v36 }
 0x8d5   :  { %5073 = dma.done.wait [#allocation3], 512  }
 0x8d6   :  { %5074 = vsyncadd [#allocation3], 4294966784 }
 0x8d7   :  { %5075 = dma.done.wait [#allocation5], 16896  }
 0x8d8   :  { %5076 = vsyncadd [#allocation5], 4294950400 }
 0x8d9   :  { %5077 = dma.done.wait [#allocation8], 32768  }
 0x8da   :  { %5078 = vsyncadd [#allocation8], 4294934528 }
 0x8db   :  { %4192 = vsyncpa [#allocation3], 1 }
 0x8dc   :  { %4193 = vsyncpa [#allocation5], 1 }
 0x8dd   :  { %4194 = vsyncpa [#allocation8], 1 }

</bundles_post_ra>
